<compile_context>
chip_gen: v7x
topology: tpu7x:2x2x1
jax: 0.10.0
libtpu: 0.0.40
codegen_flags: <defaults>
</compile_context>

<pallas_src>
import jax
import jax.numpy as jnp
from jax import lax
from jax.experimental import pallas as pl
from jax.experimental.pallas import tpu as pltpu

_NEG_INF = float("-inf")


def _pick_block(n: int, d: int, itemsize: int) -> int:
    """Largest MXU-friendly block that fits the VMEM budget and doesn't over-pad N."""
    budget = 20 * 1024 * 1024
    for b in (512, 256, 128):
        tile_bytes = 4 * b * d * itemsize   # img + txt tiles, double-buffered
        tmp_bytes = 4 * b * b * 4           # logits tile + exp temporaries (f32)
        if tile_bytes + tmp_bytes > budget:
            continue
        # Only take a big block if it divides N or the padding waste is small.
        if n % b == 0 or n >= 4 * b:
            return b
    return 128


def _make_kernel(n: int, tm: int, tn: int, needs_mask: bool):
    def kernel(scale_ref, img_ref, txt_ref, out_ref,
               m_row, l_row, m_col, l_col, acc):
        i = pl.program_id(0)            # image / row block
        j = pl.program_id(1)            # text  / col block
        last_i = pl.num_programs(0) - 1
        last_j = pl.num_programs(1) - 1
        scale = scale_ref[0, 0]

        q = img_ref[...]                # (tm, D), native dtype -> MXU
        k = txt_ref[...]                # (tn, D)

        # s = scale * q @ k.T, contracting D of both operands (no transpose).
        s = scale * lax.dot_general(
            q, k, (((1,), (1,)), ((), ())),
            preferred_element_type=jnp.float32)          # (tm, tn) f32

        if needs_mask:
            row_ids = i * tm + lax.broadcasted_iota(jnp.int32, (tm, 1), 0)
            col_ids = j * tn + lax.broadcasted_iota(jnp.int32, (1, tn), 1)
            valid_row = row_ids < n                      # (tm, 1) bool
            valid_col = col_ids < n                      # (1, tn) bool
            s_row = jnp.where(valid_col, s, _NEG_INF)    # pad cols excluded from row-LSE
            s_col = jnp.where(valid_row, s, _NEG_INF)    # pad rows excluded from col-LSE
        else:
            valid_row = valid_col = None
            s_row = s
            s_col = s

        # ---- init accumulators -------------------------------------------
        @pl.when((i == 0) & (j == 0))
        def _():
            acc[...] = jnp.zeros_like(acc)

        @pl.when(j == 0)
        def _():
            m_row[...] = jnp.full_like(m_row, -jnp.inf)
            l_row[...] = jnp.zeros_like(l_row)

        @pl.when(i == 0)
        def _():
            m_col[j] = jnp.full((1, tn), -jnp.inf, jnp.float32)
            l_col[j] = jnp.zeros((1, tn), jnp.float32)

        # ---- online LSE over rows (image loss) ---------------------------
        mr_old = m_row[...]                                         # (tm, 1)
        mr_new = jnp.maximum(mr_old, jnp.max(s_row, axis=1, keepdims=True))
        l_row[...] = (jnp.exp(mr_old - mr_new) * l_row[...]
                      + jnp.sum(jnp.exp(s_row - mr_new), axis=1, keepdims=True))
        m_row[...] = mr_new

        # ---- online LSE over columns (text loss), lane-aligned [1, tn] ---
        mc_old = m_col[j]                                           # (1, tn)
        mc_new = jnp.maximum(mc_old, jnp.max(s_col, axis=0, keepdims=True))
        l_col[j] = (jnp.exp(mc_old - mc_new) * l_col[j]
                    + jnp.sum(jnp.exp(s_col - mc_new), axis=0, keepdims=True))
        m_col[j] = mc_new

        # ---- diagonal (labels = arange(N)); only block-diagonal tiles ----
        @pl.when(i == j)
        def _():
            dvec = scale * jnp.sum(q.astype(jnp.float32) * k.astype(jnp.float32),
                                   axis=1, keepdims=True)           # (tm, 1)
            if needs_mask:
                dvec = jnp.where(valid_row, dvec, 0.0)
            acc[...] -= 2.0 * jnp.sum(dvec, keepdims=True)

        # ---- finalize this row block: add sum of row LSEs ----------------
        @pl.when(j == last_j)
        def _():
            lse_r = m_row[...] + jnp.log(l_row[...])
            if needs_mask:
                lse_r = jnp.where(valid_row, lse_r, 0.0)
            acc[...] += jnp.sum(lse_r, keepdims=True)

        # ---- finalize this column block: add sum of col LSEs -------------
        @pl.when(i == last_i)
        def _():
            lse_c = m_col[j] + jnp.log(l_col[j])
            if needs_mask:
                lse_c = jnp.where(valid_col, lse_c, 0.0)
            acc[...] += jnp.sum(lse_c, keepdims=True)

        # ---- emit final loss at the last grid step ------------------------
        @pl.when((i == last_i) & (j == last_j))
        def _():
            out_ref[...] = acc[...] * (1.0 / (2.0 * n))

    return kernel


def clip_loss(text_features, image_features, logit_scale=1.0):
    """Pallas implementation of ClipLoss.forward (mean symmetric cross-entropy)."""
    n, d = image_features.shape
    assert text_features.shape == (n, d)
    itemsize = jnp.dtype(image_features.dtype).itemsize

    b = _pick_block(n, d, itemsize)
    n_pad = -(-n // b) * b
    needs_mask = n_pad != n
    if needs_mask:
        pad = n_pad - n
        image_features = jnp.pad(image_features, ((0, pad), (0, 0)))
        text_features = jnp.pad(text_features, ((0, pad), (0, 0)))

    tm = tn = b
    nr = n_pad // tm          # image / row blocks
    nc = n_pad // tn          # text  / col blocks

    kernel = _make_kernel(n, tm, tn, needs_mask)
    scale_arr = jnp.asarray(logit_scale, dtype=jnp.float32).reshape(1, 1)

    cost = pl.CostEstimate(
        flops=2 * n_pad * n_pad * d + 8 * n_pad * n_pad,
        transcendentals=2 * n_pad * n_pad,
        # txt re-read once per row block; img tile reused across the inner axis.
        bytes_accessed=(nr + 1) * n_pad * d * itemsize + 8,
    )

    out = pl.pallas_call(
        kernel,
        out_shape=jax.ShapeDtypeStruct((1, 1), jnp.float32),
        grid_spec=pltpu.PrefetchScalarGridSpec(
            num_scalar_prefetch=0,
            grid=(nr, nc),
            in_specs=[
                pl.BlockSpec(memory_space=pltpu.SMEM),          # logit_scale (1,1)
                pl.BlockSpec((tm, d), lambda i, j: (i, 0)),     # image feature tile
                pl.BlockSpec((tn, d), lambda i, j: (j, 0)),     # text  feature tile
            ],
            out_specs=pl.BlockSpec((1, 1), lambda i, j: (0, 0)),
            scratch_shapes=[
                pltpu.VMEM((tm, 1), jnp.float32),       # m_row
                pltpu.VMEM((tm, 1), jnp.float32),       # l_row
                pltpu.VMEM((nc, 1, tn), jnp.float32),   # m_col (per col block)
                pltpu.VMEM((nc, 1, tn), jnp.float32),   # l_col (per col block)
                pltpu.VMEM((1, 1), jnp.float32),        # scalar loss accumulator
            ],
        ),
        compiler_params=pltpu.CompilerParams(
            # Both axes carry cross-step state -> "arbitrary".
            # TODO(synk): per-core column partials would allow "parallel" rows on v7x.
            dimension_semantics=("arbitrary", "arbitrary"),
            vmem_limit_bytes=32 * 1024 * 1024,
        ),
        cost_estimate=cost,
    )(scale_arr, image_features, text_features)
    return out[0, 0]


def clip_loss_ref(text_features, image_features, logit_scale=1.0):
    """Pure-JAX reference mirroring the PyTorch module (true f32 matmul)."""
    hp = lax.Precision.HIGHEST
    logits_per_image = logit_scale * jnp.matmul(image_features, text_features.T, precision=hp)
    logits_per_text = logit_scale * jnp.matmul(text_features, image_features.T, precision=hp)
    n = logits_per_image.shape[0]
    labels = jnp.arange(n)

    def ce(logits):
        lse = jax.scipy.special.logsumexp(logits, axis=1)
        picked = logits[jnp.arange(n), labels]
        return jnp.mean(lse - picked)

    return 0.5 * (ce(logits_per_image) + ce(logits_per_text))


if __name__ == "__main__":
    key = jax.random.PRNGKey(0)
    logit_scale = 2.5

    def make_feats(k, n, d):
        k1, k2 = jax.random.split(k)
        img = jax.random.normal(k1, (n, d), dtype=jnp.float32)
        txt = jax.random.normal(k2, (n, d), dtype=jnp.float32)
        img = img / jnp.linalg.norm(img, axis=-1, keepdims=True)
        txt = txt / jnp.linalg.norm(txt, axis=-1, keepdims=True)
        return img, txt

    ka, kb = jax.random.split(key)

    # Case 1: block-aligned N (no padding path).
    img1, txt1 = make_feats(ka, 256, 128)
    loss1 = jax.block_until_ready(clip_loss(txt1, img1, logit_scale))
    ref1 = clip_loss_ref(txt1, img1, logit_scale)
    assert jnp.allclose(loss1, ref1, rtol=1e-3, atol=1e-3), (loss1, ref1)

    # Case 2: ragged N (exercises pad + in-kernel masking on a multi-block grid).
    img2, txt2 = make_feats(kb, 200, 128)
    loss2 = jax.block_until_ready(clip_loss(txt2, img2, logit_scale))
    ref2 = clip_loss_ref(txt2, img2, logit_scale)
    assert jnp.allclose(loss2, ref2, rtol=1e-3, atol=1e-3), (loss2, ref2)

    print("KERNEL_OK")
</pallas_src>

<mosaic_0001>
module attributes {stable_mosaic.version = 11 : i64} {
  func.func @kernel(%arg0: i32, %arg1: i32, %arg2: memref<1x1xf32, #tpu.memory_space<smem>>, %arg3: memref<256x128xf32, #tpu.memory_space<vmem>>, %arg4: memref<256x128xf32, #tpu.memory_space<vmem>>, %arg5: memref<1x1xf32, #tpu.memory_space<vmem>>, %arg6: memref<256x1xf32, #tpu.memory_space<vmem>>, %arg7: memref<256x1xf32, #tpu.memory_space<vmem>>, %arg8: memref<1x1x256xf32, #tpu.memory_space<vmem>>, %arg9: memref<1x1x256xf32, #tpu.memory_space<vmem>>, %arg10: memref<1x1xf32, #tpu.memory_space<vmem>>) attributes {dimension_semantics = [#tpu.dimension_semantics<arbitrary>, #tpu.dimension_semantics<arbitrary>], iteration_bounds = array<i64: 1, 1>, scalar_prefetch = 0 : i64, scratch_operands = 5 : i64, tpu.core_type = #tpu.core_type<tc>, window_params = [{transform_indices = @transform_0, window_bounds = array<i64: 1, 1>}, {transform_indices = @transform_1, window_bounds = array<i64: 256, 128>}, {transform_indices = @transform_2, window_bounds = array<i64: 256, 128>}, {pipeline_mode = #tpu.pipeline_mode<synchronous>, transform_indices = @transform_3, window_bounds = array<i64: 1, 1>}]} {
    %c0 = arith.constant 0 : index
    %c0_0 = arith.constant 0 : index
    %0 = memref.load %arg2[%c0, %c0_0] : memref<1x1xf32, #tpu.memory_space<smem>>
    %c0_1 = arith.constant 0 : index
    %c0_2 = arith.constant 0 : index
    %1 = vector.load %arg3[%c0_1, %c0_2] : memref<256x128xf32, #tpu.memory_space<vmem>>, vector<256x128xf32>
    %c0_3 = arith.constant 0 : index
    %c0_4 = arith.constant 0 : index
    %2 = vector.load %arg4[%c0_3, %c0_4] : memref<256x128xf32, #tpu.memory_space<vmem>>, vector<256x128xf32>
    %cst = arith.constant dense<0.000000e+00> : vector<256x256xf32>
    %3 = tpu.matmul %1, %2, %cst {dimension_numbers = #tpu.dot_dimension_numbers<[1], [1], [0], [0], [0, 0, 1, 0], [], []>} : vector<256x128xf32>, vector<256x128xf32>, vector<256x256xf32> -> vector<256x256xf32>
    %4 = vector.broadcast %0 : f32 to vector<256x256xf32>
    %5 = arith.mulf %4, %3 : vector<256x256xf32>
    %c0_i32 = arith.constant 0 : i32
    %6 = arith.cmpi eq, %arg0, %c0_i32 : i32
    %c0_i32_5 = arith.constant 0 : i32
    %7 = arith.cmpi eq, %arg1, %c0_i32_5 : i32
    %8 = arith.andi %6, %7 : i1
    %9 = arith.extui %8 : i1 to i32
    %c0_i32_6 = arith.constant 0 : i32
    %10 = arith.cmpi ne, %9, %c0_i32_6 : i32
    scf.if %10 {
      %cst_39 = arith.constant 0.000000e+00 : f32
      %73 = vector.broadcast %cst_39 : f32 to vector<1x1xf32>
      %c0_40 = arith.constant 0 : index
      %c0_41 = arith.constant 0 : index
      %74 = vector.load %arg10[%c0_40, %c0_41] : memref<1x1xf32, #tpu.memory_space<vmem>>, vector<1x1xf32>
      tpu.vector_store %arg10[%c0_40, %c0_41], %73 {strides = array<i32>} : memref<1x1xf32, #tpu.memory_space<vmem>>, vector<1x1xf32>,
    } else {
    }
    %c0_i32_7 = arith.constant 0 : i32
    %11 = arith.cmpi eq, %arg1, %c0_i32_7 : i32
    %12 = arith.extui %11 : i1 to i32
    %c0_i32_8 = arith.constant 0 : i32
    %13 = arith.cmpi ne, %12, %c0_i32_8 : i32
    scf.if %13 {
      %cst_39 = arith.constant 0xFF800000 : f32
      %73 = vector.broadcast %cst_39 : f32 to vector<256x1xf32>
      %c0_40 = arith.constant 0 : index
      %c0_41 = arith.constant 0 : index
      %74 = vector.load %arg6[%c0_40, %c0_41] : memref<256x1xf32, #tpu.memory_space<vmem>>, vector<256x1xf32>
      tpu.vector_store %arg6[%c0_40, %c0_41], %73 {strides = array<i32>} : memref<256x1xf32, #tpu.memory_space<vmem>>, vector<256x1xf32>,
      %cst_42 = arith.constant 0.000000e+00 : f32
      %75 = vector.broadcast %cst_42 : f32 to vector<256x1xf32>
      %c0_43 = arith.constant 0 : index
      %c0_44 = arith.constant 0 : index
      %76 = vector.load %arg7[%c0_43, %c0_44] : memref<256x1xf32, #tpu.memory_space<vmem>>, vector<256x1xf32>
      tpu.vector_store %arg7[%c0_43, %c0_44], %75 {strides = array<i32>} : memref<256x1xf32, #tpu.memory_space<vmem>>, vector<256x1xf32>,
    } else {
    }
    %c0_i32_9 = arith.constant 0 : i32
    %14 = arith.cmpi eq, %arg0, %c0_i32_9 : i32
    %15 = arith.extui %14 : i1 to i32
    %c0_i32_10 = arith.constant 0 : i32
    %16 = arith.cmpi ne, %15, %c0_i32_10 : i32
    scf.if %16 {
      %cst_39 = arith.constant 0xFF800000 : f32
      %73 = vector.broadcast %cst_39 : f32 to vector<1x256xf32>
      %74 = arith.index_cast %arg1 : i32 to index
      %c0_40 = arith.constant 0 : index
      %c0_41 = arith.constant 0 : index
      %75 = vector.load %arg8[%74, %c0_40, %c0_41] : memref<1x1x256xf32, #tpu.memory_space<vmem>>, vector<1x1x256xf32>
      %76 = vector.shape_cast %75 : vector<1x1x256xf32> to vector<1x256xf32>
      %77 = vector.shape_cast %73 : vector<1x256xf32> to vector<1x1x256xf32>
      tpu.vector_store %arg8[%74, %c0_40, %c0_41], %77 {strides = array<i32>} : memref<1x1x256xf32, #tpu.memory_space<vmem>>, vector<1x1x256xf32>,
      %cst_42 = arith.constant 0.000000e+00 : f32
      %78 = vector.broadcast %cst_42 : f32 to vector<1x256xf32>
      %79 = arith.index_cast %arg1 : i32 to index
      %c0_43 = arith.constant 0 : index
      %c0_44 = arith.constant 0 : index
      %80 = vector.load %arg9[%79, %c0_43, %c0_44] : memref<1x1x256xf32, #tpu.memory_space<vmem>>, vector<1x1x256xf32>
      %81 = vector.shape_cast %80 : vector<1x1x256xf32> to vector<1x256xf32>
      %82 = vector.shape_cast %78 : vector<1x256xf32> to vector<1x1x256xf32>
      tpu.vector_store %arg9[%79, %c0_43, %c0_44], %82 {strides = array<i32>} : memref<1x1x256xf32, #tpu.memory_space<vmem>>, vector<1x1x256xf32>,
    } else {
    }
    %c0_11 = arith.constant 0 : index
    %c0_12 = arith.constant 0 : index
    %17 = vector.load %arg6[%c0_11, %c0_12] : memref<256x1xf32, #tpu.memory_space<vmem>>, vector<256x1xf32>
    %cst_13 = arith.constant dense<0xFF800000> : vector<256xf32>
    %18 = vector.multi_reduction <maximumf>, %5, %cst_13 [1] : vector<256x256xf32> to vector<256xf32>
    %19 = vector.shape_cast %18 : vector<256xf32> to vector<256x1xf32>
    %20 = arith.maximumf %17, %19 : vector<256x1xf32>
    %21 = arith.subf %17, %20 : vector<256x1xf32>
    %22 = math.exp %21 : vector<256x1xf32>
    %c0_14 = arith.constant 0 : index
    %c0_15 = arith.constant 0 : index
    %23 = vector.load %arg7[%c0_14, %c0_15] : memref<256x1xf32, #tpu.memory_space<vmem>>, vector<256x1xf32>
    %24 = arith.mulf %22, %23 : vector<256x1xf32>
    %25 = vector.broadcast %20 : vector<256x1xf32> to vector<256x256xf32>
    %26 = arith.subf %5, %25 : vector<256x256xf32>
    %27 = math.exp %26 : vector<256x256xf32>
    %cst_16 = arith.constant dense<0.000000e+00> : vector<256xf32>
    %28 = vector.multi_reduction <add>, %27, %cst_16 [1] : vector<256x256xf32> to vector<256xf32>
    %29 = vector.shape_cast %28 : vector<256xf32> to vector<256x1xf32>
    %30 = arith.addf %24, %29 : vector<256x1xf32>
    %c0_17 = arith.constant 0 : index
    %c0_18 = arith.constant 0 : index
    %31 = vector.load %arg7[%c0_17, %c0_18] : memref<256x1xf32, #tpu.memory_space<vmem>>, vector<256x1xf32>
    tpu.vector_store %arg7[%c0_17, %c0_18], %30 {strides = array<i32>} : memref<256x1xf32, #tpu.memory_space<vmem>>, vector<256x1xf32>,
    %c0_19 = arith.constant 0 : index
    %c0_20 = arith.constant 0 : index
    %32 = vector.load %arg6[%c0_19, %c0_20] : memref<256x1xf32, #tpu.memory_space<vmem>>, vector<256x1xf32>
    tpu.vector_store %arg6[%c0_19, %c0_20], %20 {strides = array<i32>} : memref<256x1xf32, #tpu.memory_space<vmem>>, vector<256x1xf32>,
    %33 = arith.index_cast %arg1 : i32 to index
    %c0_21 = arith.constant 0 : index
    %c0_22 = arith.constant 0 : index
    %34 = vector.load %arg8[%33, %c0_21, %c0_22] : memref<1x1x256xf32, #tpu.memory_space<vmem>>, vector<1x1x256xf32>
    %35 = vector.shape_cast %34 : vector<1x1x256xf32> to vector<1x256xf32>
    %cst_23 = arith.constant dense<0xFF800000> : vector<256xf32>
    %36 = vector.multi_reduction <maximumf>, %5, %cst_23 [0] : vector<256x256xf32> to vector<256xf32>
    %37 = vector.shape_cast %36 : vector<256xf32> to vector<1x256xf32>
    %38 = arith.maximumf %35, %37 : vector<1x256xf32>
    %39 = arith.subf %35, %38 : vector<1x256xf32>
    %40 = math.exp %39 : vector<1x256xf32>
    %41 = arith.index_cast %arg1 : i32 to index
    %c0_24 = arith.constant 0 : index
    %c0_25 = arith.constant 0 : index
    %42 = vector.load %arg9[%41, %c0_24, %c0_25] : memref<1x1x256xf32, #tpu.memory_space<vmem>>, vector<1x1x256xf32>
    %43 = vector.shape_cast %42 : vector<1x1x256xf32> to vector<1x256xf32>
    %44 = arith.mulf %40, %43 : vector<1x256xf32>
    %45 = vector.broadcast %38 : vector<1x256xf32> to vector<256x256xf32>
    %46 = arith.subf %5, %45 : vector<256x256xf32>
    %47 = math.exp %46 : vector<256x256xf32>
    %cst_26 = arith.constant dense<0.000000e+00> : vector<256xf32>
    %48 = vector.multi_reduction <add>, %47, %cst_26 [0] : vector<256x256xf32> to vector<256xf32>
    %49 = vector.shape_cast %48 : vector<256xf32> to vector<1x256xf32>
    %50 = arith.addf %44, %49 : vector<1x256xf32>
    %51 = arith.index_cast %arg1 : i32 to index
    %c0_27 = arith.constant 0 : index
    %c0_28 = arith.constant 0 : index
    %52 = vector.load %arg9[%51, %c0_27, %c0_28] : memref<1x1x256xf32, #tpu.memory_space<vmem>>, vector<1x1x256xf32>
    %53 = vector.shape_cast %52 : vector<1x1x256xf32> to vector<1x256xf32>
    %54 = vector.shape_cast %50 : vector<1x256xf32> to vector<1x1x256xf32>
    tpu.vector_store %arg9[%51, %c0_27, %c0_28], %54 {strides = array<i32>} : memref<1x1x256xf32, #tpu.memory_space<vmem>>, vector<1x1x256xf32>,
    %55 = arith.index_cast %arg1 : i32 to index
    %c0_29 = arith.constant 0 : index
    %c0_30 = arith.constant 0 : index
    %56 = vector.load %arg8[%55, %c0_29, %c0_30] : memref<1x1x256xf32, #tpu.memory_space<vmem>>, vector<1x1x256xf32>
    %57 = vector.shape_cast %56 : vector<1x1x256xf32> to vector<1x256xf32>
    %58 = vector.shape_cast %38 : vector<1x256xf32> to vector<1x1x256xf32>
    tpu.vector_store %arg8[%55, %c0_29, %c0_30], %58 {strides = array<i32>} : memref<1x1x256xf32, #tpu.memory_space<vmem>>, vector<1x1x256xf32>,
    %59 = arith.cmpi eq, %arg0, %arg1 : i32
    %60 = arith.extui %59 : i1 to i32
    %c0_i32_31 = arith.constant 0 : i32
    %61 = arith.cmpi ne, %60, %c0_i32_31 : i32
    scf.if %61 {
      %73 = arith.mulf %1, %2 : vector<256x128xf32>
      %cst_39 = arith.constant dense<0.000000e+00> : vector<256xf32>
      %74 = vector.multi_reduction <add>, %73, %cst_39 [1] : vector<256x128xf32> to vector<256xf32>
      %75 = vector.shape_cast %74 : vector<256xf32> to vector<256x1xf32>
      %76 = vector.broadcast %0 : f32 to vector<256x1xf32>
      %77 = arith.mulf %76, %75 : vector<256x1xf32>
      %c0_40 = arith.constant 0 : index
      %c0_41 = arith.constant 0 : index
      %78 = vector.load %arg10[%c0_40, %c0_41] : memref<1x1xf32, #tpu.memory_space<vmem>>, vector<1x1xf32>
      %79 = vector.shape_cast %77 : vector<256x1xf32> to vector<1x256x1xf32>
      %cst_42 = arith.constant dense<0.000000e+00> : vector<1xf32>
      %80 = vector.multi_reduction <add>, %79, %cst_42 [1, 2] : vector<1x256x1xf32> to vector<1xf32>
      %81 = vector.shape_cast %80 : vector<1xf32> to vector<1x1x1xf32>
      %82 = vector.extract %81[0, 0, 0] : f32 from vector<1x1x1xf32>
      %83 = vector.broadcast %82 : f32 to vector<1x1xf32>
      %cst_43 = arith.constant 2.000000e+00 : f32
      %84 = vector.broadcast %cst_43 : f32 to vector<1x1xf32>
      %85 = arith.mulf %84, %83 : vector<1x1xf32>
      %86 = arith.subf %78, %85 : vector<1x1xf32>
      %c0_44 = arith.constant 0 : index
      %c0_45 = arith.constant 0 : index
      %87 = vector.load %arg10[%c0_44, %c0_45] : memref<1x1xf32, #tpu.memory_space<vmem>>, vector<1x1xf32>
      tpu.vector_store %arg10[%c0_44, %c0_45], %86 {strides = array<i32>} : memref<1x1xf32, #tpu.memory_space<vmem>>, vector<1x1xf32>,
    } else {
    }
    %c0_i32_32 = arith.constant 0 : i32
    %62 = arith.cmpi eq, %arg1, %c0_i32_32 : i32
    %63 = arith.extui %62 : i1 to i32
    %c0_i32_33 = arith.constant 0 : i32
    %64 = arith.cmpi ne, %63, %c0_i32_33 : i32
    scf.if %64 {
      %c0_39 = arith.constant 0 : index
      %c0_40 = arith.constant 0 : index
      %73 = vector.load %arg6[%c0_39, %c0_40] : memref<256x1xf32, #tpu.memory_space<vmem>>, vector<256x1xf32>
      %c0_41 = arith.constant 0 : index
      %c0_42 = arith.constant 0 : index
      %74 = vector.load %arg7[%c0_41, %c0_42] : memref<256x1xf32, #tpu.memory_space<vmem>>, vector<256x1xf32>
      %75 = math.log %74 : vector<256x1xf32>
      %76 = arith.addf %73, %75 : vector<256x1xf32>
      %c0_43 = arith.constant 0 : index
      %c0_44 = arith.constant 0 : index
      %77 = vector.load %arg10[%c0_43, %c0_44] : memref<1x1xf32, #tpu.memory_space<vmem>>, vector<1x1xf32>
      %78 = vector.shape_cast %76 : vector<256x1xf32> to vector<1x256x1xf32>
      %cst_45 = arith.constant dense<0.000000e+00> : vector<1xf32>
      %79 = vector.multi_reduction <add>, %78, %cst_45 [1, 2] : vector<1x256x1xf32> to vector<1xf32>
      %80 = vector.shape_cast %79 : vector<1xf32> to vector<1x1x1xf32>
      %81 = vector.extract %80[0, 0, 0] : f32 from vector<1x1x1xf32>
      %82 = vector.broadcast %81 : f32 to vector<1x1xf32>
      %83 = arith.addf %77, %82 : vector<1x1xf32>
      %c0_46 = arith.constant 0 : index
      %c0_47 = arith.constant 0 : index
      %84 = vector.load %arg10[%c0_46, %c0_47] : memref<1x1xf32, #tpu.memory_space<vmem>>, vector<1x1xf32>
      tpu.vector_store %arg10[%c0_46, %c0_47], %83 {strides = array<i32>} : memref<1x1xf32, #tpu.memory_space<vmem>>, vector<1x1xf32>,
    } else {
    }
    %c0_i32_34 = arith.constant 0 : i32
    %65 = arith.cmpi eq, %arg0, %c0_i32_34 : i32
    %66 = arith.extui %65 : i1 to i32
    %c0_i32_35 = arith.constant 0 : i32
    %67 = arith.cmpi ne, %66, %c0_i32_35 : i32
    scf.if %67 {
      %73 = arith.index_cast %arg1 : i32 to index
      %c0_39 = arith.constant 0 : index
      %c0_40 = arith.constant 0 : index
      %74 = vector.load %arg8[%73, %c0_39, %c0_40] : memref<1x1x256xf32, #tpu.memory_space<vmem>>, vector<1x1x256xf32>
      %75 = vector.shape_cast %74 : vector<1x1x256xf32> to vector<1x256xf32>
      %76 = arith.index_cast %arg1 : i32 to index
      %c0_41 = arith.constant 0 : index
      %c0_42 = arith.constant 0 : index
      %77 = vector.load %arg9[%76, %c0_41, %c0_42] : memref<1x1x256xf32, #tpu.memory_space<vmem>>, vector<1x1x256xf32>
      %78 = vector.shape_cast %77 : vector<1x1x256xf32> to vector<1x256xf32>
      %79 = math.log %78 : vector<1x256xf32>
      %80 = arith.addf %75, %79 : vector<1x256xf32>
      %c0_43 = arith.constant 0 : index
      %c0_44 = arith.constant 0 : index
      %81 = vector.load %arg10[%c0_43, %c0_44] : memref<1x1xf32, #tpu.memory_space<vmem>>, vector<1x1xf32>
      %82 = vector.shape_cast %80 : vector<1x256xf32> to vector<1x1x256xf32>
      %cst_45 = arith.constant dense<0.000000e+00> : vector<1xf32>
      %83 = vector.multi_reduction <add>, %82, %cst_45 [1, 2] : vector<1x1x256xf32> to vector<1xf32>
      %84 = vector.shape_cast %83 : vector<1xf32> to vector<1x1x1xf32>
      %85 = vector.extract %84[0, 0, 0] : f32 from vector<1x1x1xf32>
      %86 = vector.broadcast %85 : f32 to vector<1x1xf32>
      %87 = arith.addf %81, %86 : vector<1x1xf32>
      %c0_46 = arith.constant 0 : index
      %c0_47 = arith.constant 0 : index
      %88 = vector.load %arg10[%c0_46, %c0_47] : memref<1x1xf32, #tpu.memory_space<vmem>>, vector<1x1xf32>
      tpu.vector_store %arg10[%c0_46, %c0_47], %87 {strides = array<i32>} : memref<1x1xf32, #tpu.memory_space<vmem>>, vector<1x1xf32>,
    } else {
    }
    %c0_i32_36 = arith.constant 0 : i32
    %68 = arith.cmpi eq, %arg0, %c0_i32_36 : i32
    %c0_i32_37 = arith.constant 0 : i32
    %69 = arith.cmpi eq, %arg1, %c0_i32_37 : i32
    %70 = arith.andi %68, %69 : i1
    %71 = arith.extui %70 : i1 to i32
    %c0_i32_38 = arith.constant 0 : i32
    %72 = arith.cmpi ne, %71, %c0_i32_38 : i32
    scf.if %72 {
      %c0_39 = arith.constant 0 : index
      %c0_40 = arith.constant 0 : index
      %73 = vector.load %arg10[%c0_39, %c0_40] : memref<1x1xf32, #tpu.memory_space<vmem>>, vector<1x1xf32>
      %cst_41 = arith.constant 0.001953125 : f32
      %74 = vector.broadcast %cst_41 : f32 to vector<1x1xf32>
      %75 = arith.mulf %73, %74 : vector<1x1xf32>
      %c0_42 = arith.constant 0 : index
      %c0_43 = arith.constant 0 : index
      %76 = vector.load %arg5[%c0_42, %c0_43] : memref<1x1xf32, #tpu.memory_space<vmem>>, vector<1x1xf32>
      tpu.vector_store %arg5[%c0_42, %c0_43], %75 {strides = array<i32>} : memref<1x1xf32, #tpu.memory_space<vmem>>, vector<1x1xf32>,
    } else {
    }
    return
  }
  func.func @transform_0(%arg0: i32, %arg1: i32) -> (i32, i32) {
    %c0_i32 = arith.constant 0 : i32
    %c0_i32_0 = arith.constant 0 : i32
    %c0_i32_1 = arith.constant 0 : i32
    return %c0_i32, %c0_i32_0 : i32, i32
  }
  func.func @transform_1(%arg0: i32, %arg1: i32) -> (i32, i32) {
    %c0_i32 = arith.constant 0 : i32
    %c0_i32_0 = arith.constant 0 : i32
    return %arg0, %c0_i32 : i32, i32
  }
  func.func @transform_2(%arg0: i32, %arg1: i32) -> (i32, i32) {
    %c0_i32 = arith.constant 0 : i32
    %c0_i32_0 = arith.constant 0 : i32
    return %arg1, %c0_i32 : i32, i32
  }
  func.func @transform_3(%arg0: i32, %arg1: i32) -> (i32, i32) {
    %c0_i32 = arith.constant 0 : i32
    %c0_i32_0 = arith.constant 0 : i32
    %c0_i32_1 = arith.constant 0 : i32
    return %c0_i32, %c0_i32_0 : i32, i32
  }
}

</mosaic_0001>

<bundles_post_ra>
// kernel: tpu_custom_call.1
= control target key start
LH: loop header
LB: loop body
LE: loop exit
PB: predicated region body
PF: predicated region fallthrough
CT: control target
= control target key end

     0   :  { %9 = vsyncpa [#allocation9], 0  ;;  %s4446_s0 = inlined_call_operand.<no memory space> [shape: f32[1,1], index: 0, kind: input, shape index: {}]   ;;  %s4447_s1 = inlined_call_operand.hbm [shape: f32[256,128], index: 1, kind: input, shape index: {}]   ;;  %s4448_s2 = inlined_call_operand.hbm [shape: f32[256,128], index: 2, kind: input, shape index: {}]   ;;  %s4449_s3 = inlined_call_operand.hbm [shape: f32[1,1], index: 3, kind: output, shape index: {}]  }
   0x1   :  { %10 = vsyncpa [#allocation12], 0 }
   0x2   :  { %11 = vsyncpa [#allocation10], 0  ;;  %s2954_s12 = smov [#allocation8]   ;;  %s2882_s16 = scalar_lea.hbm %s4447_s1, 4096 }
   0x3   :  { %s19_s13 = sshll.u32 %s2954_s12, 4  ;;  %p2883_p0 = scmp.ne.s32.totalorder %s4447_s1, %s2882_s16  ;;  %s20_s13 = int_to_ptr.vmem [resolvable:$true] %s19_s13 }
   0x4   :  { %p2886_p1 = scmp.lt.u32.totalorder %s2882_s16, %s4447_s1 }
   0x6   :  { %p2888_p2 = pnand %p2886_p1, %p2883_p0 }
   0x8   :  { %2891 = shalt.err (!%p2888_p2)
}
   0x9   :  { %s2892_s21 = scalar_lea.vmem %s20_s13, 4096  ;;  %p2897_p4 = scmp.lt.s32.totalorder %s20_s13, %s20_s13 }
   0xa   :  { %p2893_p3 = scmp.ne.s32.totalorder %s20_s13, %s2892_s21  ;;  %p2898_p5 = scmp.lt.s32.totalorder %s2892_s21, %s2892_s21 }
   0xc   :  { %p2899_p6 = por %p2898_p5, %p2897_p4 }
   0xe   :  { %p2900_p7 = pnand %p2899_p6, %p2893_p3 }
  0x10   :  { %2903 = shalt.err (!%p2900_p7)
}
  0x11   :  { %s2955_s22 = smov 128   ;;  %s2956_s23 = smov 8  }
  0x12   :  { %25 = dma.hbm_to_vmem [thread:$0]  %s4447_s1, 4096, %s20_s13, [#allocation9], %s2955_s22, %s2955_s22, %s2956_s23  }
  0x13   :  { %s2957_s26 = smov [#allocation11]   ;;  %s2904_s30 = scalar_lea.hbm %s4448_s2, 4096 }
  0x14   :  { %s31_s27 = sshll.u32 %s2957_s26, 4  ;;  %p2905_p8 = scmp.ne.s32.totalorder %s4448_s2, %s2904_s30  ;;  %s32_s27 = int_to_ptr.vmem [resolvable:$true] %s31_s27 }
  0x15   :  { %p2908_p9 = scmp.lt.u32.totalorder %s2904_s30, %s4448_s2 }
  0x17   :  { %p2910_p10 = pnand %p2908_p9, %p2905_p8 }
  0x19   :  { %2913 = shalt.err (!%p2910_p10)
}
  0x1a   :  { %s2914_s8 = scalar_lea.vmem %s32_s27, 4096  ;;  %p2919_p12 = scmp.lt.s32.totalorder %s32_s27, %s32_s27 }
  0x1b   :  { %p2915_p11 = scmp.ne.s32.totalorder %s32_s27, %s2914_s8  ;;  %p2920_p13 = scmp.lt.s32.totalorder %s2914_s8, %s2914_s8 }
  0x1d   :  { %p2921_p0 = por %p2920_p13, %p2919_p12 }
  0x1f   :  { %p2922_p1 = pnand %p2921_p0, %p2915_p11 }
  0x21   :  { %2925 = shalt.err (!%p2922_p1)
}
  0x22   :  { %37 = dma.hbm_to_vmem [thread:$0]  %s4448_s2, 4096, %s32_s27, [#allocation12], %s2955_s22, %s2955_s22, %s2956_s23  }
  0x23   :  { %2948 = dma.done.wait [#allocation9], 4096  }
  0x24   :  { %2949 = vsyncadd [#allocation9], 4294963200 }
  0x25   :  { %2950 = dma.done.wait [#allocation12], 4096  }
  0x26   :  { %2951 = vsyncadd [#allocation12], 4294963200  ;;  %v93_v0 = vld [vmem:[#allocation11 + $0x80] sm:$0xff]  ;;  %v94_v1 = vld [vmem:[#allocation11 + $0x88] sm:$0xff]  ;;  %vm442_vm1 = vcmask 7168   ;;  %vm2258_vm2 = vcmask 1040384  }
  0x27   :  { %v77_v2 = vld [vmem:[#allocation11] sm:$0xff]  ;;  %v2393_v3 = vpack.c.bf16 %v94_v1, %v93_v0  ;;  %v78_v4 = vld [vmem:[#allocation11 + $0x8] sm:$0xff]  ;;  %v95_v5 = vld [vmem:[#allocation11 + $0x90] sm:$0xff]  ;;  %vm437_vm3 = vcmask 0   ;;  %s2962_s13 = smov [#allocation13]  }
  0x28   :  { %v96_v6 = vld [vmem:[#allocation11 + $0x98] sm:$0xff]  ;;  %v2395_v7 = vpack.c.bf16 %v78_v4, %v77_v2  ;;  %v79_v9 = vld [vmem:[#allocation11 + $0x10] sm:$0xff]  ;;  %v97_v11 = vld [vmem:[#allocation11 + $0xa0] sm:$0xff]  ;;  %s2287_s14 = sshll.u32 %s2962_s13, 4  ;;  %s2288_s14 = int_to_ptr.vmem [resolvable:$true] %s2287_s14 }
  0x29   :  { %v2397_v8 = vpack.c.bf16 %v96_v6, %v95_v5  ;;  %2394 = vmatprep.subr.bf16.mxu0 %v2393_v3  ;;  %2425 = vmatprep.subr.bf16.mxu1 %v2393_v3  ;;  %v80_v10 = vld [vmem:[#allocation11 + $0x18] sm:$0xff]  ;;  %v98_v12 = vld [vmem:[#allocation11 + $0xa8] sm:$0xff]  ;;  %v3007_v15 = vld [vmem:[#allocation8] sm:$0xff]  ;;  %s2926_s15 = scalar_lea.vmem %s2288_s14, 16  ;;  %s2930_s16 = scalar_lea.vmem %s2288_s14, 32 }
  0x2a   :  { %2396 = vmatpush3.bf16.xpose.msra.mxu0 %v2395_v7  ;;  %2433 = vmatpush3.bf16.xpose.msra.mxu1 %v2395_v7  ;;  %v2399_v13 = vpack.c.bf16 %v80_v10, %v79_v9  ;;  %v2401_v14 = vpack.c.bf16 %v98_v12, %v97_v11  ;;  %v3010_v16 = vld [vmem:[#allocation8 + $0x80] sm:$0xff]  ;;  %v3012_v17 = vld [vmem:[#allocation8 + $0x8] sm:$0xff]  ;;  %v1792_v18 = vmul.f32 %v77_v2, %v3007_v15  ;;  %v3016_v22 = vld [vmem:[#allocation8 + $0x10] sm:$0xff]  ;;  %p2927_p2 = scmp.ne.s32.totalorder %s2288_s14, %s2926_s15  ;;  %p2931_p3 = scmp.lt.s32.totalorder %s2288_s14, %s2288_s14 }
  0x2b   :  { %2398 = vmatprep.subr.bf16.mxu0 %v2397_v8  ;;  %2426 = vmatprep.subr.bf16.mxu1 %v2397_v8  ;;  %v1793_v19 = vmul.f32 %v78_v4, %v3012_v17  ;;  %v81_v20 = vld [vmem:[#allocation11 + $0x20] sm:$0xff]  ;;  %v82_v21 = vld [vmem:[#allocation11 + $0x28] sm:$0xff]  ;;  %v99_v23 = vld [vmem:[#allocation11 + $0xb0] sm:$0xff]  ;;  %v1794_v25 = vmul.f32 %v79_v9, %v3016_v22  ;;  %p2932_p4 = scmp.lt.s32.totalorder %s2930_s16, %s2926_s15 }
  0x2c   :  { %2329 = vmatprep.mubr.f32.mxu0 %v3007_v15  ;;  %v100_v24 = vld [vmem:[#allocation11 + $0xb8] sm:$0xff]  ;;  %2361 = vmatprep.mubr.f32.mxu1 %v3010_v16  ;;  %v2403_v26 = vpack.c.bf16 %v82_v21, %v81_v20  ;;  %v83_v30 = vld [vmem:[#allocation11 + $0x30] sm:$0xff]  ;;  %v3023_v32 = vld [vmem:[#allocation8 + $0x20] sm:$0xff] }
  0x2d   :  { %1826 = vadd.xlane.f32.xlu0 %v1793_v19  ;;  %1824 = vadd.xlane.f32.xlu1 %v1792_v18  ;;  %v2405_v27 = vpack.c.bf16 %v100_v24, %v99_v23  ;;  %v3020_v28 = vld [vmem:[#allocation8 + $0x18] sm:$0xff]  ;;  %v101_v33 = vld [vmem:[#allocation11 + $0xc0] sm:$0xff]  ;;  %v102_v34 = vld [vmem:[#allocation11 + $0xc8] sm:$0xff]  ;;  %v1796_v35 = vmul.f32 %v81_v20, %v3023_v32  ;;  %p2933_p5 = por %p2932_p4, %p2931_p3 }
  0x2e   :  { %v1795_v29 = vmul.f32 %v80_v10, %v3020_v28  ;;  %v84_v31 = vld [vmem:[#allocation11 + $0x38] sm:$0xff]  ;;  %v2409_v37 = vpack.c.bf16 %v102_v34, %v101_v33  ;;  %v3026_v38 = vld [vmem:[#allocation8 + $0x28] sm:$0xff]  ;;  %v85_v40 = vld [vmem:[#allocation11 + $0x40] sm:$0xff]  ;;  %v3091_v33 = vstv %s4446_s0 }
  0x2f   :  { %v2407_v36 = vpack.c.bf16 %v84_v31, %v83_v30  ;;  %v1797_v39 = vmul.f32 %v82_v21, %v3026_v38  ;;  %v86_v41 = vld [vmem:[#allocation11 + $0x48] sm:$0xff]  ;;  %v3029_v42 = vld [vmem:[#allocation8 + $0x30] sm:$0xff]  ;;  %v104_v44 = vld [vmem:[#allocation11 + $0xd8] sm:$0xff]  ;;  %4581 = vst [vmem:[#allocation17_spill] sm:$0xff] %v3091_v33  ;;  %p2934_p6 = pnand %p2933_p5, %p2927_p2 }
  0x30   :  { %v103_v43 = vld [vmem:[#allocation11 + $0xd0] sm:$0xff]  ;;  %v1798_v45 = vmul.f32 %v83_v30, %v3029_v42  ;;  %v2411_v46 = vpack.c.bf16 %v86_v41, %v85_v40  ;;  %v3032_v48 = vld [vmem:[#allocation8 + $0x38] sm:$0xff]  ;;  %v3035_v52 = vld [vmem:[#allocation8 + $0x40] sm:$0xff]  ;;  %v4451_v30 = vlaneseq }
  0x31   :  { %1828 = vadd.xlane.f32.xlu0 %v1794_v25  ;;  %v2413_v47 = vpack.c.bf16 %v104_v44, %v103_v43  ;;  %v1799_v49 = vmul.f32 %v84_v31, %v3032_v48  ;;  %v87_v50 = vld [vmem:[#allocation11 + $0x50] sm:$0xff]  ;;  %v88_v51 = vld [vmem:[#allocation11 + $0x58] sm:$0xff]  ;;  %v105_v53 = vld [vmem:[#allocation11 + $0xe0] sm:$0xff]  ;;  %v1800_v55 = vmul.f32 %v85_v40, %v3035_v52 }
  0x32   :  { %2400 = vmatpush3.bf16.xpose.msra.mxu0 %v2399_v13  ;;  %2434 = vmatpush3.bf16.xpose.msra.mxu1 %v2399_v13  ;;  %v106_v54 = vld [vmem:[#allocation11 + $0xe8] sm:$0xff]  ;;  %v2415_v56 = vpack.c.bf16 %v88_v51, %v87_v50  ;;  %v89_v60 = vld [vmem:[#allocation11 + $0x60] sm:$0xff]  ;;  %v3041_v62 = vld [vmem:[#allocation8 + $0x50] sm:$0xff]  ;;  %vm3082_vm0 = vcmp.lt.s32.totalorder %v4451_v30, 256 }
  0x33   :  { %2402 = vmatprep.subr.bf16.mxu0 %v2401_v14  ;;  %2427 = vmatprep.subr.bf16.mxu1 %v2401_v14  ;;  %v2417_v57 = vpack.c.bf16 %v106_v54, %v105_v53  ;;  %v3038_v58 = vld [vmem:[#allocation8 + $0x48] sm:$0xff]  ;;  %v107_v63 = vld [vmem:[#allocation11 + $0xf0] sm:$0xff]  ;;  %v108_v0 = vld [vmem:[#allocation11 + $0xf8] sm:$0xff]  ;;  %v1802_v1 = vmul.f32 %v87_v50, %v3041_v62 }
  0x34   :  { %v1801_v59 = vmul.f32 %v86_v41, %v3038_v58  ;;  %v90_v61 = vld [vmem:[#allocation11 + $0x68] sm:$0xff]  ;;  %v2421_v3 = vpack.c.bf16 %v108_v0, %v107_v63  ;;  %v3044_v4 = vld [vmem:[#allocation8 + $0x58] sm:$0xff]  ;;  %v91_v6 = vld [vmem:[#allocation11 + $0x70] sm:$0xff] }
  0x35   :  { %1830 = vadd.xlane.f32.xlu0 %v1795_v29  ;;  %v2419_v2 = vpack.c.bf16 %v90_v61, %v89_v60  ;;  %v1803_v5 = vmul.f32 %v88_v51, %v3044_v4  ;;  %v92_v7 = vld [vmem:[#allocation11 + $0x78] sm:$0xff]  ;;  %v3047_v8 = vld [vmem:[#allocation8 + $0x60] sm:$0xff]  ;;  %v3050_v11 = vld [vmem:[#allocation8 + $0x68] sm:$0xff] }
  0x36   :  { %v1804_v9 = vmul.f32 %v89_v60, %v3047_v8  ;;  %v2423_v10 = vpack.c.bf16 %v92_v7, %v91_v6  ;;  %v1805_v12 = vmul.f32 %v90_v61, %v3050_v11  ;;  %v62_v13 = vld [vmem:[#allocation8 + $0x88] sm:$0xff]  ;;  %v63_v14 = vld [vmem:[#allocation8 + $0x90] sm:$0xff]  ;;  %v64_v18 = vld [vmem:[#allocation8 + $0x98] sm:$0xff] }
  0x37   :  { %v68_v19 = vld [vmem:[#allocation8 + $0xb8] sm:$0xff]  ;;  %v69_v20 = vld [vmem:[#allocation8 + $0xc0] sm:$0xff]  ;;  %v70_v21 = vld [vmem:[#allocation8 + $0xc8] sm:$0xff] }
  0x38   :  { %v72_v23 = vld [vmem:[#allocation8 + $0xd8] sm:$0xff]  ;;  %v73_v24 = vld [vmem:[#allocation8 + $0xe0] sm:$0xff]  ;;  %v74_v25 = vld [vmem:[#allocation8 + $0xe8] sm:$0xff] }
  0x39   :  { %1832 = vadd.xlane.f32.xlu0 %v1796_v35  ;;  %v76_v29 = vld [vmem:[#allocation8 + $0xf8] sm:$0xff] }
  0x3a   :  { %2404 = vmatpush3.bf16.xpose.msra.mxu0 %v2403_v26  ;;  %2435 = vmatpush3.bf16.xpose.msra.mxu1 %v2403_v26  ;;  %v59_v26 = vld [vmem:[#allocation8 + $0x70] sm:$0xff] }
  0x3b   :  { %2406 = vmatprep.subr.bf16.mxu0 %v2405_v27  ;;  %2428 = vmatprep.subr.bf16.mxu1 %v2405_v27  ;;  %v75_v27 = vld [vmem:[#allocation8 + $0xf0] sm:$0xff] }
  0x3d   :  { %1834 = vadd.xlane.f32.xlu0 %v1797_v39 }
  0x41   :  { %1836 = vadd.xlane.f32.xlu0 %v1798_v45 }
  0x42   :  { %2408 = vmatpush3.bf16.xpose.msra.mxu0 %v2407_v36  ;;  %2436 = vmatpush3.bf16.xpose.msra.mxu1 %v2407_v36 }
  0x43   :  { %2410 = vmatprep.subr.bf16.mxu0 %v2409_v37  ;;  %2429 = vmatprep.subr.bf16.mxu1 %v2409_v37 }
  0x45   :  { %1838 = vadd.xlane.f32.xlu0 %v1799_v49 }
  0x49   :  { %1840 = vadd.xlane.f32.xlu0 %v1800_v55 }
  0x4a   :  { %2412 = vmatpush3.bf16.xpose.msra.mxu0 %v2411_v46  ;;  %2437 = vmatpush3.bf16.xpose.msra.mxu1 %v2411_v46 }
  0x4b   :  { %2414 = vmatprep.subr.bf16.mxu0 %v2413_v47  ;;  %2430 = vmatprep.subr.bf16.mxu1 %v2413_v47 }
  0x4d   :  { %1842 = vadd.xlane.f32.xlu0 %v1801_v59 }
  0x51   :  { %1844 = vadd.xlane.f32.xlu0 %v1802_v1 }
  0x52   :  { %2416 = vmatpush3.bf16.xpose.msra.mxu0 %v2415_v56  ;;  %2438 = vmatpush3.bf16.xpose.msra.mxu1 %v2415_v56 }
  0x53   :  { %2418 = vmatprep.subr.bf16.mxu0 %v2417_v57  ;;  %2431 = vmatprep.subr.bf16.mxu1 %v2417_v57 }
  0x55   :  { %1846 = vadd.xlane.f32.xlu0 %v1803_v5 }
  0x59   :  { %1848 = vadd.xlane.f32.xlu0 %v1804_v9 }
  0x5a   :  { %2420 = vmatpush3.bf16.xpose.msra.mxu0 %v2419_v2  ;;  %2439 = vmatpush3.bf16.xpose.msra.mxu1 %v2419_v2 }
  0x5b   :  { %2422 = vmatprep.subr.bf16.mxu0 %v2421_v3  ;;  %2432 = vmatprep.subr.bf16.mxu1 %v2421_v3 }
  0x5d   :  { %1850 = vadd.xlane.f32.xlu0 %v1805_v12 }
  0x62   :  { %2424 = vmatpush3.bf16.xpose.msra.mxu0 %v2423_v10  ;;  %2440 = vmatpush3.bf16.xpose.msra.mxu1 %v2423_v10 }
  0x69   :  { %2330 = vmatmul.mubr.f32.vlgmr.msra.gmra.mrb[0].mxu0 %v3007_v15  ;;  %2362 = vmatmul.mubr.f32.vlgmr.msra.gmra.mrb[0].mxu1 %v3010_v16  ;;  %v65_v15 = vld [vmem:[#allocation8 + $0xa0] sm:$0xff]  ;;  %v66_v16 = vld [vmem:[#allocation8 + $0xa8] sm:$0xff] }
  0x6a   :  { %2331 = vmatprep.mubr.f32.mxu0 %v3012_v17  ;;  %2363 = vmatprep.mubr.f32.mxu1 %v62_v13 }
  0x6d   :  { %2332 = vmatmul.mubr.f32.gmra.mrb[2].mxu0 %v3012_v17  ;;  %2364 = vmatmul.mubr.f32.gmra.mrb[2].mxu1 %v62_v13  ;;  %v67_v17 = vld [vmem:[#allocation8 + $0xb0] sm:$0xff] }
  0x6e   :  { %2333 = vmatprep.mubr.f32.mxu0 %v3016_v22  ;;  %2365 = vmatprep.mubr.f32.mxu1 %v63_v14 }
  0x71   :  { %2334 = vmatmul.mubr.f32.gmra.mrb[4].mxu0 %v3016_v22  ;;  %2366 = vmatmul.mubr.f32.gmra.mrb[4].mxu1 %v63_v14  ;;  %v71_v22 = vld [vmem:[#allocation8 + $0xd0] sm:$0xff] }
  0x72   :  { %2335 = vmatprep.mubr.f32.mxu0 %v3020_v28  ;;  %2367 = vmatprep.mubr.f32.mxu1 %v64_v18 }
  0x75   :  { %2336 = vmatmul.mubr.f32.gmra.mrb[6].mxu0 %v3020_v28  ;;  %2368 = vmatmul.mubr.f32.gmra.mrb[6].mxu1 %v64_v18  ;;  %v60_v28 = vld [vmem:[#allocation8 + $0x78] sm:$0xff] }
  0x76   :  { %2337 = vmatprep.mubr.f32.mxu0 %v3023_v32  ;;  %2369 = vmatprep.mubr.f32.mxu1 %v65_v15 }
  0x79   :  { %2338 = vmatmul.mubr.f32.gmra.mrb[8].mxu0 %v3023_v32  ;;  %2370 = vmatmul.mubr.f32.gmra.mrb[8].mxu1 %v65_v15  ;;  %v2958_v32 = vmov -inf  }
  0x7a   :  { %2339 = vmatprep.mubr.f32.mxu0 %v3026_v38  ;;  %2371 = vmatprep.mubr.f32.mxu1 %v66_v16  ;;  %516 = vst.msk [vmem:[#allocation4] sm:$0x3] %vm3082_vm0, %v2958_v32 }
  0x7b   :  { %443 = vst.msk [vmem:[#allocation2] sm:$0xff] %vm442_vm1, %v2958_v32  ;;  %444 = vst.msk [vmem:[#allocation2 + $0x8] sm:$0xff] %vm442_vm1, %v2958_v32 }
  0x7c   :  { %445 = vst.msk [vmem:[#allocation2 + $0x10] sm:$0xff] %vm442_vm1, %v2958_v32  ;;  %446 = vst.msk [vmem:[#allocation2 + $0x18] sm:$0xff] %vm442_vm1, %v2958_v32 }
  0x7d   :  { %2340 = vmatmul.mubr.f32.gmra.mrb[10].mxu0 %v3026_v38  ;;  %2372 = vmatmul.mubr.f32.gmra.mrb[10].mxu1 %v66_v16  ;;  %447 = vst.msk [vmem:[#allocation2 + $0x20] sm:$0xff] %vm442_vm1, %v2958_v32  ;;  %448 = vst.msk [vmem:[#allocation2 + $0x28] sm:$0xff] %vm442_vm1, %v2958_v32 }
  0x7e   :  { %2341 = vmatprep.mubr.f32.mxu0 %v3029_v42  ;;  %2373 = vmatprep.mubr.f32.mxu1 %v67_v17  ;;  %449 = vst.msk [vmem:[#allocation2 + $0x30] sm:$0xff] %vm442_vm1, %v2958_v32  ;;  %450 = vst.msk [vmem:[#allocation2 + $0x38] sm:$0xff] %vm442_vm1, %v2958_v32 }
  0x7f   :  { %451 = vst.msk [vmem:[#allocation2 + $0x40] sm:$0xff] %vm442_vm1, %v2958_v32  ;;  %452 = vst.msk [vmem:[#allocation2 + $0x48] sm:$0xff] %vm442_vm1, %v2958_v32 }
  0x80   :  { %453 = vst.msk [vmem:[#allocation2 + $0x50] sm:$0xff] %vm442_vm1, %v2958_v32  ;;  %454 = vst.msk [vmem:[#allocation2 + $0x58] sm:$0xff] %vm442_vm1, %v2958_v32 }
  0x81   :  { %2342 = vmatmul.mubr.f32.gmra.mrb[12].mxu0 %v3029_v42  ;;  %2374 = vmatmul.mubr.f32.gmra.mrb[12].mxu1 %v67_v17  ;;  %455 = vst.msk [vmem:[#allocation2 + $0x60] sm:$0xff] %vm442_vm1, %v2958_v32  ;;  %456 = vst.msk [vmem:[#allocation2 + $0x68] sm:$0xff] %vm442_vm1, %v2958_v32 }
  0x82   :  { %2343 = vmatprep.mubr.f32.mxu0 %v3032_v48  ;;  %2375 = vmatprep.mubr.f32.mxu1 %v68_v19  ;;  %457 = vst.msk [vmem:[#allocation2 + $0x70] sm:$0xff] %vm442_vm1, %v2958_v32  ;;  %458 = vst.msk [vmem:[#allocation2 + $0x78] sm:$0xff] %vm442_vm1, %v2958_v32 }
  0x83   :  { %459 = vst.msk [vmem:[#allocation2 + $0x80] sm:$0xff] %vm442_vm1, %v2958_v32  ;;  %460 = vst.msk [vmem:[#allocation2 + $0x88] sm:$0xff] %vm442_vm1, %v2958_v32 }
  0x84   :  { %461 = vst.msk [vmem:[#allocation2 + $0x90] sm:$0xff] %vm442_vm1, %v2958_v32  ;;  %462 = vst.msk [vmem:[#allocation2 + $0x98] sm:$0xff] %vm442_vm1, %v2958_v32 }
  0x85   :  { %2344 = vmatmul.mubr.f32.gmra.mrb[14].mxu0 %v3032_v48  ;;  %2376 = vmatmul.mubr.f32.gmra.mrb[14].mxu1 %v68_v19  ;;  %463 = vst.msk [vmem:[#allocation2 + $0xa0] sm:$0xff] %vm442_vm1, %v2958_v32  ;;  %464 = vst.msk [vmem:[#allocation2 + $0xa8] sm:$0xff] %vm442_vm1, %v2958_v32 }
  0x86   :  { %2345 = vmatprep.mubr.f32.mxu0 %v3035_v52  ;;  %2377 = vmatprep.mubr.f32.mxu1 %v69_v20  ;;  %465 = vst.msk [vmem:[#allocation2 + $0xb0] sm:$0xff] %vm442_vm1, %v2958_v32  ;;  %466 = vst.msk [vmem:[#allocation2 + $0xb8] sm:$0xff] %vm442_vm1, %v2958_v32 }
  0x87   :  { %467 = vst.msk [vmem:[#allocation2 + $0xc0] sm:$0xff] %vm442_vm1, %v2958_v32  ;;  %468 = vst.msk [vmem:[#allocation2 + $0xc8] sm:$0xff] %vm442_vm1, %v2958_v32 }
  0x88   :  { %469 = vst.msk [vmem:[#allocation2 + $0xd0] sm:$0xff] %vm442_vm1, %v2958_v32  ;;  %470 = vst.msk [vmem:[#allocation2 + $0xd8] sm:$0xff] %vm442_vm1, %v2958_v32 }
  0x89   :  { %2346 = vmatmul.mubr.f32.gmra.mrb[16].mxu0 %v3035_v52  ;;  %2378 = vmatmul.mubr.f32.gmra.mrb[16].mxu1 %v69_v20  ;;  %471 = vst.msk [vmem:[#allocation2 + $0xe0] sm:$0xff] %vm442_vm1, %v2958_v32  ;;  %472 = vst.msk [vmem:[#allocation2 + $0xe8] sm:$0xff] %vm442_vm1, %v2958_v32 }
  0x8a   :  { %2347 = vmatprep.mubr.f32.mxu0 %v3038_v58  ;;  %2379 = vmatprep.mubr.f32.mxu1 %v70_v21  ;;  %473 = vst.msk [vmem:[#allocation2 + $0xf0] sm:$0xff] %vm442_vm1, %v2958_v32  ;;  %474 = vst.msk [vmem:[#allocation2 + $0xf8] sm:$0xff] %vm442_vm1, %v2958_v32 }
  0x8d   :  { %2348 = vmatmul.mubr.f32.gmra.mrb[18].mxu0 %v3038_v58  ;;  %2380 = vmatmul.mubr.f32.gmra.mrb[18].mxu1 %v70_v21  ;;  %v4450_v58 = vmov 0.0  }
  0x8e   :  { %2349 = vmatprep.mubr.f32.mxu0 %v3041_v62  ;;  %2381 = vmatprep.mubr.f32.mxu1 %v71_v22  ;;  %475 = vst.msk [vmem:[#allocation3] sm:$0xff] %vm442_vm1, %v4450_v58  ;;  %476 = vst.msk [vmem:[#allocation3 + $0x8] sm:$0xff] %vm442_vm1, %v4450_v58 }
  0x8f   :  { %477 = vst.msk [vmem:[#allocation3 + $0x10] sm:$0xff] %vm442_vm1, %v4450_v58  ;;  %478 = vst.msk [vmem:[#allocation3 + $0x18] sm:$0xff] %vm442_vm1, %v4450_v58 }
  0x90   :  { %479 = vst.msk [vmem:[#allocation3 + $0x20] sm:$0xff] %vm442_vm1, %v4450_v58  ;;  %480 = vst.msk [vmem:[#allocation3 + $0x28] sm:$0xff] %vm442_vm1, %v4450_v58 }
  0x91   :  { %2350 = vmatmul.mubr.f32.gmra.mrb[20].mxu0 %v3041_v62  ;;  %2382 = vmatmul.mubr.f32.gmra.mrb[20].mxu1 %v71_v22  ;;  %481 = vst.msk [vmem:[#allocation3 + $0x30] sm:$0xff] %vm442_vm1, %v4450_v58  ;;  %482 = vst.msk [vmem:[#allocation3 + $0x38] sm:$0xff] %vm442_vm1, %v4450_v58 }
  0x92   :  { %2351 = vmatprep.mubr.f32.mxu0 %v3044_v4  ;;  %2383 = vmatprep.mubr.f32.mxu1 %v72_v23  ;;  %483 = vst.msk [vmem:[#allocation3 + $0x40] sm:$0xff] %vm442_vm1, %v4450_v58  ;;  %484 = vst.msk [vmem:[#allocation3 + $0x48] sm:$0xff] %vm442_vm1, %v4450_v58 }
  0x93   :  { %485 = vst.msk [vmem:[#allocation3 + $0x50] sm:$0xff] %vm442_vm1, %v4450_v58  ;;  %486 = vst.msk [vmem:[#allocation3 + $0x58] sm:$0xff] %vm442_vm1, %v4450_v58 }
  0x94   :  { %487 = vst.msk [vmem:[#allocation3 + $0x60] sm:$0xff] %vm442_vm1, %v4450_v58  ;;  %488 = vst.msk [vmem:[#allocation3 + $0x68] sm:$0xff] %vm442_vm1, %v4450_v58 }
  0x95   :  { %2352 = vmatmul.mubr.f32.gmra.mrb[22].mxu0 %v3044_v4  ;;  %2384 = vmatmul.mubr.f32.gmra.mrb[22].mxu1 %v72_v23  ;;  %489 = vst.msk [vmem:[#allocation3 + $0x70] sm:$0xff] %vm442_vm1, %v4450_v58  ;;  %490 = vst.msk [vmem:[#allocation3 + $0x78] sm:$0xff] %vm442_vm1, %v4450_v58 }
  0x96   :  { %2353 = vmatprep.mubr.f32.mxu0 %v3047_v8  ;;  %2385 = vmatprep.mubr.f32.mxu1 %v73_v24  ;;  %491 = vst.msk [vmem:[#allocation3 + $0x80] sm:$0xff] %vm442_vm1, %v4450_v58  ;;  %492 = vst.msk [vmem:[#allocation3 + $0x88] sm:$0xff] %vm442_vm1, %v4450_v58 }
  0x97   :  { %493 = vst.msk [vmem:[#allocation3 + $0x90] sm:$0xff] %vm442_vm1, %v4450_v58  ;;  %494 = vst.msk [vmem:[#allocation3 + $0x98] sm:$0xff] %vm442_vm1, %v4450_v58 }
  0x98   :  { %495 = vst.msk [vmem:[#allocation3 + $0xa0] sm:$0xff] %vm442_vm1, %v4450_v58  ;;  %496 = vst.msk [vmem:[#allocation3 + $0xa8] sm:$0xff] %vm442_vm1, %v4450_v58 }
  0x99   :  { %2354 = vmatmul.mubr.f32.gmra.mrb[24].mxu0 %v3047_v8  ;;  %2386 = vmatmul.mubr.f32.gmra.mrb[24].mxu1 %v73_v24  ;;  %497 = vst.msk [vmem:[#allocation3 + $0xb0] sm:$0xff] %vm442_vm1, %v4450_v58  ;;  %498 = vst.msk [vmem:[#allocation3 + $0xb8] sm:$0xff] %vm442_vm1, %v4450_v58 }
  0x9a   :  { %2355 = vmatprep.mubr.f32.mxu0 %v3050_v11  ;;  %2387 = vmatprep.mubr.f32.mxu1 %v74_v25  ;;  %499 = vst.msk [vmem:[#allocation3 + $0xc0] sm:$0xff] %vm442_vm1, %v4450_v58  ;;  %500 = vst.msk [vmem:[#allocation3 + $0xc8] sm:$0xff] %vm442_vm1, %v4450_v58 }
  0x9b   :  { %501 = vst.msk [vmem:[#allocation3 + $0xd0] sm:$0xff] %vm442_vm1, %v4450_v58  ;;  %502 = vst.msk [vmem:[#allocation3 + $0xd8] sm:$0xff] %vm442_vm1, %v4450_v58 }
  0x9c   :  { %503 = vst.msk [vmem:[#allocation3 + $0xe0] sm:$0xff] %vm442_vm1, %v4450_v58  ;;  %504 = vst.msk [vmem:[#allocation3 + $0xe8] sm:$0xff] %vm442_vm1, %v4450_v58 }
  0x9d   :  { %2356 = vmatmul.mubr.f32.gmra.mrb[26].mxu0 %v3050_v11  ;;  %2388 = vmatmul.mubr.f32.gmra.mrb[26].mxu1 %v74_v25  ;;  %505 = vst.msk [vmem:[#allocation3 + $0xf0] sm:$0xff] %vm442_vm1, %v4450_v58  ;;  %506 = vst.msk [vmem:[#allocation3 + $0xf8] sm:$0xff] %vm442_vm1, %v4450_v58 }
  0x9e   :  { %2357 = vmatprep.mubr.f32.mxu0 %v59_v26  ;;  %2389 = vmatprep.mubr.f32.mxu1 %v75_v27  ;;  %518 = vst.msk [vmem:[#allocation5] sm:$0x3] %vm3082_vm0, %v4450_v58 }
  0xa1   :  { %2358 = vmatmul.mubr.f32.gmra.mrb[28].mxu0 %v59_v26  ;;  %2390 = vmatmul.mubr.f32.gmra.mrb[28].mxu1 %v75_v27 }
  0xa2   :  { %2359 = vmatprep.mubr.f32.mxu0 %v60_v28  ;;  %2391 = vmatprep.mubr.f32.mxu1 %v76_v29 }
  0xa5   :  { %2360 = vmatmul.mubr.f32.gmra.mrb[30].mxu0 %v60_v28  ;;  %2392 = vmatmul.mubr.f32.gmra.mrb[30].mxu1 %v76_v29 }
 0x13c   :  { %v175_v34 = vpop.f32.mrb[0].mxu0  ;;  %v271_v35 = vpop.f32.mrb[0].mxu1 }
 0x13d   :  { %v3094_v36 = vmul.f32 %v3091_v33, %v175_v34  ;;  %v177_v37 = vpop.f32.mrb[1].mxu0  ;;  %v3097_v38 = vmul.f32 %v3091_v33, %v271_v35  ;;  %v273_v39 = vpop.f32.mrb[1].mxu1 }
 0x13e   :  { %v3100_v40 = vmul.f32 %v3091_v33, %v177_v37  ;;  %v3103_v41 = vmul.f32 %v3091_v33, %v273_v39 }
 0x13f   :  { %4582 = vst [vmem:[#allocation18_spill] sm:$0xff] %v3097_v38 }
 0x140   :  { %v277_v42 = vpop.f32.mrb[2].mxu1  ;;  %v551_v43 = vmax.f32 %v3094_v36, %v3100_v40  ;;  %v181_v44 = vpop.f32.mrb[2].mxu0  ;;  %v599_v48 = vmax.f32 %v3097_v38, %v3103_v41 }
 0x141   :  { %v3108_v45 = vmul.f32 %v3091_v33, %v277_v42  ;;  %v279_v46 = vpop.f32.mrb[3].mxu1  ;;  %v183_v47 = vpop.f32.mrb[3].mxu0  ;;  %v3116_v50 = vmul.f32 %v3091_v33, %v181_v44 }
 0x142   :  { %v3113_v49 = vmul.f32 %v3091_v33, %v279_v46  ;;  %552 = vmax.xlane.f32.xlu0 %v551_v43  ;;  %v3119_v51 = vmul.f32 %v3091_v33, %v183_v47 }
 0x143   :  { %4583 = vst [vmem:[#allocation19_spill] sm:$0xff] %v3108_v45 }
 0x144   :  { %v187_v52 = vpop.f32.mrb[4].mxu0  ;;  %v602_v53 = vmax.f32 %v3108_v45, %v3113_v49  ;;  %v283_v54 = vpop.f32.mrb[4].mxu1  ;;  %v554_v60 = vmax.f32 %v3116_v50, %v3119_v51 }
 0x145   :  { %v3156_v55 = vmul.f32 %v3091_v33, %v187_v52  ;;  %v189_v56 = vpop.f32.mrb[5].mxu0  ;;  %v285_v57 = vpop.f32.mrb[5].mxu1  ;;  %v3234_v62 = vmul.f32 %v3091_v33, %v283_v54 }
 0x146   :  { %v3226_v59 = vmul.f32 %v3091_v33, %v189_v56  ;;  %603 = vmax.xlane.f32.xlu1 %v602_v53  ;;  %600 = vmax.xlane.f32.xlu0 %v599_v48  ;;  %v3239_v0 = vmul.f32 %v3091_v33, %v285_v57 }
 0x147   :  { %4584 = vst [vmem:[#allocation20_spill] sm:$0xff] %v3234_v62 }
 0x148   :  { %v193_v61 = vpop.f32.mrb[6].mxu0  ;;  %v557_v63 = vmax.f32 %v3156_v55, %v3226_v59  ;;  %v289_v1 = vpop.f32.mrb[6].mxu1  ;;  %v605_v6 = vmax.f32 %v3234_v62, %v3239_v0 }
 0x149   :  { %v3242_v2 = vmul.f32 %v3091_v33, %v193_v61  ;;  %v195_v3 = vpop.f32.mrb[7].mxu0  ;;  %v291_v4 = vpop.f32.mrb[7].mxu1  ;;  %v3250_v8 = vmul.f32 %v3091_v33, %v289_v1 }
 0x14a   :  { %v3245_v5 = vmul.f32 %v3091_v33, %v195_v3  ;;  %555 = vmax.xlane.f32.xlu0 %v554_v60  ;;  %558 = vmax.xlane.f32.xlu1 %v557_v63  ;;  %v3253_v9 = vmul.f32 %v3091_v33, %v291_v4 }
 0x14b   :  { %4585 = vst [vmem:[#allocation21_spill] sm:$0xff] %v3250_v8 }
 0x14c   :  { %v199_v7 = vpop.f32.mrb[8].mxu0  ;;  %v560_v10 = vmax.f32 %v3242_v2, %v3245_v5  ;;  %v295_v11 = vpop.f32.mrb[8].mxu1  ;;  %v608_v15 = vmax.f32 %v3250_v8, %v3253_v9 }
 0x14d   :  { %v201_v12 = vpop.f32.mrb[9].mxu0  ;;  %v297_v13 = vpop.f32.mrb[9].mxu1  ;;  %v3258_v14 = vmul.f32 %v3091_v33, %v199_v7  ;;  %v3266_v17 = vmul.f32 %v3091_v33, %v295_v11 }
 0x14e   :  { %v3261_v18 = vmul.f32 %v3091_v33, %v201_v12  ;;  %561 = vmax.xlane.f32.xlu1 %v560_v10  ;;  %606 = vmax.xlane.f32.xlu0 %v605_v6  ;;  %v3269_v19 = vmul.f32 %v3091_v33, %v297_v13  ;;  %v1401_v13 = vmax.f32 %v3108_v45, %v3097_v38 }
 0x14f   :  { %4586 = vst [vmem:[#allocation22_spill] sm:$0xff] %v3266_v17 }
 0x150   :  { %v205_v16 = vpop.f32.mrb[10].mxu0  ;;  %v301_v20 = vpop.f32.mrb[10].mxu1  ;;  %v563_v21 = vmax.f32 %v3258_v14, %v3261_v18  ;;  %v611_v26 = vmax.f32 %v3266_v17, %v3269_v19 }
 0x151   :  { %v3274_v22 = vmul.f32 %v3091_v33, %v205_v16  ;;  %v207_v23 = vpop.f32.mrb[11].mxu0  ;;  %v303_v24 = vpop.f32.mrb[11].mxu1  ;;  %v3282_v28 = vmul.f32 %v3091_v33, %v301_v20 }
 0x152   :  { %v3277_v25 = vmul.f32 %v3091_v33, %v207_v23  ;;  %609 = vmax.xlane.f32.xlu1 %v608_v15  ;;  %564 = vmax.xlane.f32.xlu0 %v563_v21  ;;  %v3285_v29 = vmul.f32 %v3091_v33, %v303_v24  ;;  %v1438_v24 = vmax.f32 %v3113_v49, %v3103_v41 }
 0x153   :  { %4587 = vst [vmem:[#allocation23_spill] sm:$0xff] %v3282_v28 }
 0x154   :  { %v211_v27 = vpop.f32.mrb[12].mxu0  ;;  %v566_v32 = vmax.f32 %v3274_v22, %v3277_v25  ;;  %v307_v34 = vpop.f32.mrb[12].mxu1  ;;  %v614_v43 = vmax.f32 %v3282_v28, %v3285_v29 }
 0x155   :  { %v213_v35 = vpop.f32.mrb[13].mxu0  ;;  %v309_v37 = vpop.f32.mrb[13].mxu1  ;;  %v3290_v39 = vmul.f32 %v3091_v33, %v211_v27  ;;  %v3298_v46 = vmul.f32 %v3091_v33, %v307_v34 }
 0x156   :  { %v3293_v42 = vmul.f32 %v3091_v33, %v213_v35  ;;  %567 = vmax.xlane.f32.xlu1 %v566_v32  ;;  %612 = vmax.xlane.f32.xlu0 %v611_v26  ;;  %v3301_v47 = vmul.f32 %v3091_v33, %v309_v37  ;;  %v1403_v26 = vmax.f32 %v1401_v13, %v3234_v62 }
 0x157   :  { %4588 = vst [vmem:[#allocation24_spill] sm:$0xff] %v3298_v46 }
 0x158   :  { %v217_v44 = vpop.f32.mrb[14].mxu0  ;;  %4589 = vst [vmem:[#allocation25_spill] sm:$0xff] %v3301_v47  ;;  %v313_v48 = vpop.f32.mrb[14].mxu1  ;;  %v569_v52 = vmax.f32 %v3290_v39, %v3293_v42  ;;  %v617_v60 = vmax.f32 %v3298_v46, %v3301_v47 }
 0x159   :  { %v3306_v53 = vmul.f32 %v3091_v33, %v217_v44  ;;  %v219_v54 = vpop.f32.mrb[15].mxu0  ;;  %v315_v56 = vpop.f32.mrb[15].mxu1  ;;  %v3314_v63 = vmul.f32 %v3091_v33, %v313_v48  ;;  %v1405_v44 = vmax.f32 %v1403_v26, %v3250_v8  ;;  %v1387_v48 = vmax.f32 %v3094_v36, %v3156_v55 }
 0x15a   :  { %v3309_v57 = vmul.f32 %v3091_v33, %v219_v54  ;;  %615 = vmax.xlane.f32.xlu1 %v614_v43  ;;  %570 = vmax.xlane.f32.xlu0 %v569_v52  ;;  %v3317_v1 = vmul.f32 %v3091_v33, %v315_v56  ;;  %v1440_v43 = vmax.f32 %v1438_v24, %v3239_v0 }
 0x15b   :  { %4590 = vst [vmem:[#allocation26_spill] sm:$0xff] %v3306_v53  ;;  %4592 = vst [vmem:[#allocation28_spill] sm:$0xff] %v3314_v63  ;;  %v1425_v24 = vmax.f32 %v3119_v51, %v3245_v5  ;;  %v1389_v26 = vmax.f32 %v1387_v48, %v3258_v14 }
 0x15c   :  { %4591 = vst [vmem:[#allocation27_spill] sm:$0xff] %v3309_v57  ;;  %v223_v61 = vpop.f32.mrb[16].mxu0  ;;  %4593 = vst [vmem:[#allocation29_spill] sm:$0xff] %v3317_v1  ;;  %v572_v3 = vmax.f32 %v3306_v53, %v3309_v57  ;;  %v319_v4 = vpop.f32.mrb[16].mxu1  ;;  %v620_v12 = vmax.f32 %v3314_v63, %v3317_v1 }
 0x15d   :  { %v225_v6 = vpop.f32.mrb[17].mxu0  ;;  %v321_v7 = vpop.f32.mrb[17].mxu1  ;;  %v3322_v10 = vmul.f32 %v3091_v33, %v223_v61  ;;  %v3332_v16 = vmul.f32 %v3091_v33, %v319_v4  ;;  %v1388_v4 = vmax.f32 %v3116_v50, %v3242_v2 }
 0x15e   :  { %v3325_v11 = vmul.f32 %v3091_v33, %v225_v6  ;;  %573 = vmax.xlane.f32.xlu1 %v572_v3  ;;  %618 = vmax.xlane.f32.xlu0 %v617_v60  ;;  %v3335_v20 = vmul.f32 %v3091_v33, %v321_v7  ;;  %v1424_v3 = vmax.f32 %v3100_v40, %v3226_v59 }
 0x15f   :  { %4594 = vst [vmem:[#allocation30_spill] sm:$0xff] %v3322_v10  ;;  %4596 = vst [vmem:[#allocation32_spill] sm:$0xff] %v3332_v16  ;;  %v1442_v6 = vmax.f32 %v1440_v43, %v3253_v9  ;;  %v1402_v7 = vmax.f32 %v3266_v17, %v1405_v44  ;;  %v1390_v58 = vmax.f32 %v1388_v4, %v3274_v22 }
 0x160   :  { %4595 = vst [vmem:[#allocation31_spill] sm:$0xff] %v3325_v11  ;;  %v229_v15 = vpop.f32.mrb[18].mxu0  ;;  %4597 = vst [vmem:[#allocation33_spill] sm:$0xff] %v3335_v20  ;;  %v325_v21 = vpop.f32.mrb[18].mxu1  ;;  %v575_v23 = vmax.f32 %v3322_v10, %v3325_v11  ;;  %v623_v37 = vmax.f32 %v3332_v16, %v3335_v20  ;;  %v1426_v43 = vmax.f32 %v1424_v3, %v3261_v18 }
 0x161   :  { %v3343_v27 = vmul.f32 %v3091_v33, %v229_v15  ;;  %v231_v32 = vpop.f32.mrb[19].mxu0  ;;  %v327_v34 = vpop.f32.mrb[19].mxu1  ;;  %v3355_v54 = vmul.f32 %v3091_v33, %v325_v21  ;;  %v1391_v4 = vmax.f32 %v1389_v26, %v3290_v39 }
 0x162   :  { %v3346_v35 = vmul.f32 %v3091_v33, %v231_v32  ;;  %621 = vmax.xlane.f32.xlu1 %v620_v12  ;;  %576 = vmax.xlane.f32.xlu0 %v575_v23  ;;  %v3358_v56 = vmul.f32 %v3091_v33, %v327_v34  ;;  %v1439_v32 = vmax.f32 %v3269_v19, %v1442_v6 }
 0x163   :  { %4598 = vst [vmem:[#allocation34_spill] sm:$0xff] %v3343_v27  ;;  %4600 = vst [vmem:[#allocation36_spill] sm:$0xff] %v3355_v54  ;;  %v1404_v34 = vmax.f32 %v1402_v7, %v3282_v28 }
 0x164   :  { %4599 = vst [vmem:[#allocation35_spill] sm:$0xff] %v3346_v35  ;;  %v235_v52 = vpop.f32.mrb[20].mxu0  ;;  %4601 = vst [vmem:[#allocation37_spill] sm:$0xff] %v3358_v56  ;;  %v578_v60 = vmax.f32 %v3343_v27, %v3346_v35  ;;  %v331_v61 = vpop.f32.mrb[20].mxu1  ;;  %v626_v23 = vmax.f32 %v3355_v54, %v3358_v56  ;;  %v1441_v48 = vmax.f32 %v1439_v32, %v3285_v29 }
 0x165   :  { %v237_v12 = vpop.f32.mrb[21].mxu0  ;;  %v333_v13 = vpop.f32.mrb[21].mxu1  ;;  %v3369_v15 = vmul.f32 %v3091_v33, %v235_v52  ;;  %v3383_v52 = vmul.f32 %v3091_v33, %v331_v61  ;;  %v1406_v6 = vmax.f32 %v1404_v34, %v3298_v46  ;;  %v1427_v61 = vmax.f32 %v1425_v24, %v3277_v25 }
 0x166   :  { %v3372_v21 = vmul.f32 %v3091_v33, %v237_v12  ;;  %579 = vmax.xlane.f32.xlu1 %v578_v60  ;;  %624 = vmax.xlane.f32.xlu0 %v623_v37  ;;  %v3386_v60 = vmul.f32 %v3091_v33, %v333_v13  ;;  %v1428_v32 = vmax.f32 %v1426_v43, %v3293_v42 }
 0x167   :  { %4602 = vst [vmem:[#allocation38_spill] sm:$0xff] %v3369_v15  ;;  %4604 = vst [vmem:[#allocation40_spill] sm:$0xff] %v3383_v52  ;;  %v1443_v34 = vmax.f32 %v1441_v48, %v3301_v47  ;;  %v1392_v46 = vmax.f32 %v1390_v58, %v3306_v53  ;;  %v1429_v26 = vmax.f32 %v1427_v61, %v3309_v57 }
 0x168   :  { %4603 = vst [vmem:[#allocation39_spill] sm:$0xff] %v3372_v21  ;;  %v241_v44 = vpop.f32.mrb[22].mxu0  ;;  %4605 = vst [vmem:[#allocation41_spill] sm:$0xff] %v3386_v60  ;;  %v337_v12 = vpop.f32.mrb[22].mxu1  ;;  %v581_v37 = vmax.f32 %v3369_v15, %v3372_v21  ;;  %v629_v28 = vmax.f32 %v3383_v52, %v3386_v60  ;;  %v1393_v43 = vmax.f32 %v1391_v4, %v3322_v10 }
 0x169   :  { %v3394_v7 = vmul.f32 %v3091_v33, %v241_v44  ;;  %v243_v3 = vpop.f32.mrb[23].mxu0  ;;  %v339_v30 = vpop.f32.mrb[23].mxu1  ;;  %v1407_v44 = vmax.f32 %v3314_v63, %v1406_v6  ;;  %v3408_v24 = vmul.f32 %v3091_v33, %v337_v12  ;;  %v1444_v48 = vmax.f32 %v3317_v1, %v1443_v34 }
 0x16a   :  { %v3398_v13 = vmul.f32 %v3091_v33, %v243_v3  ;;  %627 = vmax.xlane.f32.xlu1 %v626_v23  ;;  %582 = vmax.xlane.f32.xlu0 %v581_v37  ;;  %v3411_v23 = vmul.f32 %v3091_v33, %v339_v30 }
 0x16b   :  { %4606 = vst [vmem:[#allocation42_spill] sm:$0xff] %v3394_v7  ;;  %4608 = vst [vmem:[#allocation44_spill] sm:$0xff] %v3408_v24  ;;  %v1409_v6 = vmax.f32 %v1407_v44, %v3332_v16  ;;  %v1446_v61 = vmax.f32 %v1444_v48, %v3335_v20 }
 0x16c   :  { %4607 = vst [vmem:[#allocation43_spill] sm:$0xff] %v3398_v13  ;;  %v247_v17 = vpop.f32.mrb[24].mxu0  ;;  %4609 = vst [vmem:[#allocation45_spill] sm:$0xff] %v3411_v23  ;;  %v584_v37 = vmax.f32 %v3394_v7, %v3398_v13  ;;  %v343_v3 = vpop.f32.mrb[24].mxu1  ;;  %v632_v8 = vmax.f32 %v3408_v24, %v3411_v23 }
 0x16d   :  { %v249_v58 = vpop.f32.mrb[25].mxu0  ;;  %v345_v63 = vpop.f32.mrb[25].mxu1  ;;  %v3420_v12 = vmul.f32 %v3091_v33, %v247_v17  ;;  %v1411_v4 = vmax.f32 %v1409_v6, %v3355_v54  ;;  %v3430_v34 = vmul.f32 %v3091_v33, %v343_v3  ;;  %v1430_v17 = vmax.f32 %v1428_v32, %v3325_v11 }
 0x16e   :  { %v3423_v30 = vmul.f32 %v3091_v33, %v249_v58  ;;  %585 = vmax.xlane.f32.xlu1 %v584_v37  ;;  %630 = vmax.xlane.f32.xlu0 %v629_v28  ;;  %v3433_v44 = vmul.f32 %v3091_v33, %v345_v63  ;;  %v1394_v58 = vmax.f32 %v1392_v46, %v3343_v27 }
 0x16f   :  { %4610 = vst [vmem:[#allocation46_spill] sm:$0xff] %v3420_v12  ;;  %4612 = vst [vmem:[#allocation48_spill] sm:$0xff] %v3430_v34  ;;  %v1431_v37 = vmax.f32 %v1429_v26, %v3346_v35  ;;  %v1448_v48 = vmax.f32 %v1446_v61, %v3358_v56  ;;  %v1413_v6 = vmax.f32 %v1411_v4, %v3383_v52 }
 0x170   :  { %4611 = vst [vmem:[#allocation47_spill] sm:$0xff] %v3423_v30  ;;  %4613 = vst [vmem:[#allocation49_spill] sm:$0xff] %v3433_v44  ;;  %v253_v16 = vpop.f32.mrb[26].mxu0  ;;  %v349_v62 = vpop.f32.mrb[26].mxu1  ;;  %v587_v28 = vmax.f32 %v3420_v12, %v3423_v30  ;;  %v635_v32 = vmax.f32 %v3430_v34, %v3433_v44  ;;  %v1395_v61 = vmax.f32 %v1393_v43, %v3369_v15 }
 0x171   :  { %v3443_v3 = vmul.f32 %v3091_v33, %v253_v16  ;;  %v255_v63 = vpop.f32.mrb[27].mxu0  ;;  %v351_v54 = vpop.f32.mrb[27].mxu1  ;;  %v3451_v26 = vmul.f32 %v3091_v33, %v349_v62  ;;  %v1432_v16 = vmax.f32 %v1430_v17, %v3372_v21  ;;  %v1450_v4 = vmax.f32 %v1448_v48, %v3386_v60 }
 0x172   :  { %v3448_v46 = vmul.f32 %v3091_v33, %v255_v63  ;;  %633 = vmax.xlane.f32.xlu1 %v632_v8  ;;  %v3454_v45 = vmul.f32 %v3091_v33, %v351_v54  ;;  %588 = vmax.xlane.f32.xlu0 %v587_v28  ;;  %v1396_v52 = vmax.f32 %v1394_v58, %v3394_v7 }
 0x173   :  { %4614 = vst [vmem:[#allocation50_spill] sm:$0xff] %v3443_v3  ;;  %4616 = vst [vmem:[#allocation52_spill] sm:$0xff] %v3451_v26  ;;  %v1433_v56 = vmax.f32 %v1431_v37, %v3398_v13  ;;  %v1415_v63 = vmax.f32 %v1413_v6, %v3408_v24  ;;  %v1397_v54 = vmax.f32 %v1395_v61, %v3420_v12 }
 0x174   :  { %4615 = vst [vmem:[#allocation51_spill] sm:$0xff] %v3448_v46  ;;  %4617 = vst [vmem:[#allocation53_spill] sm:$0xff] %v3454_v45  ;;  %v259_v8 = vpop.f32.mrb[28].mxu0  ;;  %v590_v62 = vmax.f32 %v3443_v3, %v3448_v46  ;;  %v355_v38 = vpop.f32.mrb[28].mxu1  ;;  %v1452_v28 = vmax.f32 %v1450_v4, %v3411_v23  ;;  %v1434_v58 = vmax.f32 %v1432_v16, %v3423_v30 }
 0x175   :  { %v3467_v43 = vmul.f32 %v3091_v33, %v259_v8  ;;  %v261_v17 = vpop.f32.mrb[29].mxu0  ;;  %v357_v48 = vpop.f32.mrb[29].mxu1  ;;  %v638_v6 = vmax.f32 %v3451_v26, %v3454_v45  ;;  %v1408_v24 = vmax.f32 %v3430_v34, %v1415_v63  ;;  %v2960_v8 = vmov 0  }
 0x176   :  { %v3471_v37 = vmul.f32 %v3091_v33, %v261_v17  ;;  %591 = vmax.xlane.f32.xlu1 %v590_v62  ;;  %636 = vmax.xlane.f32.xlu0 %v635_v32  ;;  %v1445_v61 = vmax.f32 %v3433_v44, %v1452_v28  ;;  %v3480_v17 = vmul.f32 %v3091_v33, %v355_v38 }
 0x177   :  { %4618 = vst [vmem:[#allocation54_spill] sm:$0xff] %v3467_v43  ;;  %v1399_v4 = vmax.f32 %v1397_v54, %v3467_v43  ;;  %2456 = vset.pattern.permute.xlu0 %v2960_v8  ;;  %2457 = vset.pattern.permute.xlu1 %v2960_v8  ;;  %v3483_v62 = vmul.f32 %v3091_v33, %v357_v48 }
 0x178   :  { %4619 = vst [vmem:[#allocation55_spill] sm:$0xff] %v3471_v37  ;;  %v1436_v23 = vmax.f32 %v1434_v58, %v3471_v37  ;;  %v265_v16 = vpop.f32.mrb[30].mxu0  ;;  %4620 = vst [vmem:[#allocation56_spill] sm:$0xff] %v3480_v17  ;;  %v361_v60 = vpop.f32.mrb[30].mxu1  ;;  %v593_v32 = vmax.f32 %v3467_v43, %v3471_v37  ;;  %v1398_v63 = vmax.f32 %v1396_v52, %v3443_v3 }
 0x179   :  { %4621 = vst [vmem:[#allocation57_spill] sm:$0xff] %v3483_v62  ;;  %v1435_v54 = vmax.f32 %v1433_v56, %v3448_v46  ;;  %v1410_v28 = vmax.f32 %v1408_v24, %v1399_v4  ;;  %v3490_v8 = vmul.f32 %v3091_v33, %v265_v16  ;;  %v267_v58 = vpop.f32.mrb[31].mxu0  ;;  %v363_v34 = vpop.f32.mrb[31].mxu1  ;;  %v641_v48 = vmax.f32 %v3480_v17, %v3483_v62 }
 0x17a   :  { %v1447_v44 = vmax.f32 %v1445_v61, %v1436_v23  ;;  %v3493_v38 = vmul.f32 %v3091_v33, %v267_v58  ;;  %639 = vmax.xlane.f32.xlu1 %v638_v6  ;;  %594 = vmax.xlane.f32.xlu0 %v593_v32  ;;  %v3500_v56 = vmul.f32 %v3091_v33, %v361_v60  ;;  %v3515_v58 = vpop.xlane.xlu0 %1826 }
 0x17b   :  { %4622 = vst [vmem:[#allocation58_spill] sm:$0xff] %v3490_v8  ;;  %v1412_v43 = vmax.f32 %v1410_v28, %v3451_v26  ;;  %v1400_v52 = vmax.f32 %v1398_v63, %v3490_v8  ;;  %v3507_v6 = vmul.f32 %v3091_v33, %v363_v34  ;;  %4626 = vst [vmem:[#allocation62_spill] sm:$0xff] %v3515_v58 }
 0x17c   :  { %4623 = vst [vmem:[#allocation59_spill] sm:$0xff] %v3493_v38  ;;  %4624 = vst [vmem:[#allocation60_spill] sm:$0xff] %v3500_v56  ;;  %v1449_v24 = vmax.f32 %v1447_v44, %v3454_v45  ;;  %v1437_v4 = vmax.f32 %v1435_v54, %v3493_v38  ;;  %v596_v23 = vmax.f32 %v3490_v8, %v3493_v38 }
 0x17d   :  { %4625 = vst [vmem:[#allocation61_spill] sm:$0xff] %v3507_v6  ;;  %v1414_v61 = vmax.f32 %v1412_v43, %v1400_v52  ;;  %v644_v32 = vmax.f32 %v3500_v56, %v3507_v6 }
 0x17e   :  { %v1451_v16 = vmax.f32 %v1449_v24, %v1437_v4  ;;  %597 = vmax.xlane.f32.xlu1 %v596_v23  ;;  %642 = vmax.xlane.f32.xlu0 %v641_v48  ;;  %v2961_v24 = vmov 1966171168   ;;  %v3517_v26 = vpop.xlane.xlu0 %1828 }
 0x17f   :  { %v1416_v60 = vmax.f32 %v1414_v61, %v3480_v17  ;;  %v1465_v4 = vunpack.c.l.s4 %v2961_v24  ;;  %4627 = vst [vmem:[#allocation63_spill] sm:$0xff] %v3517_v26  ;;  %v4628_v17 = vlaneseq }
 0x180   :  { %v1453_v63 = vmax.f32 %v1451_v16, %v3483_v62 }
 0x181   :  { %v1417_v44 = vmax.f32 %v3500_v56, %v1416_v60  ;;  %v1466_v16 = vunpack.c.0.s8 %v1465_v4  ;;  %v3520_v60 = vshrl.u32 %v4628_v17, 7 }
 0x182   :  { %v1454_v54 = vmax.f32 %v3507_v6, %v1453_v63  ;;  %645 = vmax.xlane.f32.xlu1 %v644_v32 }
 0x183   :  { %v1418_v28 = vrot.slane %v1417_v44, 4  ;;  %4629 = vst [vmem:[#allocation64_spill] sm:$0xff] %v3520_v60  ;;  %v3523_v58 = vsub.s32 %v1466_v16, %v3520_v60 }
 0x184   :  { %v1455_v34 = vrot.slane %v1454_v54, 4 }
 0x185   :  { %v1419_v43 = vmax.f32 %v1417_v44, %v1418_v28  ;;  %v3525_v44 = vpop.xlane.xlu0 %1830 }
 0x186   :  { %v1456_v52 = vmax.f32 %v1454_v54, %v1455_v34  ;;  %4630 = vst [vmem:[#allocation65_spill] sm:$0xff] %v3525_v44  ;;  %v3528_v34 = vld [vmem:[#allocation4] sm:$0x3] }
 0x187   :  { %v1420_v23 = vrot.slane %v1419_v43, 2 }
 0x188   :  { %v1457_v33 = vrot.slane %v1456_v52, 2 }
 0x189   :  { %v1421_v48 = vmax.f32 %v1419_v43, %v1420_v23  ;;  %v3531_v43 = vpop.xlane.xlu0 %1832 }
 0x18a   :  { %v1458_v61 = vmax.f32 %v1456_v52, %v1457_v33  ;;  %4631 = vst [vmem:[#allocation66_spill] sm:$0xff] %v3531_v43  ;;  %v4498_v52 = vsub.s32 1, %v3520_v60 }
 0x18b   :  { %v1422_v63 = vrot.slane %v1421_v48, 1 }
 0x18c   :  { %v1459_v32 = vrot.slane %v1458_v61, 1 }
 0x18d   :  { %v1423_v56 = vmax.f32 %v1421_v48, %v1422_v63  ;;  %v3547_v24 = vpop.xlane.xlu0 %1834 }
 0x18e   :  { %v1460_v6 = vmax.f32 %v1458_v61, %v1459_v32  ;;  %4632 = vst [vmem:[#allocation67_spill] sm:$0xff] %v3547_v24 }
 0x190   :  { %v1463_v54 = vcombine.low %v1423_v56, %v1460_v6 }
 0x191   :  { %v3557_v16 = vpop.xlane.xlu0 %1836 }
 0x192   :  { %v1470_v28 = vrot.slane %v1463_v54, %v3523_v58  ;;  %4633 = vst [vmem:[#allocation68_spill] sm:$0xff] %v3557_v16 }
 0x194   :  { %v1477_v33 = vrot.slane %v1470_v28, %v3523_v58 }
 0x195   :  { %v3565_v43 = vpop.xlane.xlu0 %1838 }
 0x196   :  { %v3534_v17 = vmax.f32 %v3528_v34, %v1477_v33  ;;  %4634 = vst [vmem:[#allocation69_spill] sm:$0xff] %v3565_v43 }
 0x198   :  { %1787 = vst.msk [vmem:[#allocation4] sm:$0x3] %vm3082_vm0, %v3534_v17  ;;  %v3545_v6 = vrot.slane %v3534_v17, %v4498_v52 }
 0x199   :  { %v3573_v16 = vpop.xlane.xlu0 %1840 }
 0x19a   :  { %v1498_v4 = vsub.f32 %v3100_v40, %v3545_v6  ;;  %v1500_v23 = vsub.f32 %v3119_v51, %v3545_v6  ;;  %v1502_v48 = vsub.f32 %v3226_v59, %v3545_v6  ;;  %v1504_v61 = vsub.f32 %v3245_v5, %v3545_v6  ;;  %4635 = vst [vmem:[#allocation70_spill] sm:$0xff] %v3573_v16 }
 0x19b   :  { %v1506_v54 = vsub.f32 %v3261_v18, %v3545_v6  ;;  %v1508_v33 = vsub.f32 %v3277_v25, %v3545_v6  ;;  %v1510_v56 = vsub.f32 %v3293_v42, %v3545_v6  ;;  %v1518_v43 = vsub.f32 %v3372_v21, %v3545_v6 }
 0x19c   :  { %v1563_v63 = vmul.f32 1.442695, %v1498_v4  ;;  %v1567_v32 = vmul.f32 1.442695, %v1500_v23  ;;  %v1571_v28 = vmul.f32 1.442695, %v1502_v48  ;;  %v1512_v4 = vsub.f32 %v3309_v57, %v3545_v6 }
 0x19d   :  { %v1575_v52 = vmul.f32 1.442695, %v1504_v61  ;;  %v1579_v24 = vmul.f32 1.442695, %v1506_v54  ;;  %v1583_v23 = vmul.f32 1.442695, %v1508_v33  ;;  %v1514_v48 = vsub.f32 %v3325_v11, %v3545_v6  ;;  %v3581_v16 = vpop.xlane.xlu0 %1842 }
 0x19e   :  { %2458 = vpow2.f32 %v1563_v63  ;;  %v1587_v63 = vmul.f32 1.442695, %v1510_v56  ;;  %v1516_v61 = vsub.f32 %v3346_v35, %v3545_v6  ;;  %4636 = vst [vmem:[#allocation71_spill] sm:$0xff] %v3581_v16  ;;  %v1534_v16 = vsub.f32 %v3239_v0, %v3545_v6 }
 0x19f   :  { %2460 = vpow2.f32 %v1567_v32  ;;  %v1591_v32 = vmul.f32 1.442695, %v1512_v4  ;;  %v1522_v4 = vsub.f32 %v3423_v30, %v3545_v6 }
 0x1a0   :  { %2462 = vpow2.f32 %v1571_v28  ;;  %v1599_v56 = vmul.f32 1.442695, %v1516_v61 }
 0x1a1   :  { %2464 = vpow2.f32 %v1575_v52  ;;  %v1595_v52 = vmul.f32 1.442695, %v1514_v48  ;;  %v1524_v48 = vsub.f32 %v3448_v46, %v3545_v6 }
 0x1a2   :  { %2466 = vpow2.f32 %v1579_v24  ;;  %v1520_v24 = vsub.f32 %v3398_v13, %v3545_v6 }
 0x1a3   :  { %2468 = vpow2.f32 %v1583_v23  ;;  %v1603_v23 = vmul.f32 1.442695, %v1518_v43 }
 0x1a4   :  { %2470 = vpow2.f32 %v1587_v63  ;;  %v1607_v63 = vmul.f32 1.442695, %v1520_v24 }
 0x1a5   :  { %2472 = vpow2.f32 %v1591_v32 }
 0x1a6   :  { %2474 = vpow2.f32 %v1595_v52 }
 0x1a7   :  { %2476 = vpow2.f32 %v1599_v56  ;;  %v1530_v56 = vsub.f32 %v3103_v41, %v3545_v6 }
 0x1a8   :  { %v2459_v54 = vpop.eup %2458  ;;  %2478 = vpow2.f32 %v1603_v23 }
 0x1a9   :  { %v2461_v28 = vpop.eup %2460  ;;  %2480 = vpow2.f32 %v1607_v63 }
 0x1aa   :  { %v1726_v33 = vadd.f32 %v2461_v28, %v2459_v54  ;;  %v2463_v44 = vpop.eup %2462  ;;  %v4504_v54 = vsub.s32 0, %v3520_v60  ;;  %v1611_v28 = vmul.f32 1.442695, %v1522_v4 }
 0x1ab   :  { %v2465_v35 = vpop.eup %2464 }
 0x1ac   :  { %v1727_v26 = vadd.f32 %v2463_v44, %v1726_v33  ;;  %v2467_v21 = vpop.eup %2466  ;;  %v1526_v44 = vsub.f32 %v3471_v37, %v3545_v6  ;;  %v3590_v33 = vpop.xlane.xlu0 %1844  ;;  %v3595_v24 = vrot.slane %v3534_v17, %v4504_v54  ;;  %2482 = vpow2.f32 %v1611_v28 }
 0x1ad   :  { %v2469_v61 = vpop.eup %2468  ;;  %4637 = vst [vmem:[#allocation72_spill] sm:$0xff] %v3590_v33 }
 0x1ae   :  { %v1728_v11 = vadd.f32 %v2465_v35, %v1727_v26  ;;  %v2471_v43 = vpop.eup %2470  ;;  %v1528_v35 = vsub.f32 %v3493_v38, %v3545_v6  ;;  %v1615_v26 = vmul.f32 1.442695, %v1524_v48  ;;  %v1619_v4 = vmul.f32 1.442695, %v1526_v44 }
 0x1af   :  { %v1497_v48 = vsub.f32 %v3094_v36, %v3595_v24  ;;  %v1499_v60 = vsub.f32 %v3116_v50, %v3595_v24  ;;  %v1501_v28 = vsub.f32 %v3156_v55, %v3595_v24 }
 0x1b0   :  { %v1729_v32 = vadd.f32 %v2467_v21, %v1728_v11  ;;  %v2473_v21 = vpop.eup %2472  ;;  %2484 = vpow2.f32 %v1615_v26  ;;  %v3605_v33 = vpop.xlane.xlu0 %1846 }
 0x1b1   :  { %2486 = vpow2.f32 %v1619_v4  ;;  %4638 = vst [vmem:[#allocation73_spill] sm:$0xff] %v3605_v33  ;;  %v1561_v26 = vmul.f32 1.442695, %v1497_v48  ;;  %v1507_v48 = vsub.f32 %v3274_v22, %v3595_v24 }
 0x1b2   :  { %v1730_v52 = vadd.f32 %v2469_v61, %v1729_v32  ;;  %v2475_v32 = vpop.eup %2474  ;;  %v1623_v61 = vmul.f32 1.442695, %v1528_v35 }
 0x1b3   :  { %v2477_v54 = vpop.eup %2476 }
 0x1b4   :  { %v1731_v11 = vadd.f32 %v2471_v43, %v1730_v52  ;;  %v1532_v52 = vsub.f32 %v3113_v49, %v3545_v6  ;;  %v1627_v43 = vmul.f32 1.442695, %v1530_v56  ;;  %v2479_v35 = vpop.eup %2478  ;;  %2488 = vpow2.f32 %v1623_v61  ;;  %v3615_v38 = vpop.xlane.xlu0 %1848 }
 0x1b5   :  { %4639 = vst [vmem:[#allocation74_spill] sm:$0xff] %v3615_v38 }
 0x1b6   :  { %v1732_v23 = vadd.f32 %v2473_v21, %v1731_v11  ;;  %v1503_v21 = vsub.f32 %v3242_v2, %v3595_v24  ;;  %2490 = vpow2.f32 %v1627_v43  ;;  %v1631_v56 = vmul.f32 1.442695, %v1532_v52 }
 0x1b7   :  { %2492 = vpow2.f32 %v1561_v26  ;;  %v1536_v43 = vsub.f32 %v3253_v9, %v3545_v6  ;;  %v1635_v52 = vmul.f32 1.442695, %v1534_v16 }
 0x1b8   :  { %v1733_v63 = vadd.f32 %v2475_v32, %v1732_v23  ;;  %v1565_v23 = vmul.f32 1.442695, %v1499_v60  ;;  %v2481_v32 = vpop.eup %2480  ;;  %v1573_v60 = vmul.f32 1.442695, %v1503_v21  ;;  %v3627_v16 = vpop.xlane.xlu0 %1850 }
 0x1b9   :  { %v2483_v33 = vpop.eup %2482  ;;  %4640 = vst [vmem:[#allocation75_spill] sm:$0xff] %v3627_v16  ;;  %v3646_v16 = vld [vmem:[#allocation2 + $0x88] sm:$0xff] }
 0x1ba   :  { %v1734_v44 = vadd.f32 %v2477_v54, %v1733_v63  ;;  %v1505_v54 = vsub.f32 %v3258_v14, %v3595_v24  ;;  %v1569_v63 = vmul.f32 1.442695, %v1501_v28  ;;  %2494 = vpow2.f32 %v1565_v23  ;;  %4644 = vst [vmem:[#allocation79_spill] sm:$0xff] %v3646_v16 }
 0x1bb   :  { %2496 = vpow2.f32 %v1631_v56  ;;  %v1509_v28 = vsub.f32 %v3290_v39, %v3595_v24  ;;  %v1581_v23 = vmul.f32 1.442695, %v1507_v48  ;;  %v1639_v56 = vmul.f32 1.442695, %v1536_v43 }
 0x1bc   :  { %v1735_v11 = vadd.f32 %v2479_v35, %v1734_v44  ;;  %v2485_v44 = vpop.eup %2484  ;;  %2498 = vpow2.f32 %v1569_v63  ;;  %v1513_v63 = vsub.f32 %v3322_v10, %v3595_v24  ;;  %v1515_v48 = vsub.f32 %v3343_v27, %v3595_v24 }
 0x1bd   :  { %2500 = vpow2.f32 %v1573_v60  ;;  %v1540_v43 = vsub.f32 %v3285_v29, %v3545_v6 }
 0x1be   :  { %v1736_v4 = vadd.f32 %v2481_v32, %v1735_v11  ;;  %v1577_v11 = vmul.f32 1.442695, %v1505_v54  ;;  %v2487_v32 = vpop.eup %2486  ;;  %2502 = vpow2.f32 %v1635_v52  ;;  %v1585_v54 = vmul.f32 1.442695, %v1509_v28 }
 0x1bf   :  { %v2489_v21 = vpop.eup %2488 }
 0x1c0   :  { %v1737_v61 = vadd.f32 %v2483_v33, %v1736_v4  ;;  %v1511_v33 = vsub.f32 %v3306_v53, %v3595_v24  ;;  %v1538_v4 = vsub.f32 %v3269_v19, %v3545_v6  ;;  %2504 = vpow2.f32 %v1577_v11  ;;  %v3791_v53 = vld [vmem:[#allocation2 + $0x38] sm:$0xff] }
 0x1c1   :  { %2506 = vpow2.f32 %v1581_v23 }
 0x1c2   :  { %v1738_v35 = vadd.f32 %v2485_v44, %v1737_v61  ;;  %v2491_v44 = vpop.eup %2490  ;;  %v1589_v60 = vmul.f32 1.442695, %v1511_v33  ;;  %2508 = vpow2.f32 %v1639_v56  ;;  %v1643_v52 = vmul.f32 1.442695, %v1538_v4  ;;  %v3648_v56 = vld [vmem:[#allocation2 + $0x80] sm:$0xff] }
 0x1c3   :  { %v2493_v38 = vpop.eup %2492  ;;  %2510 = vpow2.f32 %v1585_v54  ;;  %v1542_v33 = vsub.f32 %v3301_v47, %v3545_v6  ;;  %4645 = vst [vmem:[#allocation80_spill] sm:$0xff] %v3648_v56  ;;  %v1519_v4 = vsub.f32 %v3394_v7, %v3595_v24  ;;  %v1647_v54 = vmul.f32 1.442695, %v1540_v43 }
 0x1c4   :  { %v1739_v26 = vadd.f32 %v2487_v32, %v1738_v35  ;;  %v3631_v35 = vld [vmem:[#allocation2] sm:$0xff]  ;;  %v2495_v11 = vpop.eup %2494  ;;  %2512 = vpow2.f32 %v1589_v60  ;;  %v1521_v7 = vsub.f32 %v3420_v12, %v3595_v24  ;;  %v3667_v60 = vld [vmem:[#allocation2 + $0x8] sm:$0xff]  ;;  %v1523_v43 = vsub.f32 %v3443_v3, %v3595_v24 }
 0x1c5   :  { %4641 = vst [vmem:[#allocation76_spill] sm:$0xff] %v3631_v35  ;;  %v2497_v23 = vpop.eup %2496  ;;  %2514 = vpow2.f32 %v1643_v52  ;;  %4648 = vst [vmem:[#allocation83_spill] sm:$0xff] %v3667_v60  ;;  %v1605_v52 = vmul.f32 1.442695, %v1519_v4 }
 0x1c6   :  { %v1740_v61 = vadd.f32 %v2489_v21, %v1739_v26  ;;  %v3637_v26 = vpop.xlane.xlu1 %1824  ;;  %v2499_v37 = vpop.eup %2498 }
 0x1c7   :  { %4642 = vst [vmem:[#allocation77_spill] sm:$0xff] %v3637_v26  ;;  %v1689_v26 = vadd.f32 %v2495_v11, %v2493_v38  ;;  %v2501_v11 = vpop.eup %2500 }
 0x1c8   :  { %v1741_v32 = vadd.f32 %v2491_v44, %v1740_v61  ;;  %v1517_v61 = vsub.f32 %v3369_v15, %v3595_v24  ;;  %v1593_v44 = vmul.f32 1.442695, %v1513_v63  ;;  %v1597_v63 = vmul.f32 1.442695, %v1515_v48 }
 0x1c9   :  { %v1690_v38 = vadd.f32 %v2499_v37, %v1689_v26  ;;  %v1544_v48 = vsub.f32 %v3317_v1, %v3545_v6 }
 0x1ca   :  { %2516 = vpow2.f32 %v1593_v44  ;;  %v1601_v46 = vmul.f32 1.442695, %v1517_v61  ;;  %v3681_v61 = vld [vmem:[#allocation2 + $0x10] sm:$0xff]  ;;  %v1651_v44 = vmul.f32 1.442695, %v1542_v33 }
 0x1cb   :  { %v1691_v37 = vadd.f32 %v2501_v11, %v1690_v38  ;;  %4649 = vst [vmem:[#allocation84_spill] sm:$0xff] %v3681_v61  ;;  %2518 = vpow2.f32 %v1597_v63  ;;  %v3695_v33 = vld [vmem:[#allocation2 + $0x90] sm:$0xff] }
 0x1cc   :  { %2520 = vpow2.f32 %v1647_v54  ;;  %4654 = vst [vmem:[#allocation88_spill] sm:$0xff] %v3695_v33  ;;  %v1527_v54 = vsub.f32 %v3490_v8, %v3595_v24 }
 0x1cd   :  { %2522 = vpow2.f32 %v1601_v46  ;;  %v4658_v46 = vld [vmem:[#allocation37_spill] sm:$0xff] }
 0x1ce   :  { %2524 = vpow2.f32 %v1605_v52  ;;  %v1621_v3 = vmul.f32 1.442695, %v1527_v54  ;;  %v4662_v54 = vld [vmem:[#allocation41_spill] sm:$0xff] }
 0x1cf   :  { %v553_v21 = vpop.xlane.xlu0 %552  ;;  %2526 = vpow2.f32 %v1651_v44 }
 0x1d0   :  { %v3640_v28 = vmax.f32 %v3631_v35, %v553_v21  ;;  %v1742_v21 = vadd.f32 %v2497_v23, %v1741_v32 }
 0x1d2   :  { %4643 = vst [vmem:[#allocation78_spill] sm:$0xff] %v3640_v28  ;;  %1352 = vst.msk [vmem:[#allocation2] sm:$0xff] %vm442_vm1, %v3640_v28  ;;  %841 = vperm.xlu0 %2456, %v3640_v28   ;;  %v2503_v28 = vpop.eup %2502 }
 0x1d3   :  { %v604_v30 = vpop.xlane.xlu1 %603  ;;  %v601_v13 = vpop.xlane.xlu0 %600  ;;  %v1743_v35 = vadd.f32 %v2503_v28, %v1742_v21  ;;  %v1546_v28 = vsub.f32 %v3335_v20, %v3545_v6  ;;  %v3693_v20 = vld [vmem:[#allocation2 + $0x18] sm:$0xff] }
 0x1d4   :  { %v3660_v32 = vmax.f32 %v3646_v16, %v604_v30  ;;  %v3663_v23 = vmax.f32 %v3648_v56, %v601_v13  ;;  %v2505_v26 = vpop.eup %2504  ;;  %v4651_v13 = vld [vmem:[#allocation54_spill] sm:$0xff]  ;;  %v1609_v16 = vmul.f32 1.442695, %v1521_v7  ;;  %v1655_v56 = vmul.f32 1.442695, %v1544_v48  ;;  %4653 = vst [vmem:[#allocation87_spill] sm:$0xff] %v3693_v20 }
 0x1d5   :  { %v1692_v38 = vadd.f32 %v2505_v26, %v1691_v37  ;;  %v2507_v11 = vpop.eup %2506  ;;  %v1613_v7 = vmul.f32 1.442695, %v1523_v43 }
 0x1d6   :  { %4646 = vst [vmem:[#allocation81_spill] sm:$0xff] %v3660_v32  ;;  %4647 = vst [vmem:[#allocation82_spill] sm:$0xff] %v3663_v23  ;;  %926 = vperm.xlu0 %2456, %v3660_v32   ;;  %921 = vperm.xlu1 %2457, %v3663_v23   ;;  %2528 = vpow2.f32 %v1609_v16  ;;  %v4664_v16 = vld [vmem:[#allocation20_spill] sm:$0xff] }
 0x1d7   :  { %1369 = vst.msk [vmem:[#allocation2 + $0x88] sm:$0xff] %vm442_vm1, %v3660_v32  ;;  %1368 = vst.msk [vmem:[#allocation2 + $0x80] sm:$0xff] %vm442_vm1, %v3663_v23  ;;  %v556_v4 = vpop.xlane.xlu0 %555  ;;  %v559_v21 = vpop.xlane.xlu1 %558  ;;  %v1525_v32 = vsub.f32 %v4651_v13, %v3595_v24  ;;  %v1693_v37 = vadd.f32 %v2507_v11, %v1692_v38  ;;  %2530 = vpow2.f32 %v1613_v7  ;;  %v3740_v7 = vld [vmem:[#allocation2 + $0x28] sm:$0xff] }
 0x1d8   :  { %v3686_v30 = vmax.f32 %v3667_v60, %v556_v4  ;;  %v2509_v23 = vpop.eup %2508  ;;  %v3691_v63 = vmax.f32 %v3681_v61, %v559_v21  ;;  %v1548_v61 = vsub.f32 %v4658_v46, %v3545_v6  ;;  %v4660_v60 = vld [vmem:[#allocation19_spill] sm:$0xff]  ;;  %2532 = vpow2.f32 %v1655_v56  ;;  %4665 = vst [vmem:[#allocation20_spill] sm:$0xff] %v3740_v7  ;;  %v3745_v56 = vld [vmem:[#allocation2 + $0xa0] sm:$0xff] }
 0x1d9   :  { %v2511_v26 = vpop.eup %2510  ;;  %v1744_v4 = vadd.f32 %v2509_v23, %v1743_v35  ;;  %v4655_v35 = vld [vmem:[#allocation18_spill] sm:$0xff]  ;;  %v1617_v43 = vmul.f32 1.442695, %v1525_v32  ;;  %v1531_v8 = vsub.f32 %v4660_v60, %v3595_v24  ;;  %v3731_v32 = vld [vmem:[#allocation2 + $0x20] sm:$0xff]  ;;  %4667 = vst [vmem:[#allocation93_spill] sm:$0xff] %v3745_v56 }
 0x1da   :  { %4650 = vst [vmem:[#allocation85_spill] sm:$0xff] %v3686_v30  ;;  %4652 = vst [vmem:[#allocation86_spill] sm:$0xff] %v3691_v63  ;;  %846 = vperm.xlu1 %2457, %v3686_v30   ;;  %v1529_v23 = vsub.f32 %v4655_v35, %v3595_v24  ;;  %v1694_v38 = vadd.f32 %v2511_v26, %v1693_v37  ;;  %v2513_v11 = vpop.eup %2512  ;;  %v1663_v15 = vmul.f32 1.442695, %v1548_v61 }
 0x1db   :  { %1353 = vst.msk [vmem:[#allocation2 + $0x8] sm:$0xff] %vm442_vm1, %v3686_v30  ;;  %1354 = vst.msk [vmem:[#allocation2 + $0x10] sm:$0xff] %vm442_vm1, %v3691_v63  ;;  %v562_v48 = vpop.xlane.xlu1 %561  ;;  %v607_v21 = vpop.xlane.xlu0 %606  ;;  %v3718_v30 = vld [vmem:[#allocation2 + $0x98] sm:$0xff]  ;;  %2534 = vpow2.f32 %v1617_v43  ;;  %v1629_v61 = vmul.f32 1.442695, %v1531_v8 }
 0x1dc   :  { %v3711_v13 = vmax.f32 %v3693_v20, %v562_v48  ;;  %v3714_v52 = vmax.f32 %v3695_v33, %v607_v21  ;;  %v2515_v44 = vpop.eup %2514  ;;  %4659 = vst [vmem:[#allocation90_spill] sm:$0xff] %v3718_v30  ;;  %v1695_v37 = vadd.f32 %v2513_v11, %v1694_v38  ;;  %4661 = vst [vmem:[#allocation19_spill] sm:$0xff] %v3731_v32  ;;  %v1659_v21 = vmul.f32 1.442695, %v1546_v28  ;;  %v4668_v28 = vld [vmem:[#allocation21_spill] sm:$0xff]  ;;  %v4673_v43 = vld [vmem:[#allocation23_spill] sm:$0xff] }
 0x1dd   :  { %v2517_v26 = vpop.eup %2516  ;;  %v1745_v12 = vadd.f32 %v2515_v44, %v1744_v4  ;;  %v1550_v4 = vsub.f32 %v4662_v54, %v3545_v6  ;;  %v1533_v33 = vsub.f32 %v4664_v16, %v3595_v24  ;;  %2536 = vpow2.f32 %v1621_v3 }
 0x1de   :  { %4656 = vst [vmem:[#allocation18_spill] sm:$0xff] %v3711_v13  ;;  %4657 = vst [vmem:[#allocation89_spill] sm:$0xff] %v3714_v52  ;;  %851 = vperm.xlu1 %2457, %v3691_v63   ;;  %v1696_v44 = vadd.f32 %v2517_v26, %v1695_v37  ;;  %v2519_v48 = vpop.eup %2518  ;;  %v1625_v63 = vmul.f32 1.442695, %v1529_v23  ;;  %v1535_v37 = vsub.f32 %v4668_v28, %v3595_v24  ;;  %2538 = vpow2.f32 %v1659_v21 }
 0x1df   :  { %1355 = vst.msk [vmem:[#allocation2 + $0x18] sm:$0xff] %vm442_vm1, %v3711_v13  ;;  %1370 = vst.msk [vmem:[#allocation2 + $0x90] sm:$0xff] %vm442_vm1, %v3714_v52  ;;  %v610_v38 = vpop.xlane.xlu1 %609  ;;  %v565_v11 = vpop.xlane.xlu0 %564  ;;  %v1633_v8 = vmul.f32 1.442695, %v1533_v33  ;;  %v3780_v33 = vld [vmem:[#allocation2 + $0x30] sm:$0xff] }
 0x1e0   :  { %v3736_v20 = vmax.f32 %v3718_v30, %v610_v38  ;;  %v2521_v46 = vpop.eup %2520  ;;  %v3743_v54 = vmax.f32 %v3731_v32, %v565_v11  ;;  %v1697_v26 = vadd.f32 %v2519_v48, %v1696_v44  ;;  %2540 = vpow2.f32 %v1625_v63  ;;  %4674 = vst [vmem:[#allocation23_spill] sm:$0xff] %v3780_v33  ;;  %v4677_v63 = vld [vmem:[#allocation24_spill] sm:$0xff] }
 0x1e1   :  { %v2523_v38 = vpop.eup %2522  ;;  %v1746_v27 = vadd.f32 %v2521_v46, %v1745_v12  ;;  %v4669_v46 = vld [vmem:[#allocation22_spill] sm:$0xff]  ;;  %v1539_v32 = vsub.f32 %v4673_v43, %v3595_v24  ;;  %v1637_v30 = vmul.f32 1.442695, %v1535_v37  ;;  %2542 = vpow2.f32 %v1629_v61  ;;  %v4675_v37 = vld [vmem:[#allocation45_spill] sm:$0xff]  ;;  %4679 = vst [vmem:[#allocation24_spill] sm:$0xff] %v3791_v53 }
 0x1e2   :  { %4663 = vst [vmem:[#allocation91_spill] sm:$0xff] %v3736_v20  ;;  %4666 = vst [vmem:[#allocation92_spill] sm:$0xff] %v3743_v54  ;;  %936 = vperm.xlu0 %2456, %v3736_v20   ;;  %931 = vperm.xlu1 %2457, %v3714_v52   ;;  %v1537_v48 = vsub.f32 %v4669_v46, %v3595_v24  ;;  %v1698_v11 = vadd.f32 %v2523_v38, %v1697_v26  ;;  %v2525_v44 = vpop.eup %2524  ;;  %2544 = vpow2.f32 %v1663_v15  ;;  %v4678_v61 = vld [vmem:[#allocation49_spill] sm:$0xff] }
 0x1e3   :  { %1371 = vst.msk [vmem:[#allocation2 + $0x98] sm:$0xff] %vm442_vm1, %v3736_v20  ;;  %v568_v23 = vpop.xlane.xlu1 %567  ;;  %1356 = vst.msk [vmem:[#allocation2 + $0x20] sm:$0xff] %vm442_vm1, %v3743_v54  ;;  %v613_v12 = vpop.xlane.xlu0 %612  ;;  %v3767_v20 = vld [vmem:[#allocation2 + $0xa8] sm:$0xff]  ;;  %v1667_v38 = vmul.f32 1.442695, %v1550_v4  ;;  %v1541_v26 = vsub.f32 %v4677_v63, %v3595_v24  ;;  %2546 = vpow2.f32 %v1633_v8  ;;  %v3796_v4 = vld [vmem:[#allocation2 + $0xb0] sm:$0xff] }
 0x1e4   :  { %v3762_v10 = vmax.f32 %v3740_v7, %v568_v23  ;;  %v3765_v3 = vmax.f32 %v3745_v56, %v613_v12  ;;  %v2527_v21 = vpop.eup %2526  ;;  %4672 = vst [vmem:[#allocation94_spill] sm:$0xff] %v3767_v20  ;;  %v1699_v52 = vadd.f32 %v2525_v44, %v1698_v11  ;;  %v1641_v56 = vmul.f32 1.442695, %v1537_v48  ;;  %4681 = vst [vmem:[#allocation97_spill] sm:$0xff] %v3796_v4 }
 0x1e5   :  { %v2529_v1 = vpop.eup %2528  ;;  %v1747_v57 = vadd.f32 %v2527_v21, %v1746_v27  ;;  %v1552_v27 = vsub.f32 %v4675_v37, %v3545_v6  ;;  %2548 = vpow2.f32 %v1637_v30  ;;  %v1645_v8 = vmul.f32 1.442695, %v1539_v32 }
 0x1e6   :  { %4670 = vst [vmem:[#allocation21_spill] sm:$0xff] %v3762_v10  ;;  %4671 = vst [vmem:[#allocation22_spill] sm:$0xff] %v3765_v3  ;;  %856 = vperm.xlu1 %2457, %v3711_v13   ;;  %v1700_v11 = vadd.f32 %v2529_v1, %v1699_v52  ;;  %v2531_v44 = vpop.eup %2530  ;;  %v1554_v13 = vsub.f32 %v4678_v61, %v3545_v6  ;;  %v4682_v1 = vld [vmem:[#allocation28_spill] sm:$0xff]  ;;  %2550 = vpow2.f32 %v1667_v38  ;;  %v1649_v30 = vmul.f32 1.442695, %v1541_v26 }
 0x1e7   :  { %1357 = vst.msk [vmem:[#allocation2 + $0x28] sm:$0xff] %vm442_vm1, %v3762_v10  ;;  %1372 = vst.msk [vmem:[#allocation2 + $0xa0] sm:$0xff] %vm442_vm1, %v3765_v3  ;;  %v616_v23 = vpop.xlane.xlu1 %615  ;;  %v571_v12 = vpop.xlane.xlu0 %570  ;;  %v1543_v52 = vsub.f32 %v4682_v1, %v3595_v24  ;;  %2552 = vpow2.f32 %v1641_v56  ;;  %v4684_v38 = vld [vmem:[#allocation32_spill] sm:$0xff]  ;;  %v3838_v56 = vld [vmem:[#allocation2 + $0x48] sm:$0xff] }
 0x1e8   :  { %v3785_v21 = vmax.f32 %v3767_v20, %v616_v23  ;;  %v2533_v7 = vpop.eup %2532  ;;  %v3794_v15 = vmax.f32 %v3780_v33, %v571_v12  ;;  %v1701_v23 = vadd.f32 %v2531_v44, %v1700_v11  ;;  %v1671_v12 = vmul.f32 1.442695, %v1552_v27  ;;  %v3816_v27 = vld [vmem:[#allocation2 + $0xb8] sm:$0xff]  ;;  %v3829_v26 = vld [vmem:[#allocation2 + $0x40] sm:$0xff]  ;;  %4687 = vst [vmem:[#allocation100_spill] sm:$0xff] %v3838_v56 }
 0x1e9   :  { %v2535_v37 = vpop.eup %2534  ;;  %v1748_v47 = vadd.f32 %v2533_v7, %v1747_v57  ;;  %4683 = vst [vmem:[#allocation98_spill] sm:$0xff] %v3816_v27  ;;  %v1545_v11 = vsub.f32 %v4684_v38, %v3595_v24  ;;  %v1653_v20 = vmul.f32 1.442695, %v1543_v52  ;;  %4685 = vst [vmem:[#allocation32_spill] sm:$0xff] %v3829_v26  ;;  %2554 = vpow2.f32 %v1645_v8 }
 0x1ea   :  { %4676 = vst [vmem:[#allocation95_spill] sm:$0xff] %v3785_v21  ;;  %4680 = vst [vmem:[#allocation96_spill] sm:$0xff] %v3794_v15  ;;  %946 = vperm.xlu0 %2456, %v3785_v21   ;;  %861 = vperm.xlu1 %2457, %v3743_v54   ;;  %v1702_v7 = vadd.f32 %v2535_v37, %v1701_v23  ;;  %v2537_v44 = vpop.eup %2536  ;;  %2556 = vpow2.f32 %v1671_v12  ;;  %v1558_v37 = vsub.f32 %v3483_v62, %v3545_v6 }
 0x1eb   :  { %1373 = vst.msk [vmem:[#allocation2 + $0xa8] sm:$0xff] %vm442_vm1, %v3785_v21  ;;  %v574_v61 = vpop.xlane.xlu1 %573  ;;  %1358 = vst.msk [vmem:[#allocation2 + $0x30] sm:$0xff] %vm442_vm1, %v3794_v15  ;;  %v619_v57 = vpop.xlane.xlu0 %618  ;;  %2558 = vpow2.f32 %v1649_v30 }
 0x1ec   :  { %v3811_v48 = vmax.f32 %v3791_v53, %v574_v61  ;;  %v3814_v21 = vmax.f32 %v3796_v4, %v619_v57  ;;  %v2539_v32 = vpop.eup %2538  ;;  %v1703_v33 = vadd.f32 %v2537_v44, %v1702_v7  ;;  %v1675_v61 = vmul.f32 1.442695, %v1554_v13  ;;  %v3843_v53 = vld [vmem:[#allocation2 + $0xc0] sm:$0xff] }
 0x1ed   :  { %v2541_v54 = vpop.eup %2540  ;;  %v1749_v1 = vadd.f32 %v2539_v32, %v1748_v47  ;;  %v1556_v47 = vsub.f32 %v3454_v45, %v3545_v6  ;;  %4689 = vst [vmem:[#allocation102_spill] sm:$0xff] %v3843_v53  ;;  %v4690_v13 = vld [vmem:[#allocation36_spill] sm:$0xff]  ;;  %2560 = vpow2.f32 %v1653_v20 }
 0x1ee   :  { %1359 = vst.msk [vmem:[#allocation2 + $0x38] sm:$0xff] %vm442_vm1, %v3811_v48  ;;  %941 = vperm.xlu1 %2457, %v3765_v3   ;;  %1374 = vst.msk [vmem:[#allocation2 + $0xb0] sm:$0xff] %vm442_vm1, %v3814_v21  ;;  %v1704_v57 = vadd.f32 %v2541_v54, %v1703_v33  ;;  %v2543_v7 = vpop.eup %2542  ;;  %v1547_v12 = vsub.f32 %v4690_v13, %v3595_v24  ;;  %2562 = vpow2.f32 %v1675_v61  ;;  %v4693_v20 = vld [vmem:[#allocation40_spill] sm:$0xff]  ;;  %v3865_v61 = vld [vmem:[#allocation2 + $0xc8] sm:$0xff] }
 0x1ef   :  { %v622_v52 = vpop.xlane.xlu1 %621  ;;  %v577_v23 = vpop.xlane.xlu0 %576  ;;  %4694 = vst [vmem:[#allocation40_spill] sm:$0xff] %v3865_v61 }
 0x1f0   :  { %v3834_v44 = vmax.f32 %v3816_v27, %v622_v52  ;;  %v2545_v32 = vpop.eup %2544  ;;  %v3841_v8 = vmax.f32 %v3829_v26, %v577_v23  ;;  %v1705_v54 = vadd.f32 %v2543_v7, %v1704_v57  ;;  %v1657_v52 = vmul.f32 1.442695, %v1545_v11  ;;  %v4695_v57 = vld [vmem:[#allocation44_spill] sm:$0xff] }
 0x1f1   :  { %v2547_v33 = vpop.eup %2546  ;;  %v1750_v4 = vadd.f32 %v2545_v32, %v1749_v1  ;;  %v1679_v23 = vmul.f32 1.442695, %v1556_v47  ;;  %v1549_v11 = vsub.f32 %v4693_v20, %v3595_v24  ;;  %v1551_v26 = vsub.f32 %v4695_v57, %v3595_v24 }
 0x1f2   :  { %4686 = vst [vmem:[#allocation99_spill] sm:$0xff] %v3834_v44  ;;  %4688 = vst [vmem:[#allocation101_spill] sm:$0xff] %v3841_v8  ;;  %956 = vperm.xlu0 %2456, %v3834_v44   ;;  %866 = vperm.xlu1 %2457, %v3762_v10   ;;  %v1706_v7 = vadd.f32 %v2547_v33, %v1705_v54  ;;  %v2549_v32 = vpop.eup %2548  ;;  %v1661_v27 = vmul.f32 1.442695, %v1547_v12  ;;  %v3879_v12 = vld [vmem:[#allocation2 + $0x50] sm:$0xff]  ;;  %2564 = vpow2.f32 %v1657_v52 }
 0x1f3   :  { %1375 = vst.msk [vmem:[#allocation2 + $0xb8] sm:$0xff] %vm442_vm1, %v3834_v44  ;;  %v580_v3 = vpop.xlane.xlu1 %579  ;;  %1360 = vst.msk [vmem:[#allocation2 + $0x40] sm:$0xff] %vm442_vm1, %v3841_v8  ;;  %v625_v1 = vpop.xlane.xlu0 %624  ;;  %2566 = vpow2.f32 %v1679_v23  ;;  %v3891_v52 = vld [vmem:[#allocation2 + $0xd0] sm:$0xff] }
 0x1f4   :  { %v3858_v30 = vmax.f32 %v3838_v56, %v580_v3  ;;  %v3861_v44 = vmax.f32 %v3843_v53, %v625_v1  ;;  %v2551_v47 = vpop.eup %2550  ;;  %v1707_v10 = vadd.f32 %v2549_v32, %v1706_v7  ;;  %4696 = vst [vmem:[#allocation104_spill] sm:$0xff] %v3879_v12  ;;  %v1683_v7 = vmul.f32 1.442695, %v1558_v37  ;;  %v3886_v53 = vld [vmem:[#allocation2 + $0x58] sm:$0xff]  ;;  %4700 = vst [vmem:[#allocation107_spill] sm:$0xff] %v3891_v52 }
 0x1f5   :  { %v2553_v62 = vpop.eup %2552  ;;  %v1751_v54 = vadd.f32 %v2551_v47, %v1750_v4  ;;  %v4697_v4 = vld [vmem:[#allocation61_spill] sm:$0xff]  ;;  %4699 = vst [vmem:[#allocation106_spill] sm:$0xff] %v3886_v53  ;;  %2568 = vpow2.f32 %v1661_v27 }
 0x1f6   :  { %4691 = vst [vmem:[#allocation36_spill] sm:$0xff] %v3858_v30  ;;  %4692 = vst [vmem:[#allocation103_spill] sm:$0xff] %v3861_v44  ;;  %886 = vperm.xlu0 %2456, %v3858_v30   ;;  %871 = vperm.xlu1 %2457, %v3794_v15   ;;  %v1560_v1 = vsub.f32 %v4697_v4, %v3545_v6  ;;  %v1708_v3 = vadd.f32 %v2553_v62, %v1707_v10  ;;  %v1665_v15 = vmul.f32 1.442695, %v1549_v11  ;;  %v4701_v6 = vld [vmem:[#allocation48_spill] sm:$0xff] }
 0x1f7   :  { %1361 = vst.msk [vmem:[#allocation2 + $0x48] sm:$0xff] %vm442_vm1, %v3858_v30  ;;  %1376 = vst.msk [vmem:[#allocation2 + $0xc0] sm:$0xff] %vm442_vm1, %v3861_v44  ;;  %v628_v32 = vpop.xlane.xlu1 %627  ;;  %v583_v47 = vpop.xlane.xlu0 %582  ;;  %v1553_v23 = vsub.f32 %v4701_v6, %v3595_v24  ;;  %v1669_v62 = vmul.f32 1.442695, %v1551_v26  ;;  %2570 = vpow2.f32 %v1683_v7  ;;  %v3911_v26 = vld [vmem:[#allocation2 + $0xd8] sm:$0xff] }
 0x1f8   :  { %v2555_v30 = vpop.eup %2554  ;;  %v3884_v56 = vmax.f32 %v3865_v61, %v628_v32  ;;  %v3889_v45 = vmax.f32 %v3879_v12, %v583_v47  ;;  %v1687_v11 = vmul.f32 1.442695, %v1560_v1  ;;  %2572 = vpow2.f32 %v1665_v15  ;;  %4703 = vst [vmem:[#allocation108_spill] sm:$0xff] %v3911_v26  ;;  %v3913_v1 = vld [vmem:[#allocation2 + $0x60] sm:$0xff] }
 0x1f9   :  { %v2557_v33 = vpop.eup %2556  ;;  %v1709_v37 = vadd.f32 %v2555_v30, %v1708_v3  ;;  %4704 = vst [vmem:[#allocation109_spill] sm:$0xff] %v3913_v1  ;;  %v4705_v7 = vld [vmem:[#allocation52_spill] sm:$0xff]  ;;  %2574 = vpow2.f32 %v1669_v62 }
 0x1fa   :  { %4698 = vst [vmem:[#allocation105_spill] sm:$0xff] %v3884_v56  ;;  %v2559_v4 = vpop.eup %2558  ;;  %v1752_v57 = vadd.f32 %v2557_v33, %v1751_v54  ;;  %1377 = vst.msk [vmem:[#allocation2 + $0xc8] sm:$0xff] %vm442_vm1, %v3884_v56  ;;  %966 = vperm.xlu0 %2456, %v3884_v56   ;;  %951 = vperm.xlu1 %2457, %v3814_v21   ;;  %v1555_v30 = vsub.f32 %v4705_v7, %v3595_v24  ;;  %v1673_v56 = vmul.f32 1.442695, %v1553_v23  ;;  %v4709_v15 = vld [vmem:[#allocation56_spill] sm:$0xff] }
 0x1fb   :  { %v586_v32 = vpop.xlane.xlu1 %585  ;;  %1362 = vst.msk [vmem:[#allocation2 + $0x50] sm:$0xff] %vm442_vm1, %v3889_v45  ;;  %v631_v54 = vpop.xlane.xlu0 %630  ;;  %v1710_v3 = vadd.f32 %v2559_v4, %v1709_v37  ;;  %2576 = vpow2.f32 %v1687_v11  ;;  %v1557_v4 = vsub.f32 %v4709_v15, %v3595_v24 }
 0x1fc   :  { %v2561_v33 = vpop.eup %2560  ;;  %v3906_v47 = vmax.f32 %v3886_v53, %v586_v32  ;;  %v3909_v10 = vmax.f32 %v3891_v52, %v631_v54  ;;  %v1677_v52 = vmul.f32 1.442695, %v1555_v30  ;;  %2578 = vpow2.f32 %v1673_v56 }
 0x1fd   :  { %v2563_v27 = vpop.eup %2562  ;;  %v1711_v61 = vadd.f32 %v2561_v33, %v1710_v3  ;;  %v3933_v33 = vld [vmem:[#allocation2 + $0x68] sm:$0xff] }
 0x1fe   :  { %4702 = vst [vmem:[#allocation48_spill] sm:$0xff] %v3906_v47  ;;  %v1753_v12 = vadd.f32 %v2563_v27, %v1752_v57  ;;  %1363 = vst.msk [vmem:[#allocation2 + $0x58] sm:$0xff] %vm442_vm1, %v3906_v47  ;;  %896 = vperm.xlu0 %2456, %v3906_v47   ;;  %876 = vperm.xlu1 %2457, %v3811_v48   ;;  %v2565_v37 = vpop.eup %2564  ;;  %v3935_v27 = vld [vmem:[#allocation2 + $0xe0] sm:$0xff]  ;;  %v3955_v47 = vld [vmem:[#allocation2 + $0xe8] sm:$0xff]  ;;  %2580 = vpow2.f32 %v1677_v52 }
 0x1ff   :  { %1378 = vst.msk [vmem:[#allocation2 + $0xd0] sm:$0xff] %vm442_vm1, %v3909_v10  ;;  %v634_v23 = vpop.xlane.xlu1 %633  ;;  %v589_v57 = vpop.xlane.xlu0 %588  ;;  %4707 = vst [vmem:[#allocation110_spill] sm:$0xff] %v3933_v33  ;;  %v1712_v62 = vadd.f32 %v2565_v37, %v1711_v61 }
 0x200   :  { %v3928_v32 = vmax.f32 %v3911_v26, %v634_v23  ;;  %v3931_v54 = vmax.f32 %v3913_v1, %v589_v57  ;;  %v2567_v3 = vpop.eup %2566  ;;  %4708 = vst [vmem:[#allocation111_spill] sm:$0xff] %v3935_v27  ;;  %4712 = vst [vmem:[#allocation113_spill] sm:$0xff] %v3955_v47  ;;  %v4713_v23 = vld [vmem:[#allocation60_spill] sm:$0xff]  ;;  %v1681_v1 = vmul.f32 1.442695, %v1557_v4 }
 0x201   :  { %v1754_v11 = vadd.f32 %v2567_v3, %v1753_v12  ;;  %v2569_v12 = vpop.eup %2568  ;;  %v1559_v26 = vsub.f32 %v4713_v23, %v3595_v24 }
 0x202   :  { %4706 = vst [vmem:[#allocation52_spill] sm:$0xff] %v3928_v32  ;;  %1379 = vst.msk [vmem:[#allocation2 + $0xd8] sm:$0xff] %vm442_vm1, %v3928_v32  ;;  %976 = vperm.xlu0 %2456, %v3928_v32   ;;  %881 = vperm.xlu1 %2457, %v3841_v8   ;;  %v2571_v3 = vpop.eup %2570  ;;  %v3957_v32 = vld [vmem:[#allocation2 + $0x70] sm:$0xff]  ;;  %v1713_v56 = vadd.f32 %v2569_v12, %v1712_v62  ;;  %2582 = vpow2.f32 %v1681_v1 }
 0x203   :  { %1364 = vst.msk [vmem:[#allocation2 + $0x60] sm:$0xff] %vm442_vm1, %v3931_v54  ;;  %v592_v30 = vpop.xlane.xlu1 %591  ;;  %v637_v61 = vpop.xlane.xlu0 %636  ;;  %v1755_v8 = vadd.f32 %v2571_v3, %v1754_v11 }
 0x204   :  { %v3950_v57 = vmax.f32 %v3933_v33, %v592_v30  ;;  %v3953_v37 = vmax.f32 %v3935_v27, %v637_v61  ;;  %v2573_v53 = vpop.eup %2572  ;;  %v3977_v30 = vld [vmem:[#allocation2 + $0x78] sm:$0xff]  ;;  %v1685_v61 = vmul.f32 1.442695, %v1559_v26 }
 0x205   :  { %v1714_v4 = vadd.f32 %v2573_v53, %v1713_v56  ;;  %v2575_v62 = vpop.eup %2574 }
 0x206   :  { %4710 = vst [vmem:[#allocation56_spill] sm:$0xff] %v3950_v57  ;;  %4711 = vst [vmem:[#allocation112_spill] sm:$0xff] %v3953_v37  ;;  %906 = vperm.xlu0 %2456, %v3950_v57   ;;  %961 = vperm.xlu1 %2457, %v3861_v44   ;;  %v2577_v3 = vpop.eup %2576  ;;  %2584 = vpow2.f32 %v1685_v61 }
 0x207   :  { %1365 = vst.msk [vmem:[#allocation2 + $0x68] sm:$0xff] %vm442_vm1, %v3950_v57  ;;  %1380 = vst.msk [vmem:[#allocation2 + $0xe0] sm:$0xff] %vm442_vm1, %v3953_v37  ;;  %v640_v24 = vpop.xlane.xlu1 %639  ;;  %v595_v52 = vpop.xlane.xlu0 %594  ;;  %v3979_v57 = vld [vmem:[#allocation2 + $0xf0] sm:$0xff]  ;;  %v1715_v27 = vadd.f32 %v2575_v62, %v1714_v4  ;;  %v1756_v33 = vadd.f32 %v2577_v3, %v1755_v8 }
 0x208   :  { %v3972_v11 = vmax.f32 %v3955_v47, %v640_v24  ;;  %v3975_v12 = vmax.f32 %v3957_v32, %v595_v52  ;;  %4715 = vst [vmem:[#allocation114_spill] sm:$0xff] %v3979_v57  ;;  %v2579_v1 = vpop.eup %2578  ;;  %v3996_v52 = vld [vmem:[#allocation2 + $0xf8] sm:$0xff] }
 0x209   :  { %4717 = vst [vmem:[#allocation116_spill] sm:$0xff] %v3996_v52  ;;  %v1716_v4 = vadd.f32 %v2579_v1, %v1715_v27  ;;  %v1757_v62 = vrot.slane %v1756_v33, 4 }
 0x20a   :  { %4714 = vst [vmem:[#allocation60_spill] sm:$0xff] %v3972_v11  ;;  %1381 = vst.msk [vmem:[#allocation2 + $0xe8] sm:$0xff] %vm442_vm1, %v3972_v11  ;;  %891 = vperm.xlu1 %2457, %v3889_v45  }
 0x20b   :  { %1366 = vst.msk [vmem:[#allocation2 + $0x70] sm:$0xff] %vm442_vm1, %v3975_v12  ;;  %v598_v56 = vpop.xlane.xlu1 %597  ;;  %v643_v24 = vpop.xlane.xlu0 %642  ;;  %v1758_v44 = vadd.f32 %v1757_v62, %v1756_v33  ;;  %v4719_v33 = vsub.f32 %v3528_v34, %v3534_v17 }
 0x20c   :  { %v3991_v26 = vmax.f32 %v3977_v30, %v598_v56  ;;  %v3994_v8 = vmax.f32 %v3979_v57, %v643_v24  ;;  %v2581_v24 = vpop.eup %2580 }
 0x20d   :  { %v1717_v1 = vadd.f32 %v2581_v24, %v1716_v4  ;;  %v2583_v56 = vpop.eup %2582  ;;  %v1759_v57 = vrot.slane %v1758_v44, 2  ;;  %v1481_v62 = vmul.f32 1.442695, %v4719_v33 }
 0x20e   :  { %4716 = vst [vmem:[#allocation115_spill] sm:$0xff] %v3991_v26  ;;  %1367 = vst.msk [vmem:[#allocation2 + $0x78] sm:$0xff] %vm442_vm1, %v3991_v26  ;;  %971 = vperm.xlu1 %2457, %v3909_v10   ;;  %916 = vperm.xlu0 %2456, %v3991_v26  }
 0x20f   :  { %1382 = vst.msk [vmem:[#allocation2 + $0xf0] sm:$0xff] %vm442_vm1, %v3994_v8  ;;  %v646_v61 = vpop.xlane.xlu1 %645  ;;  %v1718_v53 = vadd.f32 %v2583_v56, %v1717_v1  ;;  %v1760_v24 = vadd.f32 %v1759_v57, %v1758_v44  ;;  %2586 = vpow2.f32 %v1481_v62 }
 0x210   :  { %v4009_v27 = vmax.f32 %v3996_v52, %v646_v61  ;;  %v2585_v61 = vpop.eup %2584 }
 0x211   :  { %v1719_v4 = vadd.f32 %v2585_v61, %v1718_v53  ;;  %v1484_v61 = vld [vmem:[#allocation5] sm:$0x3] }
 0x212   :  { %4718 = vst [vmem:[#allocation117_spill] sm:$0xff] %v4009_v27  ;;  %901 = vperm.xlu1 %2457, %v3931_v54   ;;  %986 = vperm.xlu0 %2456, %v3972_v11   ;;  %1383 = vst.msk [vmem:[#allocation2 + $0xf8] sm:$0xff] %vm442_vm1, %v4009_v27  ;;  %v1761_v11 = vrot.slane %v1760_v24, 1 }
 0x213   :  { %v1720_v3 = vrot.slane %v1719_v4, 4 }
 0x214   :  { %v1762_v47 = vadd.f32 %v1761_v11, %v1760_v24 }
 0x215   :  { %v1721_v52 = vadd.f32 %v1720_v3, %v1719_v4 }
 0x216   :  { %981 = vperm.xlu1 %2457, %v3953_v37   ;;  %996 = vperm.xlu0 %2456, %v4009_v27  }
 0x217   :  { %v1722_v56 = vrot.slane %v1721_v52, 2 }
 0x219   :  { %v1723_v1 = vadd.f32 %v1722_v56, %v1721_v52  ;;  %v2587_v53 = vpop.eup %2586 }
 0x21a   :  { %911 = vperm.xlu1 %2457, %v3975_v12   ;;  %v1485_v17 = vmul.f32 %v2587_v53, %v1484_v61 }
 0x21b   :  { %v1724_v37 = vrot.slane %v1723_v1, 1 }
 0x21d   :  { %v1725_v27 = vadd.f32 %v1724_v37, %v1723_v1 }
 0x21e   :  { %991 = vperm.xlu1 %2457, %v3994_v8  }
 0x21f   :  { %v1765_v26 = vcombine.low %v1725_v27, %v1762_v47 }
 0x221   :  { %v1772_v34 = vrot.slane %v1765_v26, %v3523_v58 }
 0x223   :  { %v1779_v44 = vrot.slane %v1772_v34, %v3523_v58 }
 0x225   :  { %v1781_v57 = vadd.f32 %v1779_v44, %v1485_v17 }
 0x227   :  { %1786 = vst.msk [vmem:[#allocation5] sm:$0x3] %vm3082_vm0, %v1781_v57 }
 0x251   :  { %v842_v3 = vpop.permute.xlu0 %841 }
 0x252   :  { %v999_v4 = vsub.f32 %v3094_v36, %v842_v3  ;;  %v1000_v52 = vsub.f32 %v3100_v40, %v842_v3 }
 0x254   :  { %v1063_v11 = vmul.f32 1.442695, %v999_v4  ;;  %v1065_v33 = vmul.f32 1.442695, %v1000_v52 }
 0x255   :  { %v927_v37 = vpop.permute.xlu0 %926  ;;  %v922_v47 = vpop.permute.xlu1 %921 }
 0x256   :  { %2588 = vpow2.f32 %v1063_v11  ;;  %v1033_v27 = vsub.f32 %v4660_v60, %v927_v37  ;;  %v1034_v26 = vsub.f32 %v3113_v49, %v927_v37  ;;  %v1031_v58 = vsub.f32 %v4655_v35, %v922_v47 }
 0x257   :  { %2590 = vpow2.f32 %v1065_v33  ;;  %v1032_v31 = vsub.f32 %v3103_v41, %v922_v47 }
 0x258   :  { %v1131_v62 = vmul.f32 1.442695, %v1033_v27  ;;  %v1133_v24 = vmul.f32 1.442695, %v1034_v26  ;;  %v1127_v56 = vmul.f32 1.442695, %v1031_v58 }
 0x259   :  { %v1129_v36 = vmul.f32 1.442695, %v1032_v31  ;;  %v847_v1 = vpop.permute.xlu1 %846 }
 0x25a   :  { %2592 = vpow2.f32 %v1131_v62  ;;  %v1001_v40 = vsub.f32 %v3116_v50, %v847_v1  ;;  %v1002_v53 = vsub.f32 %v3119_v51, %v847_v1 }
 0x25b   :  { %2594 = vpow2.f32 %v1133_v24 }
 0x25c   :  { %2596 = vpow2.f32 %v1127_v56  ;;  %v1067_v60 = vmul.f32 1.442695, %v1001_v40  ;;  %v1069_v61 = vmul.f32 1.442695, %v1002_v53 }
 0x25d   :  { %2598 = vpow2.f32 %v1129_v36  ;;  %v852_v49 = vpop.permute.xlu1 %851 }
 0x25e   :  { %2600 = vpow2.f32 %v1067_v60  ;;  %v1003_v35 = vsub.f32 %v3156_v55, %v852_v49  ;;  %v1004_v41 = vsub.f32 %v3226_v59, %v852_v49 }
 0x25f   :  { %2602 = vpow2.f32 %v1069_v61 }
 0x260   :  { %v2589_v34 = vpop.eup %2588  ;;  %v1071_v17 = vmul.f32 1.442695, %v1003_v35  ;;  %v1073_v44 = vmul.f32 1.442695, %v1004_v41 }
 0x261   :  { %v2591_v57 = vpop.eup %2590  ;;  %v932_v3 = vpop.permute.xlu1 %931 }
 0x262   :  { %2604 = vpow2.f32 %v1071_v17  ;;  %v1035_v50 = vsub.f32 %v4664_v16, %v932_v3  ;;  %v937_v51 = vpop.permute.xlu0 %936  ;;  %v1036_v4 = vsub.f32 %v3239_v0, %v932_v3  ;;  %v1191_v52 = vadd.f32 %v2591_v57, %v2589_v34 }
 0x263   :  { %2606 = vpow2.f32 %v1073_v44  ;;  %v1037_v27 = vsub.f32 %v4668_v28, %v937_v51  ;;  %v1038_v16 = vsub.f32 %v3253_v9, %v937_v51 }
 0x264   :  { %v2593_v11 = vpop.eup %2592  ;;  %v1135_v33 = vmul.f32 1.442695, %v1035_v50  ;;  %v1137_v55 = vmul.f32 1.442695, %v1036_v4  ;;  %1192 = vadd.xlane.f32.xlu1 %v1191_v52 }
 0x265   :  { %v2595_v37 = vpop.eup %2594  ;;  %v857_v59 = vpop.permute.xlu1 %856  ;;  %v1139_v40 = vmul.f32 1.442695, %v1037_v27  ;;  %v1141_v53 = vmul.f32 1.442695, %v1038_v16 }
 0x266   :  { %v2597_v47 = vpop.eup %2596  ;;  %v1005_v26 = vsub.f32 %v3242_v2, %v857_v59  ;;  %v1006_v58 = vsub.f32 %v3245_v5, %v857_v59  ;;  %2608 = vpow2.f32 %v1135_v33  ;;  %v1242_v61 = vadd.f32 %v2595_v37, %v2593_v11 }
 0x267   :  { %v2599_v31 = vpop.eup %2598  ;;  %2610 = vpow2.f32 %v1137_v55 }
 0x268   :  { %v2601_v62 = vpop.eup %2600  ;;  %v1075_v0 = vmul.f32 1.442695, %v1005_v26  ;;  %v1077_v24 = vmul.f32 1.442695, %v1006_v58  ;;  %v1239_v56 = vadd.f32 %v2599_v31, %v2597_v47 }
 0x269   :  { %v2603_v36 = vpop.eup %2602  ;;  %v862_v1 = vpop.permute.xlu1 %861 }
 0x26a   :  { %2612 = vpow2.f32 %v1075_v0  ;;  %1240 = vadd.xlane.f32.xlu1 %v1239_v56  ;;  %v1007_v28 = vsub.f32 %v3258_v14, %v862_v1  ;;  %v1008_v2 = vsub.f32 %v3261_v18, %v862_v1  ;;  %v1194_v5 = vadd.f32 %v2603_v36, %v2601_v62  ;;  %v947_v4 = vpop.permute.xlu0 %946  ;;  %v4720_v36 = vld [vmem:[#allocation25_spill] sm:$0xff] }
 0x26b   :  { %2614 = vpow2.f32 %v1077_v24 }
 0x26c   :  { %v2605_v60 = vpop.eup %2604  ;;  %v1079_v9 = vmul.f32 1.442695, %v1007_v28  ;;  %v1081_v35 = vmul.f32 1.442695, %v1008_v2  ;;  %1195 = vadd.xlane.f32.xlu0 %v1194_v5  ;;  %2616 = vpow2.f32 %v1139_v40  ;;  %v4721_v2 = vld [vmem:[#allocation26_spill] sm:$0xff] }
 0x26d   :  { %v2607_v49 = vpop.eup %2606  ;;  %v942_v41 = vpop.permute.xlu1 %941  ;;  %2618 = vpow2.f32 %v1141_v53 }
 0x26e   :  { %1243 = vadd.xlane.f32.xlu1 %v1242_v61  ;;  %v1197_v34 = vadd.f32 %v2607_v49, %v2605_v60  ;;  %2620 = vpow2.f32 %v1079_v9  ;;  %v1039_v44 = vsub.f32 %v4669_v46, %v942_v41  ;;  %v1040_v3 = vsub.f32 %v3269_v19, %v942_v41  ;;  %v4722_v61 = vld [vmem:[#allocation27_spill] sm:$0xff] }
 0x26f   :  { %2622 = vpow2.f32 %v1081_v35  ;;  %v1041_v46 = vsub.f32 %v4673_v43, %v947_v4 }
 0x270   :  { %1198 = vadd.xlane.f32.xlu0 %v1197_v34  ;;  %v2609_v17 = vpop.eup %2608  ;;  %v1143_v59 = vmul.f32 1.442695, %v1039_v44  ;;  %v1145_v27 = vmul.f32 1.442695, %v1040_v3  ;;  %v4723_v34 = vld [vmem:[#allocation28_spill] sm:$0xff] }
 0x271   :  { %v867_v14 = vpop.permute.xlu1 %866  ;;  %v2611_v57 = vpop.eup %2610  ;;  %v1147_v56 = vmul.f32 1.442695, %v1041_v46  ;;  %v4726_v46 = vld [vmem:[#allocation31_spill] sm:$0xff] }
 0x272   :  { %v1009_v18 = vsub.f32 %v3274_v22, %v867_v14  ;;  %v1010_v50 = vsub.f32 %v3277_v25, %v867_v14  ;;  %v1245_v11 = vadd.f32 %v2611_v57, %v2609_v17  ;;  %v1042_v25 = vsub.f32 %v3285_v29, %v947_v4  ;;  %v957_v24 = vpop.permute.xlu0 %956 }
 0x273   :  { %v1045_v14 = vsub.f32 %v4723_v34, %v957_v24 }
 0x274   :  { %v2613_v51 = vpop.eup %2612  ;;  %v1083_v52 = vmul.f32 1.442695, %v1009_v18  ;;  %v1085_v37 = vmul.f32 1.442695, %v1010_v50  ;;  %1246 = vadd.xlane.f32.xlu1 %v1245_v11  ;;  %v4724_v18 = vld [vmem:[#allocation29_spill] sm:$0xff] }
 0x275   :  { %v2615_v33 = vpop.eup %2614  ;;  %v872_v55 = vpop.permute.xlu1 %871  ;;  %v1046_v57 = vsub.f32 %v4724_v18, %v957_v24  ;;  %v2847_v24 = vld [vmem:[#allocation8 + $0x70] sm:$0xff] }
 0x276   :  { %v1011_v47 = vsub.f32 %v3290_v39, %v872_v55  ;;  %v1012_v22 = vsub.f32 %v3293_v42, %v872_v55  ;;  %v1200_v26 = vadd.f32 %v2615_v33, %v2613_v51  ;;  %v2617_v19 = vpop.eup %2616  ;;  %2624 = vpow2.f32 %v1083_v52  ;;  %v887_v60 = vpop.permute.xlu0 %886  ;;  %v4725_v55 = vld [vmem:[#allocation30_spill] sm:$0xff] }
 0x277   :  { %v2619_v31 = vpop.eup %2618  ;;  %2626 = vpow2.f32 %v1085_v37  ;;  %v1149_v42 = vmul.f32 1.442695, %v1042_v25  ;;  %v1155_v37 = vmul.f32 1.442695, %v1045_v14  ;;  %v4731_v18 = vld [vmem:[#allocation42_spill] sm:$0xff] }
 0x278   :  { %v1087_v58 = vmul.f32 1.442695, %v1011_v47  ;;  %v1089_v16 = vmul.f32 1.442695, %v1012_v22  ;;  %v2621_v0 = vpop.eup %2620  ;;  %2628 = vpow2.f32 %v1143_v59  ;;  %1201 = vadd.xlane.f32.xlu1 %v1200_v26  ;;  %v1248_v29 = vadd.f32 %v2619_v31, %v2617_v19  ;;  %v4727_v31 = vld [vmem:[#allocation34_spill] sm:$0xff] }
 0x279   :  { %v952_v62 = vpop.permute.xlu1 %951  ;;  %v2623_v39 = vpop.eup %2622  ;;  %2630 = vpow2.f32 %v1145_v27  ;;  %v1157_v47 = vmul.f32 1.442695, %v1046_v57 }
 0x27a   :  { %v1043_v43 = vsub.f32 %v4677_v63, %v952_v62  ;;  %2632 = vpow2.f32 %v1087_v58  ;;  %v1044_v1 = vsub.f32 %v4720_v36, %v952_v62  ;;  %v1203_v40 = vadd.f32 %v2623_v39, %v2621_v0  ;;  %v4062_v11 = vpop.permute.xlu0 %966  ;;  %v2846_v0 = vld [vmem:[#allocation11 + $0x70] sm:$0xff] }
 0x27b   :  { %2634 = vpow2.f32 %v1089_v16  ;;  %v1017_v16 = vsub.f32 %v4727_v31, %v887_v60  ;;  %v1806_v39 = vmul.f32 %v2847_v24, %v2846_v0  ;;  %v4734_v0 = vld [vmem:[#allocation47_spill] sm:$0xff] }
 0x27c   :  { %1249 = vadd.xlane.f32.xlu1 %v1248_v29  ;;  %2636 = vpow2.f32 %v1147_v56  ;;  %v1151_v53 = vmul.f32 1.442695, %v1043_v43  ;;  %1204 = vadd.xlane.f32.xlu0 %v1203_v40  ;;  %v1153_v9 = vmul.f32 1.442695, %v1044_v1  ;;  %v4728_v56 = vld [vmem:[#allocation35_spill] sm:$0xff] }
 0x27d   :  { %v877_v28 = vpop.permute.xlu1 %876  ;;  %2638 = vpow2.f32 %v1149_v42  ;;  %v1018_v43 = vsub.f32 %v4728_v56, %v887_v60 }
 0x27e   :  { %v1013_v5 = vsub.f32 %v4721_v2, %v877_v28  ;;  %v1014_v49 = vsub.f32 %v4722_v61, %v877_v28  ;;  %2640 = vpow2.f32 %v1151_v53  ;;  %v897_v42 = vpop.permute.xlu0 %896  ;;  %v1099_v53 = vmul.f32 1.442695, %v1017_v16  ;;  %v4729_v2 = vld [vmem:[#allocation38_spill] sm:$0xff]  ;;  %v2849_v61 = vld [vmem:[#allocation8 + $0x78] sm:$0xff] }
 0x27f   :  { %2642 = vpow2.f32 %v1153_v9  ;;  %v2848_v9 = vld [vmem:[#allocation11 + $0x78] sm:$0xff]  ;;  %v1021_v57 = vsub.f32 %v4731_v18, %v897_v42 }
 0x280   :  { %v2625_v35 = vpop.eup %2624  ;;  %v1091_v17 = vmul.f32 1.442695, %v1013_v5  ;;  %v1093_v3 = vmul.f32 1.442695, %v1014_v49  ;;  %v1807_v49 = vmul.f32 %v2849_v61, %v2848_v9 }
 0x281   :  { %v882_v63 = vpop.permute.xlu1 %881  ;;  %v2627_v41 = vpop.eup %2626 }
 0x282   :  { %v2629_v44 = vpop.eup %2628  ;;  %v1206_v51 = vadd.f32 %v2627_v41, %v2625_v35  ;;  %2644 = vpow2.f32 %v1091_v17  ;;  %v1015_v59 = vsub.f32 %v4725_v55, %v882_v63  ;;  %v1016_v27 = vsub.f32 %v4726_v46, %v882_v63  ;;  %v4730_v35 = vld [vmem:[#allocation39_spill] sm:$0xff] }
 0x283   :  { %v2631_v50 = vpop.eup %2630  ;;  %2646 = vpow2.f32 %v1093_v3  ;;  %v1101_v63 = vmul.f32 1.442695, %v1018_v43 }
 0x284   :  { %v2633_v52 = vpop.eup %2632  ;;  %1207 = vadd.xlane.f32.xlu1 %v1206_v51  ;;  %v1251_v26 = vadd.f32 %v2631_v50, %v2629_v44  ;;  %2648 = vpow2.f32 %v1155_v37  ;;  %v1095_v62 = vmul.f32 1.442695, %v1015_v59  ;;  %v1097_v36 = vmul.f32 1.442695, %v1016_v27  ;;  %v4072_v44 = vpop.permute.xlu0 %976  ;;  %v2850_v50 = vld [vmem:[#allocation11 + $0x80] sm:$0xff] }
 0x285   :  { %v4060_v4 = vpop.permute.xlu1 %961  ;;  %v2635_v33 = vpop.eup %2634  ;;  %2650 = vpow2.f32 %v1157_v47  ;;  %v2851_v51 = vld [vmem:[#allocation8 + $0x80] sm:$0xff] }
 0x286   :  { %v2637_v22 = vpop.eup %2636  ;;  %v1209_v19 = vadd.f32 %v2635_v33, %v2633_v52  ;;  %2652 = vpow2.f32 %v1095_v62  ;;  %v1808_v52 = vmul.f32 %v2851_v51, %v2850_v50  ;;  %v4732_v33 = vld [vmem:[#allocation43_spill] sm:$0xff] }
 0x287   :  { %v2639_v58 = vpop.eup %2638  ;;  %2654 = vpow2.f32 %v1097_v36  ;;  %v1022_v37 = vsub.f32 %v4732_v33, %v897_v42  ;;  %v4735_v42 = vld [vmem:[#allocation50_spill] sm:$0xff]  ;;  %v4738_v50 = vld [vmem:[#allocation55_spill] sm:$0xff] }
 0x288   :  { %1252 = vadd.xlane.f32.xlu1 %v1251_v26  ;;  %1210 = vadd.xlane.f32.xlu0 %v1209_v19  ;;  %v2641_v1 = vpop.eup %2640  ;;  %v1254_v29 = vadd.f32 %v2639_v58, %v2637_v22  ;;  %2656 = vpow2.f32 %v1099_v53  ;;  %v1107_v22 = vmul.f32 1.442695, %v1021_v57  ;;  %v4733_v26 = vld [vmem:[#allocation46_spill] sm:$0xff]  ;;  %v907_v62 = vpop.permute.xlu0 %906 }
 0x289   :  { %v892_v25 = vpop.permute.xlu1 %891  ;;  %v2643_v28 = vpop.eup %2642  ;;  %2658 = vpow2.f32 %v1101_v63  ;;  %v2853_v58 = vld [vmem:[#allocation8 + $0x88] sm:$0xff]  ;;  %v1109_v16 = vmul.f32 1.442695, %v1022_v37  ;;  %v1025_v36 = vsub.f32 %v4735_v42, %v907_v62 }
 0x28a   :  { %v1019_v5 = vsub.f32 %v4729_v2, %v892_v25  ;;  %v1020_v60 = vsub.f32 %v4730_v35, %v892_v25  ;;  %v1257_v34 = vadd.f32 %v2643_v28, %v2641_v1  ;;  %v2852_v25 = vld [vmem:[#allocation11 + $0x88] sm:$0xff]  ;;  %v2855_v28 = vld [vmem:[#allocation8 + $0x90] sm:$0xff] }
 0x28b   :  { %v1809_v31 = vmul.f32 %v2853_v58, %v2852_v25  ;;  %v4736_v2 = vld [vmem:[#allocation51_spill] sm:$0xff]  ;;  %v4741_v42 = vld [vmem:[#allocation33_spill] sm:$0xff] }
 0x28c   :  { %1255 = vadd.xlane.f32.xlu1 %v1254_v29  ;;  %1852 = vadd.xlane.f32.xlu0 %v1806_v39  ;;  %v2645_v41 = vpop.eup %2644  ;;  %v1103_v3 = vmul.f32 1.442695, %v1019_v5  ;;  %v1105_v55 = vmul.f32 1.442695, %v1020_v60  ;;  %v2854_v29 = vld [vmem:[#allocation11 + $0x90] sm:$0xff]  ;;  %v1026_v5 = vsub.f32 %v4736_v2, %v907_v62  ;;  %v1049_v2 = vsub.f32 %v4690_v13, %v4062_v11 }
 0x28d   :  { %v4068_v40 = vpop.permute.xlu1 %971  ;;  %v2647_v17 = vpop.eup %2646  ;;  %v1810_v53 = vmul.f32 %v2855_v28, %v2854_v29  ;;  %v1115_v60 = vmul.f32 1.442695, %v1025_v36  ;;  %v1048_v36 = vsub.f32 %v4741_v42, %v4060_v4 }
 0x28e   :  { %v2649_v59 = vpop.eup %2648  ;;  %v1212_v47 = vadd.f32 %v2647_v17, %v2645_v41  ;;  %2660 = vpow2.f32 %v1103_v3  ;;  %v4737_v41 = vld [vmem:[#allocation54_spill] sm:$0xff]  ;;  %v2857_v17 = vld [vmem:[#allocation8 + $0x98] sm:$0xff]  ;;  %v1117_v57 = vmul.f32 1.442695, %v1026_v5  ;;  %v917_v3 = vpop.permute.xlu0 %916  ;;  %v1051_v13 = vsub.f32 %v4693_v20, %v4068_v40  ;;  %v2866_v20 = vld [vmem:[#allocation11 + $0xc0] sm:$0xff] }
 0x28f   :  { %v2651_v46 = vpop.eup %2650  ;;  %2662 = vpow2.f32 %v1105_v55  ;;  %v4739_v55 = vld [vmem:[#allocation58_spill] sm:$0xff] }
 0x290   :  { %1854 = vadd.xlane.f32.xlu0 %v1807_v49  ;;  %1258 = vadd.xlane.f32.xlu1 %v1257_v34  ;;  %v2653_v39 = vpop.eup %2652  ;;  %v1260_v56 = vadd.f32 %v2651_v46, %v2649_v59  ;;  %2664 = vpow2.f32 %v1107_v22  ;;  %v1029_v59 = vsub.f32 %v4739_v55, %v917_v3  ;;  %v2858_v46 = vld [vmem:[#allocation11 + $0xa0] sm:$0xff]  ;;  %v1167_v55 = vmul.f32 1.442695, %v1051_v13 }
 0x291   :  { %v902_v14 = vpop.permute.xlu1 %901  ;;  %v2655_v43 = vpop.eup %2654  ;;  %2666 = vpow2.f32 %v1109_v16  ;;  %v2859_v22 = vld [vmem:[#allocation8 + $0xa0] sm:$0xff] }
 0x292   :  { %v1023_v19 = vsub.f32 %v4733_v26, %v902_v14  ;;  %v1024_v24 = vsub.f32 %v4734_v0, %v902_v14  ;;  %v2657_v49 = vpop.eup %2656  ;;  %v1215_v63 = vadd.f32 %v2655_v43, %v2653_v39  ;;  %v2856_v14 = vld [vmem:[#allocation11 + $0x98] sm:$0xff]  ;;  %v1812_v26 = vmul.f32 %v2859_v22, %v2858_v46  ;;  %v2860_v39 = vld [vmem:[#allocation11 + $0xa8] sm:$0xff] }
 0x293   :  { %v2659_v35 = vpop.eup %2658  ;;  %v1811_v18 = vmul.f32 %v2857_v17, %v2856_v14  ;;  %v1047_v0 = vsub.f32 %v4684_v38, %v4060_v4  ;;  %v2862_v38 = vld [vmem:[#allocation11 + $0xb0] sm:$0xff]  ;;  %v2864_v14 = vld [vmem:[#allocation11 + $0xb8] sm:$0xff]  ;;  %v4745_v46 = vld [vmem:[#allocation45_spill] sm:$0xff] }
 0x294   :  { %1856 = vadd.xlane.f32.xlu0 %v1808_v52  ;;  %1213 = vadd.xlane.f32.xlu1 %v1212_v47  ;;  %v1111_v1 = vmul.f32 1.442695, %v1023_v19  ;;  %v1113_v9 = vmul.f32 1.442695, %v1024_v24  ;;  %v1218_v33 = vadd.f32 %v2659_v35, %v2657_v49  ;;  %v4740_v19 = vld [vmem:[#allocation59_spill] sm:$0xff]  ;;  %v4742_v49 = vld [vmem:[#allocation37_spill] sm:$0xff]  ;;  %v1054_v22 = vsub.f32 %v4745_v46, %v4072_v44 }
 0x295   :  { %v4076_v27 = vpop.permute.xlu1 %981  ;;  %v1030_v25 = vsub.f32 %v4740_v19, %v917_v3  ;;  %v1123_v24 = vmul.f32 1.442695, %v1029_v59  ;;  %v1159_v5 = vmul.f32 1.442695, %v1047_v0  ;;  %v1161_v35 = vmul.f32 1.442695, %v1048_v36 }
 0x296   :  { %2668 = vpow2.f32 %v1111_v1  ;;  %v2865_v17 = vld [vmem:[#allocation8 + $0xb8] sm:$0xff]  ;;  %v4743_v3 = vld [vmem:[#allocation41_spill] sm:$0xff] }
 0x297   :  { %2670 = vpow2.f32 %v1113_v9  ;;  %v1125_v1 = vmul.f32 1.442695, %v1030_v25  ;;  %v2863_v9 = vld [vmem:[#allocation8 + $0xb0] sm:$0xff]  ;;  %v2867_v59 = vld [vmem:[#allocation8 + $0xc0] sm:$0xff] }
 0x298   :  { %1858 = vadd.xlane.f32.xlu0 %v1809_v31  ;;  %1261 = vadd.xlane.f32.xlu1 %v1260_v56  ;;  %v2661_v52 = vpop.eup %2660  ;;  %2672 = vpow2.f32 %v1115_v60  ;;  %v2861_v56 = vld [vmem:[#allocation8 + $0xa8] sm:$0xff] }
 0x299   :  { %v912_v61 = vpop.permute.xlu1 %911  ;;  %v2663_v37 = vpop.eup %2662  ;;  %2674 = vpow2.f32 %v1117_v57  ;;  %v1813_v43 = vmul.f32 %v2861_v56, %v2860_v39  ;;  %v4746_v56 = vld [vmem:[#allocation49_spill] sm:$0xff] }
 0x29a   :  { %v1027_v34 = vsub.f32 %v4737_v41, %v912_v61  ;;  %v1028_v51 = vsub.f32 %v4738_v50, %v912_v61  ;;  %v2665_v31 = vpop.eup %2664  ;;  %v1221_v16 = vadd.f32 %v2663_v37, %v2661_v52  ;;  %v1814_v61 = vmul.f32 %v2863_v9, %v2862_v38  ;;  %v987_v39 = vpop.permute.xlu0 %986  ;;  %v4748_v13 = vld [vmem:[#allocation57_spill] sm:$0xff] }
 0x29b   :  { %v2667_v62 = vpop.eup %2666 }
 0x29c   :  { %1860 = vadd.xlane.f32.xlu0 %v1810_v53  ;;  %1216 = vadd.xlane.f32.xlu1 %v1215_v63  ;;  %v1119_v47 = vmul.f32 1.442695, %v1027_v34  ;;  %v1121_v58 = vmul.f32 1.442695, %v1028_v51  ;;  %v1224_v28 = vadd.f32 %v2667_v62, %v2665_v31  ;;  %v1050_v63 = vsub.f32 %v4742_v49, %v4062_v11  ;;  %v2869_v62 = vld [vmem:[#allocation8 + $0xc8] sm:$0xff] }
 0x29d   :  { %v1163_v34 = vmul.f32 1.442695, %v1049_v2  ;;  %v1052_v11 = vsub.f32 %v4743_v3, %v4068_v40  ;;  %v1055_v31 = vsub.f32 %v4701_v6, %v4076_v27  ;;  %v2870_v6 = vld [vmem:[#allocation11 + $0xd0] sm:$0xff]  ;;  %v4747_v2 = vld [vmem:[#allocation53_spill] sm:$0xff]  ;;  %v992_v9 = vpop.permute.xlu1 %991 }
 0x29e   :  { %2676 = vpow2.f32 %v1119_v47  ;;  %v1165_v57 = vmul.f32 1.442695, %v1050_v63  ;;  %v1816_v47 = vmul.f32 %v2867_v59, %v2866_v20 }
 0x29f   :  { %2678 = vpow2.f32 %v1121_v58 }
 0x2a0   :  { %1862 = vadd.xlane.f32.xlu0 %v1811_v18  ;;  %1219 = vadd.xlane.f32.xlu1 %v1218_v33  ;;  %v2669_v29 = vpop.eup %2668  ;;  %2680 = vpow2.f32 %v1123_v24  ;;  %v1815_v18 = vmul.f32 %v2865_v17, %v2864_v14  ;;  %v4744_v33 = vld [vmem:[#allocation44_spill] sm:$0xff]  ;;  %v1173_v24 = vmul.f32 1.442695, %v1054_v22  ;;  %v1060_v14 = vsub.f32 %v4748_v13, %v992_v9 }
 0x2a1   :  { %v2671_v53 = vpop.eup %2670  ;;  %2682 = vpow2.f32 %v1125_v1  ;;  %v1053_v37 = vsub.f32 %v4744_v33, %v4072_v44  ;;  %v1056_v44 = vsub.f32 %v4746_v56, %v4076_v27  ;;  %v1057_v1 = vsub.f32 %v4705_v7, %v987_v39  ;;  %v2872_v7 = vld [vmem:[#allocation11 + $0xe0] sm:$0xff]  ;;  %v2876_v56 = vld [vmem:[#allocation11 + $0xd8] sm:$0xff] }
 0x2a2   :  { %v2673_v4 = vpop.eup %2672  ;;  %v1227_v60 = vadd.f32 %v2671_v53, %v2669_v29  ;;  %2684 = vpow2.f32 %v1159_v5  ;;  %v1175_v29 = vmul.f32 1.442695, %v1055_v31  ;;  %v1058_v5 = vsub.f32 %v4747_v2, %v987_v39  ;;  %v2880_v2 = vld [vmem:[#allocation11 + $0xf8] sm:$0xff] }
 0x2a3   :  { %v2675_v41 = vpop.eup %2674  ;;  %2686 = vpow2.f32 %v1161_v35  ;;  %v1171_v58 = vmul.f32 1.442695, %v1053_v37  ;;  %v1177_v38 = vmul.f32 1.442695, %v1056_v44  ;;  %v1179_v63 = vmul.f32 1.442695, %v1057_v1 }
 0x2a4   :  { %1864 = vadd.xlane.f32.xlu0 %v1812_v26  ;;  %1222 = vadd.xlane.f32.xlu1 %v1221_v16  ;;  %v1230_v51 = vadd.f32 %v2675_v41, %v2673_v4  ;;  %2688 = vpow2.f32 %v1163_v34  ;;  %v1169_v26 = vmul.f32 1.442695, %v1052_v11  ;;  %v2868_v16 = vld [vmem:[#allocation11 + $0xc8] sm:$0xff]  ;;  %v1059_v35 = vsub.f32 %v4709_v15, %v992_v9  ;;  %v2873_v4 = vld [vmem:[#allocation8 + $0xe0] sm:$0xff]  ;;  %v997_v34 = vpop.permute.xlu0 %996  ;;  %v2874_v15 = vld [vmem:[#allocation11 + $0xf0] sm:$0xff] }
 0x2a5   :  { %2690 = vpow2.f32 %v1165_v57  ;;  %v1817_v0 = vmul.f32 %v2869_v62, %v2868_v16  ;;  %v1181_v41 = vmul.f32 1.442695, %v1058_v5  ;;  %v1061_v3 = vsub.f32 %v4713_v23, %v997_v34  ;;  %v2877_v44 = vld [vmem:[#allocation8 + $0xd8] sm:$0xff] }
 0x2a6   :  { %2692 = vpow2.f32 %v1167_v55  ;;  %v1183_v11 = vmul.f32 1.442695, %v1059_v35  ;;  %v1185_v37 = vmul.f32 1.442695, %v1060_v14  ;;  %v2881_v5 = vld [vmem:[#allocation8 + $0xf8] sm:$0xff]  ;;  %v4757_v35 = vld [vmem:[#allocation85_spill] sm:$0xff] }
 0x2a7   :  { %2694 = vpow2.f32 %v1169_v26  ;;  %v4753_v9 = vld [vmem:[#allocation80_spill] sm:$0xff] }
 0x2a8   :  { %1866 = vadd.xlane.f32.xlu0 %v1813_v43  ;;  %1225 = vadd.xlane.f32.xlu1 %v1224_v28  ;;  %v2677_v50 = vpop.eup %2676  ;;  %2696 = vpow2.f32 %v1171_v58  ;;  %v2871_v28 = vld [vmem:[#allocation8 + $0xd0] sm:$0xff]  ;;  %v4762_v14 = vld [vmem:[#allocation84_spill] sm:$0xff] }
 0x2a9   :  { %v2679_v52 = vpop.eup %2678  ;;  %v1818_v53 = vmul.f32 %v2871_v28, %v2870_v6  ;;  %2698 = vpow2.f32 %v1173_v24  ;;  %v4751_v6 = vld [vmem:[#allocation78_spill] sm:$0xff] }
 0x2aa   :  { %v2681_v19 = vpop.eup %2680  ;;  %v1233_v40 = vadd.f32 %v2679_v52, %v2677_v50  ;;  %2700 = vpow2.f32 %v1175_v29  ;;  %v2875_v50 = vld [vmem:[#allocation8 + $0xf0] sm:$0xff]  ;;  %v4749_v52 = vld [vmem:[#allocation61_spill] sm:$0xff]  ;;  %v4750_v29 = vld [vmem:[#allocation76_spill] sm:$0xff] }
 0x2ab   :  { %v2683_v25 = vpop.eup %2682  ;;  %2702 = vpow2.f32 %v1177_v38  ;;  %v1062_v33 = vsub.f32 %v4749_v52, %v997_v34  ;;  %v4752_v28 = vsub.f32 %v4750_v29, %v4751_v6  ;;  %v1823_v38 = vmul.f32 %v2881_v5, %v2880_v2 }
 0x2ac   :  { %1868 = vadd.xlane.f32.xlu0 %v1814_v61  ;;  %1228 = vadd.xlane.f32.xlu1 %v1227_v60  ;;  %v2685_v43 = vpop.eup %2684  ;;  %v1236_v42 = vadd.f32 %v2683_v25, %v2681_v19  ;;  %v1820_v60 = vmul.f32 %v2873_v4, %v2872_v7  ;;  %2704 = vpow2.f32 %v1179_v63  ;;  %v4756_v63 = vld [vmem:[#allocation83_spill] sm:$0xff] }
 0x2ad   :  { %v2687_v36 = vpop.eup %2686  ;;  %2706 = vpow2.f32 %v1181_v41  ;;  %v1189_v46 = vmul.f32 1.442695, %v1062_v33  ;;  %v4758_v7 = vsub.f32 %v4756_v63, %v4757_v35  ;;  %v4760_v41 = vld [vmem:[#allocation81_spill] sm:$0xff]  ;;  %v4777_v63 = vld [vmem:[#allocation20_spill] sm:$0xff] }
 0x2ae   :  { %v2689_v61 = vpop.eup %2688  ;;  %v1263_v49 = vadd.f32 %v2687_v36, %v2685_v43  ;;  %2708 = vpow2.f32 %v1183_v11  ;;  %v1819_v43 = vmul.f32 %v2877_v44, %v2876_v56  ;;  %v2879_v36 = vld [vmem:[#allocation8 + $0xe8] sm:$0xff]  ;;  %v775_v11 = vld [vmem:[#allocation3] sm:$0xff] }
 0x2af   :  { %v2691_v27 = vpop.eup %2690  ;;  %2710 = vpow2.f32 %v1185_v37  ;;  %v713_v4 = vmul.f32 1.442695, %v4758_v7  ;;  %v4778_v35 = vld [vmem:[#allocation21_spill] sm:$0xff] }
 0x2b0   :  { %1870 = vadd.xlane.f32.xlu0 %v1815_v18  ;;  %1231 = vadd.xlane.f32.xlu1 %v1230_v51  ;;  %v2693_v17 = vpop.eup %2692  ;;  %v1266_v18 = vadd.f32 %v2691_v27, %v2689_v61  ;;  %v1822_v51 = vmul.f32 %v2875_v50, %v2874_v15  ;;  %v4754_v61 = vld [vmem:[#allocation82_spill] sm:$0xff]  ;;  %v4765_v15 = vld [vmem:[#allocation88_spill] sm:$0xff]  ;;  %v4766_v50 = vld [vmem:[#allocation89_spill] sm:$0xff]  ;;  %v4779_v7 = vsub.f32 %v4777_v63, %v4778_v35 }
 0x2b1   :  { %v2695_v57 = vpop.eup %2694 }
 0x2b2   :  { %v2697_v55 = vpop.eup %2696  ;;  %v1269_v20 = vadd.f32 %v2695_v57, %v2693_v17  ;;  %v4763_v17 = vld [vmem:[#allocation86_spill] sm:$0xff] }
 0x2b3   :  { %v2699_v59 = vpop.eup %2698 }
 0x2b4   :  { %1872 = vadd.xlane.f32.xlu0 %v1816_v47  ;;  %1234 = vadd.xlane.f32.xlu1 %v1233_v40  ;;  %v1187_v47 = vmul.f32 1.442695, %v1061_v3  ;;  %v2701_v23 = vpop.eup %2700  ;;  %v1272_v22 = vadd.f32 %v2699_v59, %v2697_v55  ;;  %v791_v59 = vld [vmem:[#allocation3 + $0x80] sm:$0xff] }
 0x2b5   :  { %v2703_v26 = vpop.eup %2702 }
 0x2b6   :  { %2712 = vpow2.f32 %v1187_v47  ;;  %v2705_v19 = vpop.eup %2704  ;;  %v1275_v40 = vadd.f32 %v2703_v26, %v2701_v23  ;;  %v4768_v47 = vld [vmem:[#allocation87_spill] sm:$0xff] }
 0x2b7   :  { %2714 = vpow2.f32 %v1189_v46  ;;  %v2707_v25 = vpop.eup %2706  ;;  %v4769_v46 = vld [vmem:[#allocation18_spill] sm:$0xff] }
 0x2b8   :  { %1874 = vadd.xlane.f32.xlu0 %v1817_v0  ;;  %1237 = vadd.xlane.f32.xlu1 %v1236_v42  ;;  %v2709_v58 = vpop.eup %2708  ;;  %v1278_v31 = vadd.f32 %v2707_v25, %v2705_v19  ;;  %v2878_v42 = vld [vmem:[#allocation11 + $0xe8] sm:$0xff]  ;;  %v4770_v23 = vsub.f32 %v4768_v47, %v4769_v46  ;;  %v779_v47 = vld [vmem:[#allocation3 + $0x20] sm:$0xff] }
 0x2b9   :  { %v2711_v16 = vpop.eup %2710  ;;  %v1821_v1 = vmul.f32 %v2879_v36, %v2878_v42  ;;  %v4775_v42 = vld [vmem:[#allocation92_spill] sm:$0xff]  ;;  %v4786_v46 = vld [vmem:[#allocation94_spill] sm:$0xff] }
 0x2ba   :  { %v1281_v0 = vadd.f32 %v2711_v16, %v2709_v58 }
 0x2bc   :  { %1876 = vadd.xlane.f32.xlu0 %v1818_v53  ;;  %1264 = vadd.xlane.f32.xlu1 %v1263_v49  ;;  %v711_v53 = vmul.f32 1.442695, %v4752_v28  ;;  %v4755_v49 = vsub.f32 %v4753_v9, %v4754_v61  ;;  %v777_v28 = vld [vmem:[#allocation3 + $0x10] sm:$0xff] }
 0x2be   :  { %2716 = vpow2.f32 %v711_v53  ;;  %v743_v27 = vmul.f32 1.442695, %v4755_v49 }
 0x2c0   :  { %1267 = vadd.xlane.f32.xlu1 %v1266_v18  ;;  %1880 = vadd.xlane.f32.xlu0 %v1820_v60  ;;  %v2713_v62 = vpop.eup %2712  ;;  %v4759_v60 = vld [vmem:[#allocation79_spill] sm:$0xff]  ;;  %2718 = vpow2.f32 %v743_v27  ;;  %v4764_v18 = vsub.f32 %v4762_v14, %v4763_v17  ;;  %v4780_v17 = vld [vmem:[#allocation93_spill] sm:$0xff] }
 0x2c1   :  { %v2715_v24 = vpop.eup %2714  ;;  %v4761_v34 = vsub.f32 %v4759_v60, %v4760_v41  ;;  %2720 = vpow2.f32 %v713_v4  ;;  %v793_v27 = vld [vmem:[#allocation3 + $0x90] sm:$0xff]  ;;  %v721_v4 = vmul.f32 1.442695, %v4779_v7 }
 0x2c2   :  { %v1284_v39 = vadd.f32 %v2715_v24, %v2713_v62  ;;  %v715_v57 = vmul.f32 1.442695, %v4764_v18  ;;  %v4771_v62 = vld [vmem:[#allocation90_spill] sm:$0xff] }
 0x2c3   :  { %v745_v13 = vmul.f32 1.442695, %v4761_v34  ;;  %v4781_v18 = vld [vmem:[#allocation22_spill] sm:$0xff] }
 0x2c4   :  { %1270 = vadd.xlane.f32.xlu1 %v1269_v20  ;;  %1884 = vadd.xlane.f32.xlu0 %v1822_v51  ;;  %v4767_v51 = vsub.f32 %v4765_v15, %v4766_v50  ;;  %v4784_v15 = vld [vmem:[#allocation96_spill] sm:$0xff]  ;;  %v4797_v7 = vld [vmem:[#allocation98_spill] sm:$0xff] }
 0x2c5   :  { %2722 = vpow2.f32 %v745_v13  ;;  %v778_v13 = vld [vmem:[#allocation3 + $0x18] sm:$0xff] }
 0x2c6   :  { %2724 = vpow2.f32 %v715_v57  ;;  %v747_v52 = vmul.f32 1.442695, %v4767_v51  ;;  %v4782_v57 = vsub.f32 %v4780_v17, %v4781_v18 }
 0x2c8   :  { %1273 = vadd.xlane.f32.xlu1 %v1272_v22  ;;  %v2717_v3 = vpop.eup %2716  ;;  %v717_v22 = vmul.f32 1.442695, %v4770_v23  ;;  %2726 = vpow2.f32 %v747_v52  ;;  %v4787_v23 = vld [vmem:[#allocation95_spill] sm:$0xff] }
 0x2c9   :  { %v807_v33 = vmul.f32 %v2717_v3, %v775_v11  ;;  %v751_v3 = vmul.f32 1.442695, %v4782_v57  ;;  %v4783_v11 = vld [vmem:[#allocation23_spill] sm:$0xff]  ;;  %v796_v57 = vld [vmem:[#allocation3 + $0xa8] sm:$0xff] }
 0x2ca   :  { %v2719_v55 = vpop.eup %2718  ;;  %2728 = vpow2.f32 %v717_v22  ;;  %v4785_v50 = vsub.f32 %v4783_v11, %v4784_v15  ;;  %v4788_v22 = vsub.f32 %v4786_v46, %v4787_v23  ;;  %v4800_v11 = vld [vmem:[#allocation65_spill] sm:$0xff] }
 0x2cb   :  { %v2721_v26 = vpop.eup %2720  ;;  %v823_v19 = vmul.f32 %v2719_v55, %v791_v59  ;;  %v794_v55 = vld [vmem:[#allocation3 + $0x98] sm:$0xff] }
 0x2cc   :  { %1276 = vadd.xlane.f32.xlu1 %v1275_v40  ;;  %v776_v40 = vld [vmem:[#allocation3 + $0x8] sm:$0xff]  ;;  %v723_v51 = vmul.f32 1.442695, %v4785_v50 }
 0x2cd   :  { %v808_v56 = vmul.f32 %v2721_v26, %v776_v40  ;;  %v753_v26 = vmul.f32 1.442695, %v4788_v22  ;;  %v797_v22 = vld [vmem:[#allocation3 + $0xb0] sm:$0xff] }
 0x2cf   :  { %v2723_v25 = vpop.eup %2722 }
 0x2d0   :  { %1279 = vadd.xlane.f32.xlu1 %v1278_v31  ;;  %v792_v31 = vld [vmem:[#allocation3 + $0x88] sm:$0xff]  ;;  %v2725_v44 = vpop.eup %2724 }
 0x2d1   :  { %v824_v6 = vmul.f32 %v2723_v25, %v792_v31 }
 0x2d2   :  { %v2727_v61 = vpop.eup %2726 }
 0x2d3   :  { %v825_v60 = vmul.f32 %v2727_v61, %v793_v27 }
 0x2d4   :  { %1282 = vadd.xlane.f32.xlu1 %v1281_v0  ;;  %v4772_v0 = vld [vmem:[#allocation91_spill] sm:$0xff]  ;;  %v2729_v41 = vpop.eup %2728 }
 0x2d5   :  { %v4773_v24 = vsub.f32 %v4771_v62, %v4772_v0  ;;  %v810_v52 = vmul.f32 %v2729_v41, %v778_v13  ;;  %v4789_v62 = vld [vmem:[#allocation97_spill] sm:$0xff] }
 0x2d6   :  { %v4790_v0 = vsub.f32 %v4789_v62, %v3814_v21 }
 0x2d8   :  { %1285 = vadd.xlane.f32.xlu1 %v1284_v39  ;;  %v749_v39 = vmul.f32 1.442695, %v4773_v24  ;;  %v755_v24 = vmul.f32 1.442695, %v4790_v0 }
 0x2da   :  { %2730 = vpow2.f32 %v749_v39 }
 0x2dc   :  { %1878 = vadd.xlane.f32.xlu1 %v1819_v43  ;;  %v4774_v43 = vld [vmem:[#allocation19_spill] sm:$0xff] }
 0x2dd   :  { %v4776_v36 = vsub.f32 %v4774_v43, %v4775_v42  ;;  %v4792_v43 = vld [vmem:[#allocation62_spill] sm:$0xff] }
 0x2e0   :  { %1882 = vadd.xlane.f32.xlu1 %v1821_v1  ;;  %v719_v1 = vmul.f32 1.442695, %v4776_v36  ;;  %v4793_v36 = vld [vmem:[#allocation77_spill] sm:$0xff] }
 0x2e2   :  { %2732 = vpow2.f32 %v719_v1 }
 0x2e3   :  { %2734 = vpow2.f32 %v721_v4  ;;  %v4798_v4 = vld [vmem:[#allocation99_spill] sm:$0xff] }
 0x2e4   :  { %1886 = vadd.xlane.f32.xlu1 %v1823_v38  ;;  %v809_v38 = vmul.f32 %v2725_v44, %v777_v28  ;;  %2736 = vpow2.f32 %v751_v3  ;;  %v4791_v44 = vld [vmem:[#allocation17_spill] sm:$0xff] }
 0x2e5   :  { %2738 = vpow2.f32 %v723_v51  ;;  %v1889_v42 = vmul.f32 %v4792_v43, %v4791_v44  ;;  %v1888_v1 = vmul.f32 %v4793_v36, %v4791_v44  ;;  %v1891_v15 = vmul.f32 %v4800_v11, %v4791_v44  ;;  %v783_v11 = vld [vmem:[#allocation3 + $0x40] sm:$0xff] }
 0x2e6   :  { %2740 = vpow2.f32 %v753_v26 }
 0x2e7   :  { %2742 = vpow2.f32 %v755_v24  ;;  %v1922_v61 = vsel %vm442_vm1, %v1889_v42, 0.0  ;;  %v1921_v63 = vsel %vm442_vm1, %v1888_v1, 0.0  ;;  %v1926_v26 = vsel %vm442_vm1, %v1891_v15, 0.0  ;;  %v782_v42 = vld [vmem:[#allocation3 + $0x38] sm:$0xff] }
 0x2e8   :  { %v4808_v1 = vld [vmem:[#allocation67_spill] sm:$0xff] }
 0x2f1   :  { %v1193_v37 = vpop.xlane.xlu1 %1192 }
 0x2f2   :  { %v1287_v20 = vadd.f32 %v1193_v37, %v807_v33  ;;  %v2731_v33 = vpop.eup %2730 }
 0x2f4   :  { %1320 = vst.msk [vmem:[#allocation3] sm:$0xff] %vm442_vm1, %v1287_v20  ;;  %v2733_v20 = vpop.eup %2732 }
 0x2f5   :  { %v811_v40 = vmul.f32 %v2733_v20, %v779_v47  ;;  %v2735_v39 = vpop.eup %2734 }
 0x2f7   :  { %v1241_v58 = vpop.xlane.xlu1 %1240 }
 0x2f8   :  { %v1303_v16 = vadd.f32 %v1241_v58, %v823_v19  ;;  %v826_v19 = vmul.f32 %v2731_v33, %v794_v55  ;;  %v4802_v33 = vld [vmem:[#allocation101_spill] sm:$0xff] }
 0x2f9   :  { %v1196_v29 = vpop.xlane.xlu0 %1195 }
 0x2fa   :  { %1336 = vst.msk [vmem:[#allocation3 + $0x80] sm:$0xff] %vm442_vm1, %v1303_v16  ;;  %v1288_v53 = vadd.f32 %v1196_v29, %v808_v56  ;;  %v780_v56 = vld [vmem:[#allocation3 + $0x28] sm:$0xff]  ;;  %v4794_v29 = vld [vmem:[#allocation24_spill] sm:$0xff] }
 0x2fb   :  { %v1244_v2 = vpop.xlane.xlu1 %1243  ;;  %v812_v21 = vmul.f32 %v2735_v39, %v780_v56 }
 0x2fc   :  { %v1304_v5 = vadd.f32 %v1244_v2, %v824_v6  ;;  %1321 = vst.msk [vmem:[#allocation3 + $0x8] sm:$0xff] %vm442_vm1, %v1288_v53  ;;  %v4795_v6 = vsub.f32 %v4794_v29, %v3811_v48  ;;  %v2737_v53 = vpop.eup %2736  ;;  %v4799_v48 = vsub.f32 %v4797_v7, %v4798_v4  ;;  %v1893_v29 = vmul.f32 %v4808_v1, %v4791_v44  ;;  %v4812_v7 = vld [vmem:[#allocation106_spill] sm:$0xff]  ;;  %v4813_v4 = vld [vmem:[#allocation48_spill] sm:$0xff] }
 0x2fd   :  { %v1199_v9 = vpop.xlane.xlu0 %1198  ;;  %v2739_v2 = vpop.eup %2738 }
 0x2fe   :  { %1337 = vst.msk [vmem:[#allocation3 + $0x88] sm:$0xff] %vm442_vm1, %v1304_v5  ;;  %v1289_v49 = vadd.f32 %v1199_v9, %v809_v38  ;;  %v725_v28 = vmul.f32 1.442695, %v4795_v6  ;;  %v781_v38 = vld [vmem:[#allocation3 + $0x30] sm:$0xff]  ;;  %v795_v9 = vld [vmem:[#allocation3 + $0xa0] sm:$0xff]  ;;  %v2741_v13 = vpop.eup %2740 }
 0x2ff   :  { %v813_v41 = vmul.f32 %v2739_v2, %v781_v38  ;;  %v828_v20 = vmul.f32 %v2741_v13, %v796_v57 }
 0x300   :  { %1322 = vst.msk [vmem:[#allocation3 + $0x10] sm:$0xff] %vm442_vm1, %v1289_v49  ;;  %v4796_v49 = vld [vmem:[#allocation63_spill] sm:$0xff]  ;;  %2744 = vpow2.f32 %v725_v28  ;;  %v4809_v28 = vld [vmem:[#allocation104_spill] sm:$0xff] }
 0x301   :  { %v1247_v34 = vpop.xlane.xlu1 %1246  ;;  %v1890_v27 = vmul.f32 %v4796_v49, %v4791_v44  ;;  %v1930_v49 = vsel %vm442_vm1, %v1893_v29, 0.0 }
 0x302   :  { %v1305_v14 = vadd.f32 %v1247_v34, %v825_v60  ;;  %v757_v60 = vmul.f32 1.442695, %v4799_v48  ;;  %v827_v34 = vmul.f32 %v2737_v53, %v795_v9  ;;  %v4810_v53 = vsub.f32 %v4809_v28, %v3889_v45 }
 0x303   :  { %v1924_v3 = vsel %vm442_vm1, %v1890_v27, 0.0  ;;  %v4811_v27 = vld [vmem:[#allocation68_spill] sm:$0xff]  ;;  %v4814_v48 = vsub.f32 %v4812_v7, %v4813_v4 }
 0x304   :  { %1338 = vst.msk [vmem:[#allocation3 + $0x90] sm:$0xff] %vm442_vm1, %v1305_v14  ;;  %v1923_v14 = vadd.f32 %v1922_v61, %v1921_v63  ;;  %2746 = vpow2.f32 %v757_v60  ;;  %v798_v61 = vld [vmem:[#allocation3 + $0xb8] sm:$0xff]  ;;  %v1894_v63 = vmul.f32 %v4811_v27, %v4791_v44 }
 0x305   :  { %v1202_v37 = vpop.xlane.xlu1 %1201  ;;  %v733_v60 = vmul.f32 1.442695, %v4814_v48 }
 0x306   :  { %v1290_v59 = vadd.f32 %v1202_v37, %v810_v52  ;;  %v4801_v52 = vld [vmem:[#allocation32_spill] sm:$0xff]  ;;  %v1925_v47 = vadd.f32 %v1924_v3, %v1923_v14  ;;  %v4815_v14 = vld [vmem:[#allocation102_spill] sm:$0xff]  ;;  %v1932_v15 = vsel %vm442_vm1, %v1894_v63, 0.0 }
 0x307   :  { %v4803_v37 = vsub.f32 %v4801_v52, %v4802_v33  ;;  %v4819_v52 = vld [vmem:[#allocation40_spill] sm:$0xff]  ;;  %v4820_v33 = vld [vmem:[#allocation105_spill] sm:$0xff]  ;;  %v2035_v1 = vld [vmem:[#allocation3 + $0x10] sm:$0xff] }
 0x308   :  { %1323 = vst.msk [vmem:[#allocation3 + $0x18] sm:$0xff] %vm442_vm1, %v1290_v59  ;;  %v2743_v59 = vpop.eup %2742  ;;  %v1927_v39 = vadd.f32 %v1926_v26, %v1925_v47 }
 0x309   :  { %v1250_v25 = vpop.xlane.xlu1 %1249  ;;  %v1205_v58 = vpop.xlane.xlu0 %1204  ;;  %v727_v55 = vmul.f32 1.442695, %v4803_v37  ;;  %v829_v0 = vmul.f32 %v2743_v59, %v797_v22  ;;  %v4821_v37 = vsub.f32 %v4819_v52, %v4820_v33  ;;  %v4822_v59 = vld [vmem:[#allocation109_spill] sm:$0xff] }
 0x30a   :  { %v1306_v31 = vadd.f32 %v1250_v25, %v826_v19  ;;  %v1291_v16 = vadd.f32 %v1205_v58, %v811_v40  ;;  %v4804_v19 = vld [vmem:[#allocation66_spill] sm:$0xff]  ;;  %v4805_v58 = vld [vmem:[#allocation100_spill] sm:$0xff]  ;;  %v2745_v24 = vpop.eup %2744  ;;  %v4823_v47 = vsub.f32 %v4822_v59, %v3931_v54 }
 0x30b   :  { %v1892_v40 = vmul.f32 %v4804_v19, %v4791_v44  ;;  %2748 = vpow2.f32 %v727_v55  ;;  %v814_v2 = vmul.f32 %v2745_v24, %v782_v42  ;;  %v761_v55 = vmul.f32 1.442695, %v4821_v37  ;;  %v2033_v24 = vld [vmem:[#allocation3] sm:$0xff] }
 0x30c   :  { %1339 = vst.msk [vmem:[#allocation3 + $0x98] sm:$0xff] %vm442_vm1, %v1306_v31  ;;  %1324 = vst.msk [vmem:[#allocation3 + $0x20] sm:$0xff] %vm442_vm1, %v1291_v16  ;;  %v4806_v31 = vld [vmem:[#allocation36_spill] sm:$0xff] }
 0x30d   :  { %v4807_v16 = vsub.f32 %v4805_v58, %v4806_v31  ;;  %v1928_v36 = vsel %vm442_vm1, %v1892_v40, 0.0  ;;  %v2034_v40 = vld [vmem:[#allocation3 + $0x8] sm:$0xff] }
 0x30e   :  { %v1929_v38 = vadd.f32 %v1928_v36, %v1927_v39  ;;  %v784_v31 = vld [vmem:[#allocation3 + $0x48] sm:$0xff] }
 0x30f   :  { %v729_v62 = vmul.f32 1.442695, %v4807_v16  ;;  %v4825_v39 = vld [vmem:[#allocation110_spill] sm:$0xff] }
 0x310   :  { %v1931_v13 = vadd.f32 %v1930_v49, %v1929_v38  ;;  %v4830_v49 = vld [vmem:[#allocation71_spill] sm:$0xff] }
 0x311   :  { %v1208_v5 = vpop.xlane.xlu1 %1207  ;;  %2750 = vpow2.f32 %v729_v62  ;;  %v4824_v62 = vld [vmem:[#allocation70_spill] sm:$0xff]  ;;  %v1897_v27 = vmul.f32 %v4830_v49, %v4791_v44 }
 0x312   :  { %v1292_v35 = vadd.f32 %v1208_v5, %v812_v21  ;;  %v731_v21 = vmul.f32 1.442695, %v4810_v53  ;;  %v2747_v5 = vpop.eup %2746  ;;  %v1933_v19 = vadd.f32 %v1932_v15, %v1931_v13  ;;  %v4828_v53 = vld [vmem:[#allocation107_spill] sm:$0xff]  ;;  %v4833_v13 = vld [vmem:[#allocation52_spill] sm:$0xff] }
 0x313   :  { %v2037_v4 = vld [vmem:[#allocation3 + $0x20] sm:$0xff] }
 0x314   :  { %1325 = vst.msk [vmem:[#allocation3 + $0x28] sm:$0xff] %vm442_vm1, %v1292_v35  ;;  %2752 = vpow2.f32 %v731_v21  ;;  %v4829_v21 = vsub.f32 %v4828_v53, %v3909_v10 }
 0x315   :  { %v1211_v17 = vpop.xlane.xlu0 %1210  ;;  %v1253_v18 = vpop.xlane.xlu1 %1252  ;;  %2754 = vpow2.f32 %v733_v60 }
 0x316   :  { %v1293_v50 = vadd.f32 %v1211_v17, %v813_v41  ;;  %v1307_v51 = vadd.f32 %v1253_v18, %v827_v34  ;;  %v830_v41 = vmul.f32 %v2747_v5, %v798_v61  ;;  %v2749_v34 = vpop.eup %2748  ;;  %v4816_v17 = vld [vmem:[#allocation103_spill] sm:$0xff] }
 0x317   :  { %v4817_v18 = vsub.f32 %v4815_v14, %v4816_v17  ;;  %v815_v22 = vmul.f32 %v2749_v34, %v783_v11  ;;  %v2036_v5 = vld [vmem:[#allocation3 + $0x18] sm:$0xff] }
 0x318   :  { %1326 = vst.msk [vmem:[#allocation3 + $0x30] sm:$0xff] %vm442_vm1, %v1293_v50  ;;  %1340 = vst.msk [vmem:[#allocation3 + $0xa0] sm:$0xff] %vm442_vm1, %v1307_v51  ;;  %v4818_v50 = vld [vmem:[#allocation69_spill] sm:$0xff]  ;;  %v4832_v34 = vld [vmem:[#allocation108_spill] sm:$0xff] }
 0x319   :  { %v4186_v46 = vpop.xlane.xlu0 %1852  ;;  %v1256_v23 = vpop.xlane.xlu1 %1255  ;;  %v759_v57 = vmul.f32 1.442695, %v4817_v18  ;;  %v1895_v51 = vmul.f32 %v4818_v50, %v4791_v44  ;;  %v4834_v14 = vsub.f32 %v4832_v34, %v4833_v13 }
 0x31a   :  { %v1308_v25 = vadd.f32 %v1256_v23, %v828_v20  ;;  %v735_v23 = vmul.f32 1.442695, %v4823_v47 }
 0x31b   :  { %v2751_v26 = vpop.eup %2750  ;;  %2756 = vpow2.f32 %v759_v57  ;;  %v1934_v16 = vsel %vm442_vm1, %v1895_v51, 0.0  ;;  %v765_v17 = vmul.f32 1.442695, %v4834_v14  ;;  %v2038_v18 = vld [vmem:[#allocation3 + $0x28] sm:$0xff]  ;;  %v4836_v51 = vld [vmem:[#allocation115_spill] sm:$0xff] }
 0x31c   :  { %1341 = vst.msk [vmem:[#allocation3 + $0xa8] sm:$0xff] %vm442_vm1, %v1308_v25  ;;  %2758 = vpow2.f32 %v761_v55  ;;  %v816_v29 = vmul.f32 %v2751_v26, %v784_v31  ;;  %v1935_v28 = vadd.f32 %v1934_v16, %v1933_v19  ;;  %v4837_v52 = vsub.f32 %v3977_v30, %v4836_v51  ;;  %v787_v31 = vld [vmem:[#allocation3 + $0x60] sm:$0xff]  ;;  %v789_v51 = vld [vmem:[#allocation3 + $0x70] sm:$0xff] }
 0x31d   :  { %v4195_v56 = vpop.xlane.xlu0 %1854  ;;  %v1259_v43 = vpop.xlane.xlu1 %1258  ;;  %2760 = vpow2.f32 %v735_v23  ;;  %v4838_v23 = vld [vmem:[#allocation111_spill] sm:$0xff] }
 0x31e   :  { %v1309_v6 = vadd.f32 %v1259_v43, %v829_v0  ;;  %v1896_v0 = vmul.f32 %v4824_v62, %v4791_v44  ;;  %v4826_v43 = vld [vmem:[#allocation56_spill] sm:$0xff]  ;;  %2762 = vlog2.f32 %v2034_v40  ;;  %v741_v33 = vmul.f32 1.442695, %v4837_v52 }
 0x31f   :  { %v4827_v42 = vsub.f32 %v4825_v39, %v4826_v43  ;;  %2764 = vlog2.f32 %v2033_v24  ;;  %v2039_v37 = vld [vmem:[#allocation3 + $0x30] sm:$0xff]  ;;  %v4842_v43 = vld [vmem:[#allocation113_spill] sm:$0xff] }
 0x320   :  { %1342 = vst.msk [vmem:[#allocation3 + $0xb0] sm:$0xff] %vm442_vm1, %v1309_v6  ;;  %v2753_v6 = vpop.eup %2752  ;;  %v1936_v61 = vsel %vm442_vm1, %v1896_v0, 0.0  ;;  %2766 = vlog2.f32 %v2035_v1  ;;  %v4841_v0 = vld [vmem:[#allocation73_spill] sm:$0xff] }
 0x321   :  { %v1214_v9 = vpop.xlane.xlu1 %1213  ;;  %v4210_v45 = vpop.xlane.xlu0 %1856  ;;  %v737_v36 = vmul.f32 1.442695, %v4827_v42  ;;  %v1899_v24 = vmul.f32 %v4841_v0, %v4791_v44  ;;  %v4843_v42 = vld [vmem:[#allocation60_spill] sm:$0xff] }
 0x322   :  { %v1294_v35 = vadd.f32 %v1214_v9, %v814_v2  ;;  %v763_v2 = vmul.f32 1.442695, %v4829_v21  ;;  %v785_v9 = vld [vmem:[#allocation3 + $0x50] sm:$0xff]  ;;  %v2755_v60 = vpop.eup %2754 }
 0x323   :  { %2768 = vpow2.f32 %v737_v36  ;;  %v817_v10 = vmul.f32 %v2753_v6, %v785_v9  ;;  %v4844_v36 = vsub.f32 %v4842_v43, %v4843_v42 }
 0x324   :  { %1327 = vst.msk [vmem:[#allocation3 + $0x38] sm:$0xff] %vm442_vm1, %v1294_v35  ;;  %v4831_v35 = vsub.f32 %v3957_v32, %v3975_v12  ;;  %2770 = vlog2.f32 %v2036_v5  ;;  %v1938_v32 = vsel %vm442_vm1, %v1897_v27, 0.0  ;;  %v4835_v12 = vld [vmem:[#allocation72_spill] sm:$0xff]  ;;  %v788_v27 = vld [vmem:[#allocation3 + $0x68] sm:$0xff] }
 0x325   :  { %v1262_v3 = vpop.xlane.xlu1 %1261  ;;  %v4226_v25 = vpop.xlane.xlu0 %1858  ;;  %2772 = vpow2.f32 %v763_v2  ;;  %v1898_v11 = vmul.f32 %v4835_v12, %v4791_v44  ;;  %v769_v1 = vmul.f32 1.442695, %v4844_v36  ;;  %v4845_v2 = vld [vmem:[#allocation114_spill] sm:$0xff] }
 0x326   :  { %v1310_v20 = vadd.f32 %v1262_v3, %v830_v41  ;;  %v739_v7 = vmul.f32 1.442695, %v4831_v35  ;;  %v1937_v41 = vadd.f32 %v1936_v61, %v1935_v28  ;;  %v786_v3 = vld [vmem:[#allocation3 + $0x58] sm:$0xff]  ;;  %2774 = vlog2.f32 %v2037_v4  ;;  %v4253_v50 = vpop.eup %2756 }
 0x327   :  { %v4258_v55 = vpop.eup %2758  ;;  %v1940_v62 = vsel %vm442_vm1, %v1898_v11, 0.0  ;;  %v4846_v5 = vsub.f32 %v4845_v2, %v3994_v8  ;;  %v1942_v35 = vsel %vm442_vm1, %v1899_v24, 0.0 }
 0x328   :  { %1343 = vst.msk [vmem:[#allocation3 + $0xb8] sm:$0xff] %vm442_vm1, %v1310_v20  ;;  %2776 = vpow2.f32 %v739_v7  ;;  %v818_v20 = vmul.f32 %v2755_v60, %v786_v3  ;;  %v2761_v59 = vpop.eup %2760  ;;  %v1939_v47 = vadd.f32 %v1938_v32, %v1937_v41  ;;  %v4847_v7 = vld [vmem:[#allocation74_spill] sm:$0xff] }
 0x329   :  { %v1217_v58 = vpop.xlane.xlu1 %1216  ;;  %v4244_v48 = vpop.xlane.xlu0 %1860  ;;  %2778 = vlog2.f32 %v2038_v18  ;;  %v819_v28 = vmul.f32 %v2761_v59, %v787_v31  ;;  %v1900_v4 = vmul.f32 %v4847_v7, %v4791_v44  ;;  %v2049_v18 = vld [vmem:[#allocation3 + $0x80] sm:$0xff] }
 0x32a   :  { %v1295_v54 = vadd.f32 %v1217_v58, %v815_v22  ;;  %2780 = vpow2.f32 %v765_v17  ;;  %v4839_v22 = vld [vmem:[#allocation112_spill] sm:$0xff]  ;;  %v2763_v16 = vpop.eup %2762  ;;  %v1941_v21 = vadd.f32 %v1940_v62, %v1939_v47  ;;  %v2002_v17 = vld [vmem:[#allocation2 + $0x8] sm:$0xff]  ;;  %v2003_v47 = vld [vmem:[#allocation2 + $0x10] sm:$0xff] }
 0x32b   :  { %v4840_v26 = vsub.f32 %v4838_v23, %v4839_v22  ;;  %v2040_v40 = vld [vmem:[#allocation3 + $0x38] sm:$0xff]  ;;  %2782 = vlog2.f32 %v2039_v37  ;;  %v2765_v39 = vpop.eup %2764  ;;  %v2068_v9 = vmul.f32 0.6931472, %v2763_v16  ;;  %v2001_v59 = vld [vmem:[#allocation2] sm:$0xff] }
 0x32c   :  { %1328 = vst.msk [vmem:[#allocation3 + $0x40] sm:$0xff] %vm442_vm1, %v1295_v54  ;;  %2784 = vpow2.f32 %v741_v33  ;;  %v2767_v6 = vpop.eup %2766  ;;  %v2066_v41 = vmul.f32 0.6931472, %v2765_v39  ;;  %v1943_v32 = vadd.f32 %v1942_v35, %v1941_v21  ;;  %v1944_v33 = vsel %vm442_vm1, %v1900_v4, 0.0  ;;  %v4848_v37 = vld [vmem:[#allocation75_spill] sm:$0xff]  ;;  %v4850_v21 = vld [vmem:[#allocation117_spill] sm:$0xff] }
 0x32d   :  { %v1220_v38 = vpop.xlane.xlu1 %1219  ;;  %v767_v19 = vmul.f32 1.442695, %v4840_v26  ;;  %v4264_v58 = vpop.xlane.xlu0 %1862  ;;  %2786 = vlog2.f32 %v2040_v40  ;;  %v2070_v34 = vmul.f32 0.6931472, %v2767_v6  ;;  %v2130_v12 = vadd.f32 %v2068_v9, %v2002_v17  ;;  %v2004_v16 = vld [vmem:[#allocation2 + $0x18] sm:$0xff]  ;;  %v799_v9 = vld [vmem:[#allocation3 + $0xc0] sm:$0xff] }
 0x32e   :  { %v1296_v63 = vadd.f32 %v1220_v38, %v816_v29  ;;  %v2769_v53 = vpop.eup %2768  ;;  %v771_v38 = vmul.f32 1.442695, %v4846_v5  ;;  %v2129_v26 = vadd.f32 %v2066_v41, %v2001_v59  ;;  %v1945_v24 = vadd.f32 %v1944_v33, %v1943_v32  ;;  %v800_v4 = vld [vmem:[#allocation3 + $0xc8] sm:$0xff] }
 0x32f   :  { %2788 = vpow2.f32 %v767_v19  ;;  %v2131_v19 = vadd.f32 %v2070_v34, %v2003_v47  ;;  %v2006_v41 = vld [vmem:[#allocation2 + $0x28] sm:$0xff] }
 0x330   :  { %1329 = vst.msk [vmem:[#allocation3 + $0x48] sm:$0xff] %vm442_vm1, %v1296_v63  ;;  %v2771_v63 = vpop.eup %2770  ;;  %v2050_v59 = vld [vmem:[#allocation3 + $0x88] sm:$0xff] }
 0x331   :  { %v1223_v57 = vpop.xlane.xlu1 %1222  ;;  %v4279_v60 = vpop.eup %2772  ;;  %v2072_v11 = vmul.f32 0.6931472, %v2771_v63 }
 0x332   :  { %v1297_v15 = vadd.f32 %v1223_v57, %v817_v10  ;;  %v4281_v13 = vpop.xlane.xlu0 %1864  ;;  %v2775_v14 = vpop.eup %2774  ;;  %v820_v57 = vmul.f32 %v2769_v53, %v788_v27  ;;  %v4849_v53 = vld [vmem:[#allocation116_spill] sm:$0xff]  ;;  %v2165_v27 = vsel %vm442_vm1, %v2131_v19, 0.0 }
 0x333   :  { %v2041_v29 = vld [vmem:[#allocation3 + $0x40] sm:$0xff]  ;;  %v2777_v3 = vpop.eup %2776  ;;  %v2074_v40 = vmul.f32 0.6931472, %v2775_v14  ;;  %v2132_v39 = vadd.f32 %v2072_v11, %v2004_v16  ;;  %v4851_v2 = vsub.f32 %v4849_v53, %v4850_v21  ;;  %v802_v11 = vld [vmem:[#allocation3 + $0xd8] sm:$0xff]  ;;  %v1902_v21 = vmul.f32 %v4186_v46, %v4791_v44 }
 0x334   :  { %1330 = vst.msk [vmem:[#allocation3 + $0x50] sm:$0xff] %vm442_vm1, %v1297_v15  ;;  %2790 = vlog2.f32 %v2041_v29  ;;  %v2779_v52 = vpop.eup %2778  ;;  %v821_v62 = vmul.f32 %v2777_v3, %v789_v51  ;;  %v2007_v51 = vld [vmem:[#allocation2 + $0x30] sm:$0xff] }
 0x335   :  { %v1226_v30 = vpop.xlane.xlu1 %1225  ;;  %2792 = vpow2.f32 %v769_v1  ;;  %v4287_v22 = vpop.eup %2780  ;;  %v2076_v43 = vmul.f32 0.6931472, %v2779_v52  ;;  %v790_v1 = vld [vmem:[#allocation3 + $0x78] sm:$0xff]  ;;  %v773_v5 = vmul.f32 1.442695, %v4851_v2 }
 0x336   :  { %v1298_v54 = vadd.f32 %v1226_v30, %v818_v20  ;;  %v1901_v20 = vmul.f32 %v4848_v37, %v4791_v44  ;;  %v2783_v31 = vpop.eup %2782  ;;  %v4291_v42 = vpop.xlane.xlu0 %1866  ;;  %v831_v37 = vmul.f32 %v4253_v50, %v799_v9 }
 0x337   :  { %v2042_v61 = vld [vmem:[#allocation3 + $0x48] sm:$0xff]  ;;  %v2785_v0 = vpop.eup %2784  ;;  %v2078_v35 = vmul.f32 0.6931472, %v2783_v31  ;;  %v803_v31 = vld [vmem:[#allocation3 + $0xe0] sm:$0xff] }
 0x338   :  { %1331 = vst.msk [vmem:[#allocation3 + $0x58] sm:$0xff] %vm442_vm1, %v1298_v54  ;;  %2794 = vlog2.f32 %v2042_v61  ;;  %v2163_v54 = vsel %vm442_vm1, %v2130_v12, 0.0  ;;  %v2787_v29 = vpop.eup %2786  ;;  %v1946_v6 = vsel %vm442_vm1, %v1901_v20, 0.0  ;;  %v801_v12 = vld [vmem:[#allocation3 + $0xd0] sm:$0xff]  ;;  %v832_v20 = vmul.f32 %v4258_v55, %v800_v4  ;;  %v2242_v4 = vld [vmem:[#allocation5] sm:$0x3] }
 0x339   :  { %v1229_v49 = vpop.xlane.xlu1 %1228  ;;  %2796 = vpow2.f32 %v771_v38  ;;  %v2789_v61 = vpop.eup %2788  ;;  %v4300_v17 = vadd.f32 %v1946_v6, %v1945_v24  ;;  %v2080_v3 = vmul.f32 0.6931472, %v2787_v29  ;;  %v4310_v50 = vmul.f32 %v4279_v60, %v801_v12  ;;  %v804_v24 = vld [vmem:[#allocation3 + $0xe8] sm:$0xff]  ;;  %v805_v29 = vld [vmem:[#allocation3 + $0xf0] sm:$0xff] }
 0x33a   :  { %v1299_v10 = vadd.f32 %v1229_v49, %v819_v28  ;;  %v2005_v28 = vld [vmem:[#allocation2 + $0x20] sm:$0xff]  ;;  %v2162_v49 = vsel %vm442_vm1, %v2129_v26, 0.0  ;;  %v2135_v26 = vadd.f32 %v2078_v35, %v2007_v51  ;;  %v4313_v55 = vmul.f32 %v4287_v22, %v802_v11  ;;  %v2051_v22 = vld [vmem:[#allocation3 + $0x90] sm:$0xff]  ;;  %v2052_v11 = vld [vmem:[#allocation3 + $0x98] sm:$0xff] }
 0x33b   :  { %v2043_v8 = vld [vmem:[#allocation3 + $0x50] sm:$0xff]  ;;  %v2133_v63 = vadd.f32 %v2074_v40, %v2005_v28  ;;  %v2164_v34 = vadd.f32 %v2163_v54, %v2162_v49  ;;  %v4306_v40 = vpop.xlane.xlu0 %1868  ;;  %v2009_v28 = vld [vmem:[#allocation2 + $0x40] sm:$0xff]  ;;  %v4318_v2 = vmul.f32 %v2789_v61, %v803_v31 }
 0x33c   :  { %1332 = vst.msk [vmem:[#allocation3 + $0x60] sm:$0xff] %vm442_vm1, %v1299_v10  ;;  %2798 = vlog2.f32 %v2043_v8  ;;  %v822_v8 = vmul.f32 %v2785_v0, %v790_v1 }
 0x33d   :  { %v1232_v15 = vpop.xlane.xlu1 %1231  ;;  %2800 = vlog2.f32 %v2049_v18  ;;  %v2167_v18 = vsel %vm442_vm1, %v2132_v39, 0.0  ;;  %v2166_v52 = vadd.f32 %v2165_v27, %v2164_v34 }
 0x33e   :  { %v1300_v23 = vadd.f32 %v1232_v15, %v820_v57  ;;  %v2791_v10 = vpop.eup %2790  ;;  %v2134_v57 = vadd.f32 %v2076_v43, %v2006_v41 }
 0x33f   :  { %v2044_v30 = vld [vmem:[#allocation3 + $0x58] sm:$0xff]  ;;  %v2793_v14 = vpop.eup %2792  ;;  %v2082_v19 = vmul.f32 0.6931472, %v2791_v10  ;;  %v2168_v0 = vadd.f32 %v2167_v18, %v2166_v52  ;;  %v4327_v34 = vpop.xlane.xlu0 %1870 }
 0x340   :  { %2802 = vlog2.f32 %v2044_v30  ;;  %1333 = vst.msk [vmem:[#allocation3 + $0x68] sm:$0xff] %vm442_vm1, %v1300_v23  ;;  %v2169_v23 = vsel %vm442_vm1, %v2133_v63, 0.0  ;;  %v2171_v39 = vsel %vm442_vm1, %v2134_v57, 0.0  ;;  %v4321_v27 = vmul.f32 %v2793_v14, %v804_v24  ;;  %v2010_v63 = vld [vmem:[#allocation2 + $0x48] sm:$0xff]  ;;  %v2011_v14 = vld [vmem:[#allocation2 + $0x50] sm:$0xff]  ;;  %v2013_v24 = vld [vmem:[#allocation2 + $0x60] sm:$0xff] }
 0x341   :  { %v1235_v36 = vpop.xlane.xlu1 %1234  ;;  %v2170_v53 = vadd.f32 %v2169_v23, %v2168_v0 }
 0x342   :  { %v1301_v38 = vadd.f32 %v1235_v36, %v821_v62  ;;  %v2795_v15 = vpop.eup %2794  ;;  %v2008_v62 = vld [vmem:[#allocation2 + $0x38] sm:$0xff] }
 0x343   :  { %v2045_v7 = vld [vmem:[#allocation3 + $0x60] sm:$0xff]  ;;  %v2797_v47 = vpop.eup %2796  ;;  %v2136_v43 = vadd.f32 %v2080_v3, %v2008_v62  ;;  %v2084_v36 = vmul.f32 0.6931472, %v2795_v15  ;;  %v2172_v35 = vadd.f32 %v2171_v39, %v2170_v53  ;;  %v1948_v3 = vsel %vm442_vm1, %v1902_v21, 0.0  ;;  %v2054_v62 = vld [vmem:[#allocation3 + $0xa8] sm:$0xff] }
 0x344   :  { %2804 = vlog2.f32 %v2045_v7  ;;  %1334 = vst.msk [vmem:[#allocation3 + $0x70] sm:$0xff] %vm442_vm1, %v1301_v38  ;;  %v2137_v38 = vadd.f32 %v2082_v19, %v2009_v28  ;;  %v4324_v7 = vmul.f32 %v2797_v47, %v805_v29  ;;  %v1904_v47 = vmul.f32 %v4210_v45, %v4791_v44  ;;  %v4344_v29 = vpop.xlane.xlu0 %1872  ;;  %v2014_v28 = vld [vmem:[#allocation2 + $0x68] sm:$0xff] }
 0x345   :  { %v1238_v32 = vpop.xlane.xlu1 %1237  ;;  %2806 = vpow2.f32 %v773_v5  ;;  %v2173_v5 = vsel %vm442_vm1, %v2135_v26, 0.0  ;;  %v2175_v61 = vsel %vm442_vm1, %v2136_v43, 0.0  ;;  %v2138_v10 = vadd.f32 %v2084_v36, %v2010_v63  ;;  %v2053_v26 = vld [vmem:[#allocation3 + $0xa0] sm:$0xff] }
 0x346   :  { %v1302_v33 = vadd.f32 %v1238_v32, %v822_v8  ;;  %v2799_v16 = vpop.eup %2798  ;;  %v2174_v57 = vadd.f32 %v2173_v5, %v2172_v35  ;;  %v1903_v32 = vmul.f32 %v4195_v56, %v4791_v44  ;;  %v2177_v15 = vsel %vm442_vm1, %v2137_v38, 0.0  ;;  %v2055_v5 = vld [vmem:[#allocation3 + $0xb0] sm:$0xff] }
 0x347   :  { %v2046_v30 = vld [vmem:[#allocation3 + $0x68] sm:$0xff]  ;;  %v2801_v54 = vpop.eup %2800  ;;  %v2086_v9 = vmul.f32 0.6931472, %v2799_v16  ;;  %v1952_v53 = vsel %vm442_vm1, %v1904_v47, 0.0  ;;  %v1906_v21 = vmul.f32 %v4244_v48, %v4791_v44 }
 0x348   :  { %2808 = vlog2.f32 %v2046_v30  ;;  %1335 = vst.msk [vmem:[#allocation3 + $0x78] sm:$0xff] %vm442_vm1, %v1302_v33  ;;  %v2098_v46 = vmul.f32 0.6931472, %v2801_v54  ;;  %v2176_v23 = vadd.f32 %v2175_v61, %v2174_v57  ;;  %v2179_v30 = vsel %vm442_vm1, %v2138_v10, 0.0  ;;  %v2056_v10 = vld [vmem:[#allocation3 + $0xb8] sm:$0xff] }
 0x349   :  { %v1265_v1 = vpop.xlane.xlu1 %1264  ;;  %2810 = vlog2.f32 %v2050_v59  ;;  %v2139_v51 = vadd.f32 %v2086_v9, %v2011_v14  ;;  %v2012_v59 = vld [vmem:[#allocation2 + $0x58] sm:$0xff]  ;;  %v1950_v45 = vsel %vm442_vm1, %v1903_v32, 0.0  ;;  %v1905_v54 = vmul.f32 %v4226_v25, %v4791_v44 }
 0x34a   :  { %v2803_v6 = vpop.eup %2802  ;;  %v1311_v60 = vadd.f32 %v1265_v1, %v831_v37  ;;  %v2017_v37 = vld [vmem:[#allocation2 + $0x80] sm:$0xff]  ;;  %v2178_v39 = vadd.f32 %v2177_v15, %v2176_v23  ;;  %v1956_v14 = vsel %vm442_vm1, %v1906_v21, 0.0  ;;  %v1908_v57 = vmul.f32 %v4281_v13, %v4791_v44 }
 0x34b   :  { %v2047_v49 = vld [vmem:[#allocation3 + $0x70] sm:$0xff]  ;;  %v2088_v41 = vmul.f32 0.6931472, %v2803_v6  ;;  %v2145_v19 = vadd.f32 %v2098_v46, %v2017_v37  ;;  %v2181_v6 = vsel %vm442_vm1, %v2139_v51, 0.0  ;;  %v1954_v63 = vsel %vm442_vm1, %v1905_v54, 0.0 }
 0x34c   :  { %2812 = vlog2.f32 %v2047_v49  ;;  %1344 = vst.msk [vmem:[#allocation3 + $0xc0] sm:$0xff] %vm442_vm1, %v1311_v60  ;;  %v2180_v25 = vadd.f32 %v2179_v30, %v2178_v39  ;;  %v1911_v54 = vmul.f32 %v4327_v34, %v4791_v44 }
 0x34d   :  { %v1268_v8 = vpop.xlane.xlu1 %1267  ;;  %2814 = vlog2.f32 %v2051_v22  ;;  %v2140_v31 = vadd.f32 %v2088_v41, %v2012_v59  ;;  %v1909_v59 = vmul.f32 %v4291_v42, %v4791_v44  ;;  %v2018_v42 = vld [vmem:[#allocation2 + $0x88] sm:$0xff] }
 0x34e   :  { %v2805_v18 = vpop.eup %2804  ;;  %v1312_v12 = vadd.f32 %v1268_v8, %v832_v20  ;;  %2816 = vlog2.f32 %v2242_v4  ;;  %v1949_v20 = vadd.f32 %v1948_v3, %v4300_v17  ;;  %v2182_v48 = vadd.f32 %v2181_v6, %v2180_v25 }
 0x34f   :  { %v2090_v52 = vmul.f32 0.6931472, %v2805_v18  ;;  %v2048_v33 = vld [vmem:[#allocation3 + $0x78] sm:$0xff]  ;;  %v4336_v56 = vpop.eup %2806  ;;  %v2183_v9 = vsel %vm442_vm1, %v2140_v31, 0.0  ;;  %v2015_v18 = vld [vmem:[#allocation2 + $0x70] sm:$0xff]  ;;  %v1962_v6 = vsel %vm442_vm1, %v1909_v59, 0.0 }
 0x350   :  { %2818 = vlog2.f32 %v2048_v33  ;;  %1345 = vst.msk [vmem:[#allocation3 + $0xc8] sm:$0xff] %vm442_vm1, %v1312_v12  ;;  %v1951_v60 = vadd.f32 %v1950_v45, %v1949_v20 }
 0x351   :  { %v1271_v16 = vpop.xlane.xlu1 %1270  ;;  %2820 = vlog2.f32 %v2052_v11  ;;  %v2141_v17 = vadd.f32 %v2090_v52, %v2013_v24  ;;  %v1875_v11 = vpop.xlane.xlu0 %1874 }
 0x352   :  { %v2809_v0 = vpop.eup %2808  ;;  %v1313_v43 = vadd.f32 %v1271_v16, %v4310_v50  ;;  %2822 = vlog2.f32 %v2053_v26  ;;  %v1907_v50 = vmul.f32 %v4264_v58, %v4791_v44  ;;  %v1953_v61 = vadd.f32 %v1952_v53, %v1951_v60 }
 0x353   :  { %v2811_v36 = vpop.eup %2810  ;;  %v2092_v1 = vmul.f32 0.6931472, %v2809_v0  ;;  %2824 = vlog2.f32 %v2054_v62  ;;  %v2185_v8 = vsel %vm442_vm1, %v2141_v17, 0.0  ;;  %v4358_v58 = vsel %vm442_vm1, %v2145_v19, 0.0  ;;  %v2057_v51 = vld [vmem:[#allocation3 + $0xc0] sm:$0xff]  ;;  %v2016_v0 = vld [vmem:[#allocation2 + $0x78] sm:$0xff] }
 0x354   :  { %1346 = vst.msk [vmem:[#allocation3 + $0xd0] sm:$0xff] %vm442_vm1, %v1313_v43  ;;  %v2100_v4 = vmul.f32 0.6931472, %v2811_v36  ;;  %2826 = vlog2.f32 %v2055_v5  ;;  %v1955_v32 = vadd.f32 %v1954_v63, %v1953_v61  ;;  %v1958_v12 = vsel %vm442_vm1, %v1907_v50, 0.0 }
 0x355   :  { %v1274_v22 = vpop.xlane.xlu1 %1273  ;;  %v2142_v38 = vadd.f32 %v2092_v1, %v2014_v28  ;;  %2828 = vlog2.f32 %v2056_v10  ;;  %v1960_v16 = vsel %vm442_vm1, %v1908_v57, 0.0  ;;  %v1910_v62 = vmul.f32 %v4306_v40, %v4791_v44  ;;  %v2019_v28 = vld [vmem:[#allocation2 + $0x90] sm:$0xff]  ;;  %v1877_v25 = vpop.xlane.xlu0 %1876 }
 0x356   :  { %v2813_v49 = vpop.eup %2812  ;;  %v1314_v35 = vadd.f32 %v1274_v22, %v4313_v55  ;;  %v2184_v55 = vadd.f32 %v2183_v9, %v2182_v48  ;;  %v1957_v26 = vadd.f32 %v1956_v14, %v1955_v32  ;;  %2830 = vlog2.f32 %v2057_v51  ;;  %v806_v9 = vld [vmem:[#allocation3 + $0xf8] sm:$0xff] }
 0x357   :  { %v2815_v46 = vpop.eup %2814  ;;  %v2094_v41 = vmul.f32 0.6931472, %v2813_v49  ;;  %v2187_v33 = vsel %vm442_vm1, %v2142_v38, 0.0  ;;  %v2058_v19 = vld [vmem:[#allocation3 + $0xc8] sm:$0xff]  ;;  %v2146_v1 = vadd.f32 %v2100_v4, %v2018_v42  ;;  %v1964_v34 = vsel %vm442_vm1, %v1910_v62, 0.0 }
 0x358   :  { %1347 = vst.msk [vmem:[#allocation3 + $0xd8] sm:$0xff] %vm442_vm1, %v1314_v35  ;;  %v4364_v3 = vpop.eup %2816  ;;  %v2186_v47 = vadd.f32 %v2185_v8, %v2184_v55  ;;  %v2102_v30 = vmul.f32 0.6931472, %v2815_v46  ;;  %v1959_v45 = vadd.f32 %v1958_v12, %v1957_v26  ;;  %2832 = vlog2.f32 %v2058_v19 }
 0x359   :  { %v1277_v15 = vpop.xlane.xlu1 %1276  ;;  %v2143_v52 = vadd.f32 %v2094_v41, %v2015_v18  ;;  %v1912_v38 = vmul.f32 %v4344_v29, %v4791_v44  ;;  %v1966_v63 = vsel %vm442_vm1, %v1911_v54, 0.0  ;;  %v1913_v61 = vmul.f32 %v1875_v11, %v4791_v44  ;;  %v2020_v41 = vld [vmem:[#allocation2 + $0x98] sm:$0xff]  ;;  %v1881_v14 = vpop.xlane.xlu0 %1880 }
 0x35a   :  { %v2819_v37 = vpop.eup %2818  ;;  %v1315_v13 = vadd.f32 %v1277_v15, %v4318_v2  ;;  %v2188_v2 = vadd.f32 %v2187_v33, %v2186_v47  ;;  %v1961_v21 = vadd.f32 %v1960_v16, %v1959_v45  ;;  %v2147_v22 = vadd.f32 %v2102_v30, %v2019_v28  ;;  %v2022_v33 = vld [vmem:[#allocation2 + $0xa8] sm:$0xff]  ;;  %v2024_v28 = vld [vmem:[#allocation2 + $0xb8] sm:$0xff] }
 0x35b   :  { %v2821_v23 = vpop.eup %2820  ;;  %v2096_v20 = vmul.f32 0.6931472, %v2819_v37  ;;  %v2189_v31 = vsel %vm442_vm1, %v2143_v52, 0.0  ;;  %v2059_v43 = vld [vmem:[#allocation3 + $0xd0] sm:$0xff]  ;;  %v838_v18 = vmul.f32 %v4336_v56, %v806_v9  ;;  %v2195_v32 = vsel %vm442_vm1, %v2146_v1, 0.0 }
 0x35c   :  { %1348 = vst.msk [vmem:[#allocation3 + $0xe0] sm:$0xff] %vm442_vm1, %v1315_v13  ;;  %v2823_v24 = vpop.eup %2822  ;;  %v2190_v53 = vadd.f32 %v2189_v31, %v2188_v2  ;;  %v2104_v50 = vmul.f32 0.6931472, %v2821_v23  ;;  %2834 = vlog2.f32 %v2059_v43  ;;  %v1963_v49 = vadd.f32 %v1962_v6, %v1961_v21  ;;  %v2023_v2 = vld [vmem:[#allocation2 + $0xb0] sm:$0xff] }
 0x35d   :  { %v1280_v39 = vpop.xlane.xlu1 %1279  ;;  %v2144_v36 = vadd.f32 %v2096_v20, %v2016_v0  ;;  %v2825_v17 = vpop.eup %2824  ;;  %v2106_v4 = vmul.f32 0.6931472, %v2823_v24  ;;  %v1968_v15 = vsel %vm442_vm1, %v1912_v38, 0.0  ;;  %v1914_v51 = vmul.f32 %v1877_v25, %v4791_v44 }
 0x35e   :  { %v1316_v40 = vadd.f32 %v1280_v39, %v4321_v27  ;;  %v2108_v48 = vmul.f32 0.6931472, %v2825_v17  ;;  %v2827_v46 = vpop.eup %2826  ;;  %v1965_v8 = vadd.f32 %v1964_v34, %v1963_v49  ;;  %v2148_v55 = vadd.f32 %v2104_v50, %v2020_v41  ;;  %v1885_v39 = vpop.xlane.xlu0 %1884 }
 0x35f   :  { %v2060_v60 = vld [vmem:[#allocation3 + $0xd8] sm:$0xff]  ;;  %v2191_v5 = vsel %vm442_vm1, %v2144_v36, 0.0  ;;  %v2829_v12 = vpop.eup %2828  ;;  %v2110_v37 = vmul.f32 0.6931472, %v2827_v46  ;;  %v2197_v59 = vsel %vm442_vm1, %v2147_v22, 0.0  ;;  %v1970_v47 = vsel %vm442_vm1, %v1913_v61, 0.0 }
 0x360   :  { %1349 = vst.msk [vmem:[#allocation3 + $0xe8] sm:$0xff] %vm442_vm1, %v1316_v40  ;;  %v2192_v27 = vadd.f32 %v2191_v5, %v2190_v53  ;;  %2836 = vlog2.f32 %v2060_v60  ;;  %v1967_v52 = vadd.f32 %v1966_v63, %v1965_v8  ;;  %v2831_v13 = vpop.eup %2830  ;;  %v2150_v26 = vadd.f32 %v2108_v48, %v2022_v33 }
 0x361   :  { %v1283_v35 = vpop.xlane.xlu1 %1282  ;;  %v1916_v30 = vmul.f32 %v1881_v14, %v4791_v44  ;;  %v2112_v16 = vmul.f32 0.6931472, %v2829_v12  ;;  %v2199_v62 = vsel %vm442_vm1, %v2148_v55, 0.0  ;;  %v1972_v42 = vsel %vm442_vm1, %v1914_v51, 0.0  ;;  %v2027_v51 = vld [vmem:[#allocation2 + $0xd0] sm:$0xff] }
 0x362   :  { %v1317_v10 = vadd.f32 %v1283_v35, %v4324_v7  ;;  %v2194_v29 = vadd.f32 %v4358_v58, %v2192_v27  ;;  %v2021_v7 = vld [vmem:[#allocation2 + $0xa0] sm:$0xff]  ;;  %v1969_v20 = vadd.f32 %v1968_v15, %v1967_v52  ;;  %v2833_v0 = vpop.eup %2832  ;;  %v2114_v43 = vmul.f32 0.6931472, %v2831_v13 }
 0x363   :  { %v2061_v57 = vld [vmem:[#allocation3 + $0xe0] sm:$0xff]  ;;  %v2149_v56 = vadd.f32 %v2106_v4, %v2021_v7  ;;  %v2151_v36 = vadd.f32 %v2110_v37, %v2023_v2  ;;  %v2244_v40 = vmul.f32 0.6931472, %v4364_v3  ;;  %v2203_v21 = vsel %vm442_vm1, %v2150_v26, 0.0 }
 0x364   :  { %1350 = vst.msk [vmem:[#allocation3 + $0xf0] sm:$0xff] %vm442_vm1, %v1317_v10  ;;  %2838 = vlog2.f32 %v2061_v57  ;;  %v2196_v11 = vadd.f32 %v2195_v32, %v2194_v29  ;;  %v1971_v45 = vadd.f32 %v1970_v47, %v1969_v20  ;;  %v1976_v60 = vsel %vm442_vm1, %v1916_v30, 0.0  ;;  %v2025_v27 = vld [vmem:[#allocation2 + $0xc0] sm:$0xff]  ;;  %v2026_v29 = vld [vmem:[#allocation2 + $0xc8] sm:$0xff]  ;;  %v2028_v20 = vld [vmem:[#allocation2 + $0xd8] sm:$0xff] }
 0x365   :  { %v1286_v58 = vpop.xlane.xlu1 %1285  ;;  %v2201_v1 = vsel %vm442_vm1, %v2149_v56, 0.0  ;;  %v2116_v22 = vmul.f32 0.6931472, %v2833_v0  ;;  %v2152_v5 = vadd.f32 %v2112_v16, %v2024_v28  ;;  %v1918_v9 = vmul.f32 %v1885_v39, %v4791_v44  ;;  %v2241_v35 = vld [vmem:[#allocation4] sm:$0x3] }
 0x366   :  { %v1318_v23 = vadd.f32 %v1286_v58, %v838_v18  ;;  %v2198_v19 = vadd.f32 %v2197_v59, %v2196_v11  ;;  %v2835_v17 = vpop.eup %2834  ;;  %v1973_v25 = vadd.f32 %v1972_v42, %v1971_v45  ;;  %v2153_v48 = vadd.f32 %v2114_v43, %v2025_v27  ;;  %v4852_v13 = vld [vmem:[#allocation64_spill] sm:$0xff] }
 0x367   :  { %v2062_v31 = vld [vmem:[#allocation3 + $0xe8] sm:$0xff]  ;;  %v2118_v4 = vmul.f32 0.6931472, %v2835_v17  ;;  %v2205_v46 = vsel %vm442_vm1, %v2151_v36, 0.0  ;;  %v2245_v41 = vadd.f32 %v2244_v40, %v2241_v35  ;;  %v2154_v55 = vadd.f32 %v2116_v22, %v2026_v29  ;;  %v2029_v2 = vld [vmem:[#allocation2 + $0xe0] sm:$0xff] }
 0x368   :  { %1351 = vst.msk [vmem:[#allocation3 + $0xf8] sm:$0xff] %vm442_vm1, %v1318_v23  ;;  %2840 = vlog2.f32 %v2062_v31  ;;  %v2200_v24 = vadd.f32 %v2199_v62, %v2198_v19  ;;  %v2207_v32 = vsel %vm442_vm1, %v2152_v5, 0.0  ;;  %v1980_v15 = vsel %vm442_vm1, %v1918_v9, 0.0  ;;  %v2032_v9 = vld [vmem:[#allocation2 + $0xf8] sm:$0xff] }
 0x369   :  { %v1879_v54 = vpop.xlane.xlu1 %1878  ;;  %v2155_v33 = vadd.f32 %v2118_v4, %v2027_v51  ;;  %v2209_v37 = vsel %vm442_vm1, %v2153_v48, 0.0  ;;  %v4853_v47 = vsub.s32 0, %v4852_v13  ;;  %v4854_v26 = vsub.s32 1, %v4852_v13 }
 0x36a   :  { %v1915_v6 = vmul.f32 %v1879_v54, %v4791_v44  ;;  %v2202_v53 = vadd.f32 %v2201_v1, %v2200_v24  ;;  %v2837_v34 = vpop.eup %2836  ;;  %v2211_v0 = vsel %vm442_vm1, %v2154_v55, 0.0  ;;  %v2030_v1 = vld [vmem:[#allocation2 + $0xe8] sm:$0xff]  ;;  %v4855_v48 = vmov 0.0  }
 0x36b   :  { %v2063_v50 = vld [vmem:[#allocation3 + $0xf0] sm:$0xff]  ;;  %v2120_v57 = vmul.f32 0.6931472, %v2837_v34  ;;  %v2251_v23 = vrot.slane %v2245_v41, %v4853_v47  ;;  %v2255_v19 = vrot.slane %v2245_v41, %v4854_v26  ;;  %438 = vst.msk [vmem:[#allocation6] sm:$0x1] %vm437_vm3, %v4855_v48 }
 0x36c   :  { %v1974_v38 = vsel %vm442_vm1, %v1915_v6, 0.0  ;;  %2842 = vlog2.f32 %v2063_v50  ;;  %v2204_v49 = vadd.f32 %v2203_v21, %v2202_v53  ;;  %v2031_v53 = vld [vmem:[#allocation2 + $0xf0] sm:$0xff] }
 0x36d   :  { %v1975_v63 = vadd.f32 %v1974_v38, %v1973_v25  ;;  %v1883_v3 = vpop.xlane.xlu1 %1882  ;;  %v2156_v62 = vadd.f32 %v2120_v57, %v2028_v20  ;;  %v2259_v43 = vsel %vm2258_vm2, %v2251_v23, 0.0  ;;  %v2260_v36 = vsel %vm2258_vm2, %v2255_v19, 0.0 }
 0x36e   :  { %v2839_v61 = vpop.eup %2838  ;;  %v1917_v10 = vmul.f32 %v1883_v3, %v4791_v44  ;;  %v2206_v8 = vadd.f32 %v2205_v46, %v2204_v49  ;;  %v2261_v25 = vadd.f32 %v2260_v36, %v2259_v43 }
 0x36f   :  { %v1977_v18 = vadd.f32 %v1976_v60, %v1975_v63  ;;  %v2064_v14 = vld [vmem:[#allocation3 + $0xf8] sm:$0xff]  ;;  %v2122_v58 = vmul.f32 0.6931472, %v2839_v61  ;;  %v2215_v28 = vsel %vm442_vm1, %v2156_v62, 0.0 }
 0x370   :  { %v1978_v12 = vsel %vm442_vm1, %v1917_v10, 0.0  ;;  %2844 = vlog2.f32 %v2064_v14  ;;  %v2208_v7 = vadd.f32 %v2207_v32, %v2206_v8 }
 0x371   :  { %v1979_v11 = vadd.f32 %v1978_v12, %v1977_v18  ;;  %v1887_v52 = vpop.xlane.xlu1 %1886  ;;  %v2157_v54 = vadd.f32 %v2122_v58, %v2029_v2 }
 0x372   :  { %v2841_v56 = vpop.eup %2840  ;;  %v1919_v59 = vmul.f32 %v1887_v52, %v4791_v44  ;;  %v2210_v30 = vadd.f32 %v2209_v37, %v2208_v7  ;;  %v2213_v44 = vsel %vm442_vm1, %v2155_v33, 0.0 }
 0x373   :  { %v1981_v31 = vadd.f32 %v1980_v15, %v1979_v11  ;;  %v2124_v16 = vmul.f32 0.6931472, %v2841_v56  ;;  %v2217_v50 = vsel %vm442_vm1, %v2157_v54, 0.0 }
 0x374   :  { %v1982_v42 = vsel %vm442_vm1, %v1919_v59, 0.0  ;;  %v2212_v24 = vadd.f32 %v2211_v0, %v2210_v30  ;;  %v1920_v59 = vld [vmem:[#allocation6] sm:$0x1] }
 0x375   :  { %v1983_v45 = vadd.f32 %v1982_v42, %v1981_v31  ;;  %v2158_v40 = vadd.f32 %v2124_v16, %v2030_v1 }
 0x376   :  { %v2843_v39 = vpop.eup %2842  ;;  %v2214_v17 = vadd.f32 %v2213_v44, %v2212_v24 }
 0x377   :  { %1984 = vadd.xlane.f32.xlu0 %v1983_v45  ;;  %v2126_v6 = vmul.f32 0.6931472, %v2843_v39  ;;  %v2219_v38 = vsel %vm442_vm1, %v2158_v40, 0.0 }
 0x378   :  { %v2216_v21 = vadd.f32 %v2215_v28, %v2214_v17 }
 0x379   :  { %v2159_v60 = vadd.f32 %v2126_v6, %v2031_v53 }
 0x37a   :  { %v2845_v22 = vpop.eup %2844  ;;  %v2218_v5 = vadd.f32 %v2217_v50, %v2216_v21 }
 0x37b   :  { %2262 = vadd.xlane.f32.xlu0 %v2261_v25  ;;  %v2128_v34 = vmul.f32 0.6931472, %v2845_v22  ;;  %v2221_v63 = vsel %vm442_vm1, %v2159_v60, 0.0 }
 0x37c   :  { %v2220_v27 = vadd.f32 %v2219_v38, %v2218_v5 }
 0x37d   :  { %v2160_v49 = vadd.f32 %v2128_v34, %v2032_v9 }
 0x37e   :  { %v2222_v3 = vadd.f32 %v2221_v63, %v2220_v27 }
 0x37f   :  { %v2223_v35 = vsel %vm442_vm1, %v2160_v49, 0.0 }
 0x380   :  { %v2224_v4 = vadd.f32 %v2223_v35, %v2222_v3 }
 0x382   :  { %2225 = vadd.xlane.f32.xlu1 %v2224_v4 }
 0x404   :  { %v1985_v46 = vpop.xlane.xlu0 %1984 }
 0x405   :  { %v1986_v61 = vrot.slane %v1985_v46, 4 }
 0x407   :  { %v1987_v10 = vadd.f32 %v1986_v61, %v1985_v46 }
 0x408   :  { %v2263_v41 = vpop.xlane.xlu0 %2262 }
 0x409   :  { %v1988_v29 = vrot.slane %v1987_v10, 2  ;;  %v2264_v8 = vrot.slane %v2263_v41, 4 }
 0x40b   :  { %v2265_v18 = vadd.f32 %v2264_v8, %v2263_v41  ;;  %v1989_v14 = vadd.f32 %v1988_v29, %v1987_v10 }
 0x40d   :  { %v1990_v57 = vrot.slane %v1989_v14, 1  ;;  %v2266_v55 = vrot.slane %v2265_v18, 2 }
 0x40f   :  { %v2226_v32 = vpop.xlane.xlu1 %2225  ;;  %v1991_v12 = vadd.f32 %v1990_v57, %v1989_v14  ;;  %v2267_v7 = vadd.f32 %v2266_v55, %v2265_v18 }
 0x410   :  { %v2227_v15 = vrot.slane %v2226_v32, 4 }
 0x411   :  { %2441 = vpush %v1991_v12  ;;  %v2268_v58 = vrot.slane %v2267_v7, 1 }
 0x412   :  { %v2228_v51 = vadd.f32 %v2227_v15, %v2226_v32 }
 0x413   :  { %v2269_v56 = vadd.f32 %v2268_v58, %v2267_v7 }
 0x414   :  { %v2229_v11 = vrot.slane %v2228_v51, 2 }
 0x416   :  { %v2230_v52 = vadd.f32 %v2229_v11, %v2228_v51 }
 0x418   :  { %v2231_v33 = vrot.slane %v2230_v52, 1 }
 0x41a   :  { %v2232_v37 = vadd.f32 %v2231_v33, %v2230_v52 }
 0x41c   :  { %2443 = vpush %v2232_v37 }
 0x41d   :  { %2445 = vpush %v2269_v56 }
 0x442   :  { %s2442_s0 = spop %2441 }
 0x443   :  { %v1993_v13 = vstv %s2442_s0 }
 0x444   :  { %v1994_v47 = vmul.f32 2.0, %v1993_v13 }
 0x446   :  { %v1995_v23 = vsub.f32 %v1920_v59, %v1994_v47 }
 0x448   :  { %1997 = vst.msk [vmem:[#allocation6] sm:$0x1] %vm437_vm3, %v1995_v23 }
 0x44d   :  { %s2444_s11 = spop %2443 }
 0x44e   :  { %v2234_v26 = vstv %s2444_s11  ;;  %s2446_s12 = spop %2445 }
 0x44f   :  { %v2161_v19 = vld [vmem:[#allocation6] sm:$0x1]  ;;  %v2271_v31 = vstv %s2446_s12 }
 0x450   :  { %v2235_v20 = vadd.f32 %v2234_v26, %v2161_v19 }
 0x452   :  { %2237 = vst.msk [vmem:[#allocation6] sm:$0x1] %vm437_vm3, %v2235_v20 }
 0x459   :  { %v2246_v30 = vld [vmem:[#allocation6] sm:$0x1] }
 0x45a   :  { %v2272_v16 = vadd.f32 %v2271_v31, %v2246_v30 }
 0x45c   :  { %2274 = vst.msk [vmem:[#allocation6] sm:$0x1] %vm437_vm3, %v2272_v16 }
 0x463   :  { %v2277_v62 = vld [vmem:[#allocation6] sm:$0x1] }
 0x464   :  { %v2278_v0 = vmul.f32 0.001953125, %v2277_v62 }
 0x466   :  { %2280 = vst.msk [vmem:[#allocation13] sm:$0x1] %vm437_vm3, %v2278_v0 }
 0x467   :  { %2937 = shalt.err (!%p2934_p6)
}
 0x468   :  { %s2938_s19 = scalar_lea.hbm %s4449_s3, 16 }
 0x469   :  { %p2939_p7 = scmp.ne.s32.totalorder %s4449_s3, %s2938_s19  ;;  %p2942_p8 = scmp.lt.u32.totalorder %s2938_s19, %s4449_s3 }
 0x46b   :  { %p2944_p9 = pnand %p2942_p8, %p2939_p7 }
 0x46d   :  { %2947 = shalt.err (!%p2944_p9)
}
 0x46e   :  { %2290 = dma.vmem_to_hbm [thread:$0]  %s2288_s14, 16, %s4449_s3, [#allocation10]  }
 0x46f   :  { %2952 = dma.done.wait [#allocation10], 16  }
 0x470   :  { %2953 = vsyncadd [#allocation10], 4294967280 }
 0x471   :  { %2294 = vsyncpa [#allocation9], 1 }
 0x472   :  { %2295 = vsyncpa [#allocation12], 1 }
 0x473   :  { %2296 = vsyncpa [#allocation10], 1 }

</bundles_post_ra>
